<compile_context>
chip_gen: v7x
topology: tpu7x:2x2x1
jax: 0.10.0
libtpu: 0.0.40
codegen_flags: <defaults>
</compile_context>

<pallas_src>
import functools

import jax
import jax.numpy as jnp
from jax.experimental import pallas as pl
from jax.experimental.pallas import tpu as pltpu


def _bf16_eup_supported():
    """bf16 transcendentals only help on v6e / v7x; be conservative otherwise."""
    try:
        kind = jax.devices()[0].device_kind.lower()
    except Exception:
        return False
    return ("v6" in kind) or ("v7" in kind)


# ---------------------------------------------------------------------------
# Pallas kernel: one batch tile per grid step, all layers unrolled in-kernel.
# ---------------------------------------------------------------------------
def _make_flow_kernel(feat_dim, reverse, inds, bf16_tanh):
    half = feat_dim // 2

    def kernel(x_ref, lp_ref, w1_ref, b1_ref, w2_ref, b2_ref, xo_ref, lpo_ref):
        # Load the batch tile once; keep the two coupling halves as values.
        x = x_ref[...].astype(jnp.float32)
        h_lo = x[:, :half]          # columns [0, half)      (TB, half) f32
        h_hi = x[:, half:]          # columns [half, D)      (TB, half) f32
        lp = lp_ref[...].astype(jnp.float32)

        # Static unrolled layer loop; `inds` and parity are Python constants.
        for li in inds:
            parity = li % 2
            if parity == 0:
                x1, x2 = h_lo, h_hi   # condition on low half, transform high
            else:
                x1, x2 = h_hi, h_lo   # condition on high half, transform low

            w1 = w1_ref[li]           # (half, H) bf16, static index (resident)
            b1 = b1_ref[li]           # (1, H)    f32
            w2 = w2_ref[li]           # (H, D)    bf16
            b2 = b2_ref[li]           # (1, D)    f32

            # Conditioner MLP: bf16 MXU operands, f32 accumulation.
            hs = jnp.dot(x1.astype(jnp.bfloat16), w1,
                         preferred_element_type=jnp.float32) + b1
            if bf16_tanh:
                h = jnp.tanh(hs.astype(jnp.bfloat16))        # bf16 EUP (v6e/v7x)
            else:
                h = jnp.tanh(hs).astype(jnp.bfloat16)        # f32 EUP (v5e)
            st = jnp.dot(h, w2, preferred_element_type=jnp.float32) + b2

            s = jnp.tanh(st[:, :half])   # bounded log-scale (f32)
            t = st[:, half:]

            if not reverse:              # static python bool, baked at trace time
                y2 = x2 * jnp.exp(s) + t
                lp = lp - jnp.sum(s, axis=1, keepdims=True)
            else:
                y2 = (x2 - t) * jnp.exp(-s)
                lp = lp + jnp.sum(s, axis=1, keepdims=True)

            if parity == 0:
                h_hi = y2
            else:
                h_lo = y2

        # Single HBM writeback per batch tile (lane-aligned half slices).
        xo_ref[:, :half] = h_lo.astype(xo_ref.dtype)
        xo_ref[:, half:] = h_hi.astype(xo_ref.dtype)
        lpo_ref[...] = lp.astype(lpo_ref.dtype)

    return kernel


# ---------------------------------------------------------------------------
# SequentialFlow wrapper (mirrors the PyTorch forward signature).
# ---------------------------------------------------------------------------
class SequentialFlow:
    """JAX/Pallas port of SequentialFlow with a chain of affine couplings."""

    def __init__(self, num_layers, feat_dim, hidden_dim, key):
        assert feat_dim % 2 == 0
        half = feat_dim // 2
        # Lane-alignment requirements (pad D / H up front for arbitrary sizes).
        assert half % 128 == 0, "feat_dim/2 must be a multiple of 128 lanes"
        assert hidden_dim % 128 == 0, "hidden_dim must be a multiple of 128 lanes"
        self.L = num_layers
        self.D = feat_dim
        self.H = hidden_dim
        self.bf16_tanh = _bf16_eup_supported()
        k1, k2 = jax.random.split(key)
        # Weights stored in bf16 (MXU-native, halves weight DMA); biases f32.
        self.W1 = (0.2 * jax.random.normal(
            k1, (num_layers, half, hidden_dim), dtype=jnp.float32)
        ).astype(jnp.bfloat16)
        self.b1 = jnp.zeros((num_layers, 1, hidden_dim), dtype=jnp.float32)
        self.W2 = (0.2 * jax.random.normal(
            k2, (num_layers, hidden_dim, feat_dim), dtype=jnp.float32)
        ).astype(jnp.bfloat16)
        self.b2 = jnp.zeros((num_layers, 1, feat_dim), dtype=jnp.float32)

    @functools.partial(jax.jit, static_argnums=(0, 3, 4))
    def _run(self, x, logpx, reverse, inds):
        D, H, L = self.D, self.H, self.L
        half = D // 2
        B = x.shape[0]

        # Batch tile: prefer 256 (fills the 256-wide MXU on v6e/v7x) but keep
        # >= 2 tiles so the parallel batch axis can shard across v7x's 2 TCs.
        if B % 256 == 0 and B // 256 >= 2:
            TB = 256
        elif B % 128 == 0:
            TB = 128
        else:
            TB = B
        assert B % TB == 0 and TB % 8 == 0, "batch must tile to 8-row sublanes"

        kernel = _make_flow_kernel(D, reverse, inds, self.bf16_tanh)

        xo, lpo = pl.pallas_call(
            kernel,
            out_shape=(jax.ShapeDtypeStruct(x.shape, x.dtype),
                       jax.ShapeDtypeStruct((B, 1), jnp.float32)),
            grid=(B // TB,),
            in_specs=[
                # Activations: one batch tile per grid step.
                pl.BlockSpec((TB, D), lambda b: (b, 0)),
                pl.BlockSpec((TB, 1), lambda b: (b, 0)),
                # Weight / bias stacks: whole-array VMEM-resident blocks.
                pl.BlockSpec((L, half, H), lambda b: (0, 0, 0)),
                pl.BlockSpec((L, 1, H), lambda b: (0, 0, 0)),
                pl.BlockSpec((L, H, D), lambda b: (0, 0, 0)),
                pl.BlockSpec((L, 1, D), lambda b: (0, 0, 0)),
            ],
            out_specs=(
                pl.BlockSpec((TB, D), lambda b: (b, 0)),
                pl.BlockSpec((TB, 1), lambda b: (b, 0)),
            ),
            compiler_params=pltpu.CompilerParams(
                dimension_semantics=("parallel",),
            ),
        )(x, logpx, self.W1, self.b1, self.W2, self.b2)
        return xo, lpo

    def __call__(self, x, logpx=None, reverse=False, inds=None):
        if inds is None:
            inds = (tuple(range(self.L - 1, -1, -1)) if reverse
                    else tuple(range(self.L)))
        else:
            inds = tuple(int(i) for i in inds)
        lp_in = (jnp.zeros((x.shape[0], 1), jnp.float32)
                 if logpx is None else logpx)
        xo, lpo = self._run(x, lp_in, bool(reverse), inds)
        if logpx is None:
            return xo
        return xo, lpo


# ---------------------------------------------------------------------------
# Pure-JAX reference (same math, same casts) for correctness.
# ---------------------------------------------------------------------------
def reference_flow(flow, x, logpx, reverse):
    half = flow.D // 2
    inds = range(flow.L - 1, -1, -1) if reverse else range(flow.L)
    x = x.astype(jnp.float32)
    lp = logpx
    for i in inds:
        parity = i % 2
        if parity == 0:
            x1, x2 = x[:, :half], x[:, half:]
        else:
            x1, x2 = x[:, half:], x[:, :half]
        hs = jnp.dot(x1.astype(jnp.bfloat16), flow.W1[i],
                     preferred_element_type=jnp.float32) + flow.b1[i]
        if flow.bf16_tanh:
            h = jnp.tanh(hs.astype(jnp.bfloat16))
        else:
            h = jnp.tanh(hs).astype(jnp.bfloat16)
        st = jnp.dot(h, flow.W2[i], preferred_element_type=jnp.float32) + flow.b2[i]
        s = jnp.tanh(st[:, :half])
        t = st[:, half:]
        if not reverse:
            y2 = x2 * jnp.exp(s) + t
            lp = lp - jnp.sum(s, axis=1, keepdims=True)
        else:
            y2 = (x2 - t) * jnp.exp(-s)
            lp = lp + jnp.sum(s, axis=1, keepdims=True)
        x = (jnp.concatenate([x1, y2], 1) if parity == 0
             else jnp.concatenate([y2, x1], 1))
    return x, lp


if __name__ == "__main__":
    key = jax.random.PRNGKey(0)
    kp, kx = jax.random.split(key)

    # Small but lane-friendly shapes: 2 batch tiles of 128, half = 128 lanes.
    B, D, H, L = 256, 256, 256, 4
    flow = SequentialFlow(num_layers=L, feat_dim=D, hidden_dim=H, key=kp)

    x = jax.random.normal(kx, (B, D), dtype=jnp.float32)
    logpx = jnp.zeros((B, 1), jnp.float32)

    # Forward with log-density tracking.
    y, logpy = flow(x, logpx, reverse=False)
    y = jax.block_until_ready(y)
    logpy = jax.block_until_ready(logpy)

    # Forward without logpx (other branch of the PyTorch forward).
    y_only = jax.block_until_ready(flow(x, reverse=False))

    # Reverse pass (inverse of the chain).
    x_rec, logpx_rec = flow(y, logpy, reverse=True)
    x_rec = jax.block_until_ready(x_rec)
    logpx_rec = jax.block_until_ready(logpx_rec)

    # Correctness: kernel vs pure-JAX reference (same casts) + invertibility.
    y_ref, logpy_ref = reference_flow(flow, x, logpx, reverse=False)
    assert jnp.allclose(y, y_ref, atol=1e-3), "forward x mismatch"
    assert jnp.allclose(logpy, logpy_ref, atol=1e-3), "forward logpx mismatch"
    assert jnp.allclose(y_only, y_ref, atol=1e-3), "no-logpx branch mismatch"
    # bf16 conditioner inputs => slightly looser round-trip tolerance than pure f32.
    assert jnp.allclose(x_rec, x, atol=5e-2), "reverse does not invert forward"
    assert jnp.allclose(logpx_rec, logpx, atol=5e-2), "logpx not restored by reverse"

    print("KERNEL_OK")
</pallas_src>

<mosaic_0001>
module attributes {stable_mosaic.version = 11 : i64} {
  func.func @kernel(%arg0: i32, %arg1: memref<128x256xf32, #tpu.memory_space<vmem>>, %arg2: memref<128x1xf32, #tpu.memory_space<vmem>>, %arg3: memref<4x128x256xbf16, #tpu.memory_space<vmem>>, %arg4: memref<4x1x256xf32, #tpu.memory_space<vmem>>, %arg5: memref<4x256x256xbf16, #tpu.memory_space<vmem>>, %arg6: memref<4x1x256xf32, #tpu.memory_space<vmem>>, %arg7: memref<128x256xf32, #tpu.memory_space<vmem>>, %arg8: memref<128x1xf32, #tpu.memory_space<vmem>>) attributes {dimension_semantics = [#tpu.dimension_semantics<parallel>], iteration_bounds = array<i64: 2>, scalar_prefetch = 0 : i64, scratch_operands = 0 : i64, tpu.core_type = #tpu.core_type<tc>, window_params = [{transform_indices = @transform_0, window_bounds = array<i64: 128, 256>}, {transform_indices = @transform_1, window_bounds = array<i64: 128, 1>}, {pipeline_mode = #tpu.pipeline_mode<synchronous>, transform_indices = @transform_2, window_bounds = array<i64: 4, 128, 256>}, {pipeline_mode = #tpu.pipeline_mode<synchronous>, transform_indices = @transform_3, window_bounds = array<i64: 4, 1, 256>}, {pipeline_mode = #tpu.pipeline_mode<synchronous>, transform_indices = @transform_4, window_bounds = array<i64: 4, 256, 256>}, {pipeline_mode = #tpu.pipeline_mode<synchronous>, transform_indices = @transform_5, window_bounds = array<i64: 4, 1, 256>}, {transform_indices = @transform_6, window_bounds = array<i64: 128, 256>}, {transform_indices = @transform_7, window_bounds = array<i64: 128, 1>}]} {
    %c0 = arith.constant 0 : index
    %c0_0 = arith.constant 0 : index
    %0 = vector.load %arg1[%c0, %c0_0] : memref<128x256xf32, #tpu.memory_space<vmem>>, vector<128x256xf32>
    %1 = vector.extract_strided_slice %0 {offsets = [0, 0], sizes = [128, 128], strides = [1, 1]} : vector<128x256xf32> to vector<128x128xf32>
    %2 = vector.extract_strided_slice %0 {offsets = [0, 128], sizes = [128, 128], strides = [1, 1]} : vector<128x256xf32> to vector<128x128xf32>
    %c0_1 = arith.constant 0 : index
    %c0_2 = arith.constant 0 : index
    %3 = vector.load %arg2[%c0_1, %c0_2] : memref<128x1xf32, #tpu.memory_space<vmem>>, vector<128x1xf32>
    %c0_3 = arith.constant 0 : index
    %c0_4 = arith.constant 0 : index
    %c0_5 = arith.constant 0 : index
    %4 = vector.load %arg3[%c0_3, %c0_4, %c0_5] : memref<4x128x256xbf16, #tpu.memory_space<vmem>>, vector<1x128x256xbf16>
    %5 = vector.shape_cast %4 : vector<1x128x256xbf16> to vector<128x256xbf16>
    %c0_6 = arith.constant 0 : index
    %c0_7 = arith.constant 0 : index
    %c0_8 = arith.constant 0 : index
    %6 = vector.load %arg4[%c0_6, %c0_7, %c0_8] : memref<4x1x256xf32, #tpu.memory_space<vmem>>, vector<1x1x256xf32>
    %7 = vector.shape_cast %6 : vector<1x1x256xf32> to vector<1x256xf32>
    %c0_9 = arith.constant 0 : index
    %c0_10 = arith.constant 0 : index
    %c0_11 = arith.constant 0 : index
    %8 = vector.load %arg5[%c0_9, %c0_10, %c0_11] : memref<4x256x256xbf16, #tpu.memory_space<vmem>>, vector<1x256x256xbf16>
    %9 = vector.shape_cast %8 : vector<1x256x256xbf16> to vector<256x256xbf16>
    %c0_12 = arith.constant 0 : index
    %c0_13 = arith.constant 0 : index
    %c0_14 = arith.constant 0 : index
    %10 = vector.load %arg6[%c0_12, %c0_13, %c0_14] : memref<4x1x256xf32, #tpu.memory_space<vmem>>, vector<1x1x256xf32>
    %11 = vector.shape_cast %10 : vector<1x1x256xf32> to vector<1x256xf32>
    %12 = arith.truncf %1 : vector<128x128xf32> to vector<128x128xbf16>
    %cst = arith.constant dense<0.000000e+00> : vector<128x256xf32>
    %13 = tpu.matmul %12, %5, %cst {dimension_numbers = #tpu.dot_dimension_numbers<[1], [0], [0], [1], [0, 0, 1, 1], [], []>} : vector<128x128xbf16>, vector<128x256xbf16>, vector<128x256xf32> -> vector<128x256xf32>
    %14 = vector.broadcast %7 : vector<1x256xf32> to vector<128x256xf32>
    %15 = arith.addf %13, %14 : vector<128x256xf32>
    %16 = math.tanh %15 : vector<128x256xf32>
    %17 = arith.truncf %16 : vector<128x256xf32> to vector<128x256xbf16>
    %cst_15 = arith.constant dense<0.000000e+00> : vector<128x256xf32>
    %18 = tpu.matmul %17, %9, %cst_15 {dimension_numbers = #tpu.dot_dimension_numbers<[1], [0], [0], [1], [0, 0, 1, 1], [], []>} : vector<128x256xbf16>, vector<256x256xbf16>, vector<128x256xf32> -> vector<128x256xf32>
    %19 = vector.broadcast %11 : vector<1x256xf32> to vector<128x256xf32>
    %20 = arith.addf %18, %19 : vector<128x256xf32>
    %21 = vector.extract_strided_slice %20 {offsets = [0, 0], sizes = [128, 128], strides = [1, 1]} : vector<128x256xf32> to vector<128x128xf32>
    %22 = math.tanh %21 : vector<128x128xf32>
    %23 = vector.extract_strided_slice %20 {offsets = [0, 128], sizes = [128, 128], strides = [1, 1]} : vector<128x256xf32> to vector<128x128xf32>
    %24 = math.exp %22 : vector<128x128xf32>
    %25 = arith.mulf %2, %24 : vector<128x128xf32>
    %26 = arith.addf %25, %23 : vector<128x128xf32>
    %cst_16 = arith.constant dense<0.000000e+00> : vector<128xf32>
    %27 = vector.multi_reduction <add>, %22, %cst_16 [1] : vector<128x128xf32> to vector<128xf32>
    %28 = vector.shape_cast %27 : vector<128xf32> to vector<128x1xf32>
    %29 = arith.subf %3, %28 : vector<128x1xf32>
    %c1 = arith.constant 1 : index
    %c0_17 = arith.constant 0 : index
    %c0_18 = arith.constant 0 : index
    %30 = vector.load %arg3[%c1, %c0_17, %c0_18] : memref<4x128x256xbf16, #tpu.memory_space<vmem>>, vector<1x128x256xbf16>
    %31 = vector.shape_cast %30 : vector<1x128x256xbf16> to vector<128x256xbf16>
    %c1_19 = arith.constant 1 : index
    %c0_20 = arith.constant 0 : index
    %c0_21 = arith.constant 0 : index
    %32 = vector.load %arg4[%c1_19, %c0_20, %c0_21] : memref<4x1x256xf32, #tpu.memory_space<vmem>>, vector<1x1x256xf32>
    %33 = vector.shape_cast %32 : vector<1x1x256xf32> to vector<1x256xf32>
    %c1_22 = arith.constant 1 : index
    %c0_23 = arith.constant 0 : index
    %c0_24 = arith.constant 0 : index
    %34 = vector.load %arg5[%c1_22, %c0_23, %c0_24] : memref<4x256x256xbf16, #tpu.memory_space<vmem>>, vector<1x256x256xbf16>
    %35 = vector.shape_cast %34 : vector<1x256x256xbf16> to vector<256x256xbf16>
    %c1_25 = arith.constant 1 : index
    %c0_26 = arith.constant 0 : index
    %c0_27 = arith.constant 0 : index
    %36 = vector.load %arg6[%c1_25, %c0_26, %c0_27] : memref<4x1x256xf32, #tpu.memory_space<vmem>>, vector<1x1x256xf32>
    %37 = vector.shape_cast %36 : vector<1x1x256xf32> to vector<1x256xf32>
    %38 = arith.truncf %26 : vector<128x128xf32> to vector<128x128xbf16>
    %cst_28 = arith.constant dense<0.000000e+00> : vector<128x256xf32>
    %39 = tpu.matmul %38, %31, %cst_28 {dimension_numbers = #tpu.dot_dimension_numbers<[1], [0], [0], [1], [0, 0, 1, 1], [], []>} : vector<128x128xbf16>, vector<128x256xbf16>, vector<128x256xf32> -> vector<128x256xf32>
    %40 = vector.broadcast %33 : vector<1x256xf32> to vector<128x256xf32>
    %41 = arith.addf %39, %40 : vector<128x256xf32>
    %42 = math.tanh %41 : vector<128x256xf32>
    %43 = arith.truncf %42 : vector<128x256xf32> to vector<128x256xbf16>
    %cst_29 = arith.constant dense<0.000000e+00> : vector<128x256xf32>
    %44 = tpu.matmul %43, %35, %cst_29 {dimension_numbers = #tpu.dot_dimension_numbers<[1], [0], [0], [1], [0, 0, 1, 1], [], []>} : vector<128x256xbf16>, vector<256x256xbf16>, vector<128x256xf32> -> vector<128x256xf32>
    %45 = vector.broadcast %37 : vector<1x256xf32> to vector<128x256xf32>
    %46 = arith.addf %44, %45 : vector<128x256xf32>
    %47 = vector.extract_strided_slice %46 {offsets = [0, 0], sizes = [128, 128], strides = [1, 1]} : vector<128x256xf32> to vector<128x128xf32>
    %48 = math.tanh %47 : vector<128x128xf32>
    %49 = vector.extract_strided_slice %46 {offsets = [0, 128], sizes = [128, 128], strides = [1, 1]} : vector<128x256xf32> to vector<128x128xf32>
    %50 = math.exp %48 : vector<128x128xf32>
    %51 = arith.mulf %1, %50 : vector<128x128xf32>
    %52 = arith.addf %51, %49 : vector<128x128xf32>
    %cst_30 = arith.constant dense<0.000000e+00> : vector<128xf32>
    %53 = vector.multi_reduction <add>, %48, %cst_30 [1] : vector<128x128xf32> to vector<128xf32>
    %54 = vector.shape_cast %53 : vector<128xf32> to vector<128x1xf32>
    %55 = arith.subf %29, %54 : vector<128x1xf32>
    %c2 = arith.constant 2 : index
    %c0_31 = arith.constant 0 : index
    %c0_32 = arith.constant 0 : index
    %56 = vector.load %arg3[%c2, %c0_31, %c0_32] : memref<4x128x256xbf16, #tpu.memory_space<vmem>>, vector<1x128x256xbf16>
    %57 = vector.shape_cast %56 : vector<1x128x256xbf16> to vector<128x256xbf16>
    %c2_33 = arith.constant 2 : index
    %c0_34 = arith.constant 0 : index
    %c0_35 = arith.constant 0 : index
    %58 = vector.load %arg4[%c2_33, %c0_34, %c0_35] : memref<4x1x256xf32, #tpu.memory_space<vmem>>, vector<1x1x256xf32>
    %59 = vector.shape_cast %58 : vector<1x1x256xf32> to vector<1x256xf32>
    %c2_36 = arith.constant 2 : index
    %c0_37 = arith.constant 0 : index
    %c0_38 = arith.constant 0 : index
    %60 = vector.load %arg5[%c2_36, %c0_37, %c0_38] : memref<4x256x256xbf16, #tpu.memory_space<vmem>>, vector<1x256x256xbf16>
    %61 = vector.shape_cast %60 : vector<1x256x256xbf16> to vector<256x256xbf16>
    %c2_39 = arith.constant 2 : index
    %c0_40 = arith.constant 0 : index
    %c0_41 = arith.constant 0 : index
    %62 = vector.load %arg6[%c2_39, %c0_40, %c0_41] : memref<4x1x256xf32, #tpu.memory_space<vmem>>, vector<1x1x256xf32>
    %63 = vector.shape_cast %62 : vector<1x1x256xf32> to vector<1x256xf32>
    %64 = arith.truncf %52 : vector<128x128xf32> to vector<128x128xbf16>
    %cst_42 = arith.constant dense<0.000000e+00> : vector<128x256xf32>
    %65 = tpu.matmul %64, %57, %cst_42 {dimension_numbers = #tpu.dot_dimension_numbers<[1], [0], [0], [1], [0, 0, 1, 1], [], []>} : vector<128x128xbf16>, vector<128x256xbf16>, vector<128x256xf32> -> vector<128x256xf32>
    %66 = vector.broadcast %59 : vector<1x256xf32> to vector<128x256xf32>
    %67 = arith.addf %65, %66 : vector<128x256xf32>
    %68 = math.tanh %67 : vector<128x256xf32>
    %69 = arith.truncf %68 : vector<128x256xf32> to vector<128x256xbf16>
    %cst_43 = arith.constant dense<0.000000e+00> : vector<128x256xf32>
    %70 = tpu.matmul %69, %61, %cst_43 {dimension_numbers = #tpu.dot_dimension_numbers<[1], [0], [0], [1], [0, 0, 1, 1], [], []>} : vector<128x256xbf16>, vector<256x256xbf16>, vector<128x256xf32> -> vector<128x256xf32>
    %71 = vector.broadcast %63 : vector<1x256xf32> to vector<128x256xf32>
    %72 = arith.addf %70, %71 : vector<128x256xf32>
    %73 = vector.extract_strided_slice %72 {offsets = [0, 0], sizes = [128, 128], strides = [1, 1]} : vector<128x256xf32> to vector<128x128xf32>
    %74 = math.tanh %73 : vector<128x128xf32>
    %75 = vector.extract_strided_slice %72 {offsets = [0, 128], sizes = [128, 128], strides = [1, 1]} : vector<128x256xf32> to vector<128x128xf32>
    %76 = math.exp %74 : vector<128x128xf32>
    %77 = arith.mulf %26, %76 : vector<128x128xf32>
    %78 = arith.addf %77, %75 : vector<128x128xf32>
    %cst_44 = arith.constant dense<0.000000e+00> : vector<128xf32>
    %79 = vector.multi_reduction <add>, %74, %cst_44 [1] : vector<128x128xf32> to vector<128xf32>
    %80 = vector.shape_cast %79 : vector<128xf32> to vector<128x1xf32>
    %81 = arith.subf %55, %80 : vector<128x1xf32>
    %c3 = arith.constant 3 : index
    %c0_45 = arith.constant 0 : index
    %c0_46 = arith.constant 0 : index
    %82 = vector.load %arg3[%c3, %c0_45, %c0_46] : memref<4x128x256xbf16, #tpu.memory_space<vmem>>, vector<1x128x256xbf16>
    %83 = vector.shape_cast %82 : vector<1x128x256xbf16> to vector<128x256xbf16>
    %c3_47 = arith.constant 3 : index
    %c0_48 = arith.constant 0 : index
    %c0_49 = arith.constant 0 : index
    %84 = vector.load %arg4[%c3_47, %c0_48, %c0_49] : memref<4x1x256xf32, #tpu.memory_space<vmem>>, vector<1x1x256xf32>
    %85 = vector.shape_cast %84 : vector<1x1x256xf32> to vector<1x256xf32>
    %c3_50 = arith.constant 3 : index
    %c0_51 = arith.constant 0 : index
    %c0_52 = arith.constant 0 : index
    %86 = vector.load %arg5[%c3_50, %c0_51, %c0_52] : memref<4x256x256xbf16, #tpu.memory_space<vmem>>, vector<1x256x256xbf16>
    %87 = vector.shape_cast %86 : vector<1x256x256xbf16> to vector<256x256xbf16>
    %c3_53 = arith.constant 3 : index
    %c0_54 = arith.constant 0 : index
    %c0_55 = arith.constant 0 : index
    %88 = vector.load %arg6[%c3_53, %c0_54, %c0_55] : memref<4x1x256xf32, #tpu.memory_space<vmem>>, vector<1x1x256xf32>
    %89 = vector.shape_cast %88 : vector<1x1x256xf32> to vector<1x256xf32>
    %90 = arith.truncf %78 : vector<128x128xf32> to vector<128x128xbf16>
    %cst_56 = arith.constant dense<0.000000e+00> : vector<128x256xf32>
    %91 = tpu.matmul %90, %83, %cst_56 {dimension_numbers = #tpu.dot_dimension_numbers<[1], [0], [0], [1], [0, 0, 1, 1], [], []>} : vector<128x128xbf16>, vector<128x256xbf16>, vector<128x256xf32> -> vector<128x256xf32>
    %92 = vector.broadcast %85 : vector<1x256xf32> to vector<128x256xf32>
    %93 = arith.addf %91, %92 : vector<128x256xf32>
    %94 = math.tanh %93 : vector<128x256xf32>
    %95 = arith.truncf %94 : vector<128x256xf32> to vector<128x256xbf16>
    %cst_57 = arith.constant dense<0.000000e+00> : vector<128x256xf32>
    %96 = tpu.matmul %95, %87, %cst_57 {dimension_numbers = #tpu.dot_dimension_numbers<[1], [0], [0], [1], [0, 0, 1, 1], [], []>} : vector<128x256xbf16>, vector<256x256xbf16>, vector<128x256xf32> -> vector<128x256xf32>
    %97 = vector.broadcast %89 : vector<1x256xf32> to vector<128x256xf32>
    %98 = arith.addf %96, %97 : vector<128x256xf32>
    %99 = vector.extract_strided_slice %98 {offsets = [0, 0], sizes = [128, 128], strides = [1, 1]} : vector<128x256xf32> to vector<128x128xf32>
    %100 = math.tanh %99 : vector<128x128xf32>
    %101 = vector.extract_strided_slice %98 {offsets = [0, 128], sizes = [128, 128], strides = [1, 1]} : vector<128x256xf32> to vector<128x128xf32>
    %102 = math.exp %100 : vector<128x128xf32>
    %103 = arith.mulf %52, %102 : vector<128x128xf32>
    %104 = arith.addf %103, %101 : vector<128x128xf32>
    %cst_58 = arith.constant dense<0.000000e+00> : vector<128xf32>
    %105 = vector.multi_reduction <add>, %100, %cst_58 [1] : vector<128x128xf32> to vector<128xf32>
    %106 = vector.shape_cast %105 : vector<128xf32> to vector<128x1xf32>
    %107 = arith.subf %81, %106 : vector<128x1xf32>
    %c0_59 = arith.constant 0 : index
    %c0_60 = arith.constant 0 : index
    %108 = vector.load %arg7[%c0_59, %c0_60] : memref<128x256xf32, #tpu.memory_space<vmem>>, vector<128x128xf32>
    tpu.vector_store %arg7[%c0_59, %c0_60], %104 {strides = array<i32>} : memref<128x256xf32, #tpu.memory_space<vmem>>, vector<128x128xf32>,
    %c0_61 = arith.constant 0 : index
    %c128 = arith.constant 128 : index
    %109 = vector.load %arg7[%c0_61, %c128] : memref<128x256xf32, #tpu.memory_space<vmem>>, vector<128x128xf32>
    tpu.vector_store %arg7[%c0_61, %c128], %78 {strides = array<i32>} : memref<128x256xf32, #tpu.memory_space<vmem>>, vector<128x128xf32>,
    %c0_62 = arith.constant 0 : index
    %c0_63 = arith.constant 0 : index
    %110 = vector.load %arg8[%c0_62, %c0_63] : memref<128x1xf32, #tpu.memory_space<vmem>>, vector<128x1xf32>
    tpu.vector_store %arg8[%c0_62, %c0_63], %107 {strides = array<i32>} : memref<128x1xf32, #tpu.memory_space<vmem>>, vector<128x1xf32>,
    return
  }
  func.func @transform_0(%arg0: i32) -> (i32, i32) {
    %c0_i32 = arith.constant 0 : i32
    %c0_i32_0 = arith.constant 0 : i32
    return %arg0, %c0_i32 : i32, i32
  }
  func.func @transform_1(%arg0: i32) -> (i32, i32) {
    %c0_i32 = arith.constant 0 : i32
    %c0_i32_0 = arith.constant 0 : i32
    return %arg0, %c0_i32 : i32, i32
  }
  func.func @transform_2(%arg0: i32) -> (i32, i32, i32) {
    %c0_i32 = arith.constant 0 : i32
    %c0_i32_0 = arith.constant 0 : i32
    %c0_i32_1 = arith.constant 0 : i32
    %c0_i32_2 = arith.constant 0 : i32
    return %c0_i32, %c0_i32_0, %c0_i32_1 : i32, i32, i32
  }
  func.func @transform_3(%arg0: i32) -> (i32, i32, i32) {
    %c0_i32 = arith.constant 0 : i32
    %c0_i32_0 = arith.constant 0 : i32
    %c0_i32_1 = arith.constant 0 : i32
    %c0_i32_2 = arith.constant 0 : i32
    return %c0_i32, %c0_i32_0, %c0_i32_1 : i32, i32, i32
  }
  func.func @transform_4(%arg0: i32) -> (i32, i32, i32) {
    %c0_i32 = arith.constant 0 : i32
    %c0_i32_0 = arith.constant 0 : i32
    %c0_i32_1 = arith.constant 0 : i32
    %c0_i32_2 = arith.constant 0 : i32
    return %c0_i32, %c0_i32_0, %c0_i32_1 : i32, i32, i32
  }
  func.func @transform_5(%arg0: i32) -> (i32, i32, i32) {
    %c0_i32 = arith.constant 0 : i32
    %c0_i32_0 = arith.constant 0 : i32
    %c0_i32_1 = arith.constant 0 : i32
    %c0_i32_2 = arith.constant 0 : i32
    return %c0_i32, %c0_i32_0, %c0_i32_1 : i32, i32, i32
  }
  func.func @transform_6(%arg0: i32) -> (i32, i32) {
    %c0_i32 = arith.constant 0 : i32
    %c0_i32_0 = arith.constant 0 : i32
    return %arg0, %c0_i32 : i32, i32
  }
  func.func @transform_7(%arg0: i32) -> (i32, i32) {
    %c0_i32 = arith.constant 0 : i32
    %c0_i32_0 = arith.constant 0 : i32
    return %arg0, %c0_i32 : i32, i32
  }
}

</mosaic_0001>

<bundles_post_ra>
// kernel: _run.1
= control target key start
LH: loop header
LB: loop body
LE: loop exit
PB: predicated region body
PF: predicated region fallthrough
CT: control target
= control target key end

     0   :  { %13 = vsyncpa [#allocation3], 0  ;;  %s6363_s0 = inlined_call_operand.vmem [shape: f32[256,256], index: 0, kind: input, shape index: {}]   ;;  %s6364_s1 = inlined_call_operand.vmem [shape: f32[256,1], index: 1, kind: input, shape index: {}]   ;;  %s6365_s2 = inlined_call_operand.vmem [shape: bf16[4,128,256], index: 2, kind: input, shape index: {}]   ;;  %s6366_s3 = inlined_call_operand.vmem [shape: f32[4,1,256], index: 3, kind: input, shape index: {}, may-alias: {3,5}]   ;;  %s6367_s4 = inlined_call_operand.vmem [shape: bf16[4,256,256], index: 4, kind: input, shape index: {}]   ;;  %s6368_s5 = inlined_call_operand.vmem [shape: f32[4,1,256], index: 5, kind: input, shape index: {}, may-alias: {3,5}]   ;;  %s6369_s6 = inlined_call_operand.hbm [shape: f32[256,256], index: 6, kind: output, shape index: {0}]   ;;  %s6370_s7 = inlined_call_operand.vmem [shape: f32[256,1], index: 7, kind: output, shape index: {1}]  }
   0x1   :  { %15 = vsyncpa [#allocation3 + $0x1], 0  ;;  %s4801_s24 = smov 0   ;;  %s4803_s25 = smov 0  }
   0x2   :  { %s4805_s26 = smov 0   ;;  %s4807_s27 = smov 0  }
   0x3 LB: > { %s4822_s28 = sadd.s32 4294967295, %s4755_s27   ;;  %s3440_s29 = sadd.s32 4294967294, %s4755_s27   ;;  %s4755_s27 = sphi %s4807_s27, %s6401_s27   ;;  %s4751_s26 = sphi %s4805_s26, %s6400_s26   ;;  %s4747_s25 = sphi %s4803_s25, %s6399_s25   ;;  %s4743_s24 = sphi %s4801_s24, %s6398_s24  }
   0x4   : > { %s4826_s30 = sadd.s32 1, %s4755_s27   ;;  %s164_s8 = sadd.s32 1, %s4751_s26 }
   0x5   : > { %s161_s9 = ssub.s32 %s4755_s27, %s4826_s30  ;;  %p174_p0 = scmp.ne.s32.totalorder %s4751_s26, %s4747_s25 }
   0x6   : > { %p162_p1 = scmp.eq.s32.totalorder %s161_s9, 0  ;;  %p175_p2 = scmp.eq.s32.totalorder %s4822_s28, 1 }
   0x7   : > { %p180_p3 = scmp.ne.s32.totalorder %s4747_s25, %s4743_s24  ;;  %p181_p4 = scmp.eq.s32.totalorder %s3440_s29, 1 }
   0x8   : > { %s4837_s10 = scalar_select %p162_p1, %s4751_s26, %s164_s8  }
   0x9   : > { %p4839_p5 = por %p175_p2, %p174_p0  ;;  %p4843_p6 = por %p181_p4, %p180_p3 }
   0xa   : > { %p3443_p7 = scmp.ge.s32.totalorder %s4755_s27, 1  ;;  %p256_p8 = scmp.lt.s32.totalorder %s4755_s27, 3 }
   0xc   : > { %p257_p9 = pnand %p3443_p7, %p256_p8 }
   0xe   : > { %260 = sbr.rel (%p257_p9) target bundleno = 2144 (0x860), region = 44 }
  0x15   : > { %v3877_v0 = vld [vmem:[%s6365_s2 + $0x4] ss:$8 sps:$4 sm:$0xff]   ;;  %v3879_v1 = vld [vmem:[%s6365_s2] ss:$8 sps:$4 sm:$0xff]   ;;  %v6371_v2 = vmov 0   ;;  %s3445_s13 = sshll.u32 %s4822_s28, 4 }
  0x16   : > { %549 = vmatprep.mubr.bf16.mxu0 %v6371_v2  ;;  %517 = vmatprep.subr.bf16.mxu0 %v3877_v0  ;;  %v3880_v3 = vld [vmem:[%s6365_s2 + $0x14] ss:$8 sps:$4 sm:$0xff]   ;;  %v3882_v4 = vld [vmem:[%s6365_s2 + $0x10] ss:$8 sps:$4 sm:$0xff]   ;;  %v3883_v5 = vld [vmem:[%s6365_s2 + $0x24] ss:$8 sps:$4 sm:$0xff]  }
  0x17   : > { %518 = vmatpush1.bf16.msra.mxu0 %v3879_v1  ;;  %v3885_v6 = vld [vmem:[%s6365_s2 + $0x20] ss:$8 sps:$4 sm:$0xff]   ;;  %v3886_v7 = vld [vmem:[%s6365_s2 + $0x34] ss:$8 sps:$4 sm:$0xff]   ;;  %v3888_v8 = vld [vmem:[%s6365_s2 + $0x30] ss:$8 sps:$4 sm:$0xff]  }
  0x18   : > { %519 = vmatprep.subr.bf16.mxu0 %v3880_v3  ;;  %v3889_v9 = vld [vmem:[%s6365_s2 + $0x44] ss:$8 sps:$4 sm:$0xff]   ;;  %p300_p10 = scmp.lt.s32.totalorder %s3445_s13, 31  ;;  %v3891_v10 = vld [vmem:[%s6365_s2 + $0x40] ss:$8 sps:$4 sm:$0xff]   ;;  %s289_s8 = sand.u32 1, %s4747_s25  }
  0x19   : > { %v3892_v11 = vld [vmem:[%s6365_s2 + $0x54] ss:$8 sps:$4 sm:$0xff]   ;;  %v3901_v12 = vld [vmem:[%s6367_s4 + $0x4] ss:$8 sps:$4 sm:$0xff]   ;;  %v3903_v13 = vld [vmem:[%s6367_s4] ss:$8 sps:$4 sm:$0xff]  }
  0x1a   : > { %s6403_s13 = smov (!%p300_p10, %s3445_s13), 31  ;;  %v3894_v14 = vld [vmem:[%s6365_s2 + $0x50] ss:$8 sps:$4 sm:$0xff]   ;;  %849 = vmatprep.subr.bf16.mxu1 %v3901_v12  ;;  %v3904_v15 = vld [vmem:[%s6367_s4 + $0x14] ss:$8 sps:$4 sm:$0xff]   ;;  %s3444_s9 = sshll.u32 %s289_s8, 8 }
  0x1b   : > { %520 = vmatpush1.bf16.msra.mxu0 %v3882_v4  ;;  %v3895_v16 = vld [vmem:[%s6365_s2 + $0x64] ss:$8 sps:$4 sm:$0xff]   ;;  %850 = vmatpush1.bf16.msra.mxu1 %v3903_v13  ;;  %v3906_v17 = vld [vmem:[%s6367_s4 + $0x10] ss:$8 sps:$4 sm:$0xff]   ;;  %s3800_s21 = sshll.u32 %s6403_s13, 4  ;;  %s3449_s18 = sshll.u32 %s6403_s13, 3 }
  0x1c   : > { %521 = vmatprep.subr.bf16.mxu0 %v3883_v5  ;;  %851 = vmatprep.subr.bf16.mxu1 %v3904_v15  ;;  %v3907_v18 = vld [vmem:[%s6367_s4 + $0x24] ss:$8 sps:$4 sm:$0xff]   ;;  %v3897_v19 = vld [vmem:[%s6365_s2 + $0x60] ss:$8 sps:$4 sm:$0xff]   ;;  %v3898_v20 = vld [vmem:[%s6365_s2 + $0x74] ss:$8 sps:$4 sm:$0xff]   ;;  %s4917_s17 = scalar_lea.vmem %s6363_s0, %s3800_s21  ;;  %s5729_s22 = scalar_lea.vmem %s6364_s1, %s3449_s18 }
  0x1d   : > { %v3909_v21 = vld [vmem:[%s6367_s4 + $0x20] ss:$8 sps:$4 sm:$0xff]   ;;  %v3910_v22 = vld [vmem:[%s6367_s4 + $0x34] ss:$8 sps:$4 sm:$0xff]   ;;  %v3900_v23 = vld [vmem:[%s6365_s2 + $0x70] ss:$8 sps:$4 sm:$0xff]  }
  0x1e   : > { %v320_v24 = vld [vmem:[%s4917_s17] sm:$0xff]  ;;  %v322_v25 = vld [vmem:[%s4917_s17 + $0x10] sm:$0xff]  ;;  %s5898_s14 = scalar_lea.vmem [#allocation2], %s3444_s9  ;;  %s3802_s23 = sshll.u32 %s4822_s28, 12 }
  0x1f   : > { %522 = vmatpush1.bf16.msra.mxu0 %v3885_v6  ;;  %852 = vmatpush1.bf16.msra.mxu1 %v3906_v17  ;;  %v3912_v26 = vld [vmem:[%s6367_s4 + $0x30] ss:$8 sps:$4 sm:$0xff]   ;;  %v3913_v27 = vld [vmem:[%s6367_s4 + $0x44] ss:$8 sps:$4 sm:$0xff]   ;;  %v418_v28 = vpack.c.bf16 %v322_v25, %v320_v24  ;;  %v3915_v29 = vld [vmem:[%s6367_s4 + $0x40] ss:$8 sps:$4 sm:$0xff]  }
  0x20   : > { %523 = vmatprep.subr.bf16.mxu0 %v3886_v7  ;;  %853 = vmatprep.subr.bf16.mxu1 %v3907_v18  ;;  %v3916_v30 = vld [vmem:[%s6367_s4 + $0x54] ss:$8 sps:$4 sm:$0xff]   ;;  %v324_v31 = vld [vmem:[%s4917_s17 + $0x20] sm:$0xff]  ;;  %v3918_v33 = vld [vmem:[%s6367_s4 + $0x50] ss:$8 sps:$4 sm:$0xff]   ;;  %v427_v18 = vlaneseq  ;;  %s3337_s29 = sshll.u32 %s5898_s14, 4  ;;  %s6238_s29 = int_to_ptr.vmem [resolvable:$true] %s3337_s29 }
  0x21   : > { %v326_v32 = vld [vmem:[%s4917_s17 + $0x30] sm:$0xff]  ;;  %v3919_v34 = vld [vmem:[%s6367_s4 + $0x64] ss:$8 sps:$4 sm:$0xff]   ;;  %v3921_v35 = vld [vmem:[%s6367_s4 + $0x60] ss:$8 sps:$4 sm:$0xff]   ;;  %s6243_s15 = scalar_lea.sflag [#allocation3], %s289_s8 }
  0x22   : > { %v419_v36 = vpack.c.bf16 %v326_v32, %v324_v31  ;;  %v3922_v37 = vld [vmem:[%s6367_s4 + $0x74] ss:$8 sps:$4 sm:$0xff]   ;;  %v328_v38 = vld [vmem:[%s4917_s17 + $0x40] sm:$0xff]  ;;  %v3924_v40 = vld [vmem:[%s6367_s4 + $0x70] ss:$8 sps:$4 sm:$0xff]   ;;  %s4693_s16 = scalar_lea.vmem %s6238_s29, 4096 }
  0x23   : > { %524 = vmatpush1.bf16.msra.mxu0 %v3888_v8  ;;  %854 = vmatpush1.bf16.msra.mxu1 %v3909_v21  ;;  %v330_v39 = vld [vmem:[%s4917_s17 + $0x50] sm:$0xff]  ;;  %v3925_v41 = vld [vmem:[%s6367_s4 + $0x84] ss:$8 sps:$4 sm:$0xff]   ;;  %v3927_v42 = vld [vmem:[%s6367_s4 + $0x80] ss:$8 sps:$4 sm:$0xff]   ;;  %p4694_p11 = scmp.ne.s32.totalorder %s6238_s29, %s4693_s16  ;;  %s4758_s28 = smov [#allocation2]  }
  0x24   : > { %525 = vmatprep.subr.bf16.mxu0 %v3889_v9  ;;  %855 = vmatprep.subr.bf16.mxu1 %v3910_v22  ;;  %v420_v43 = vpack.c.bf16 %v330_v39, %v328_v38  ;;  %v3928_v44 = vld [vmem:[%s6367_s4 + $0x94] ss:$8 sps:$4 sm:$0xff]   ;;  %v332_v45 = vld [vmem:[%s4917_s17 + $0x60] sm:$0xff]  ;;  %v3930_v47 = vld [vmem:[%s6367_s4 + $0x90] ss:$8 sps:$4 sm:$0xff]   ;;  %s4697_s19 = sshll.u32 %s4758_s28, 4  ;;  %s4698_s19 = int_to_ptr.vmem [resolvable:$false] %s4697_s19 }
  0x25   : > { %v334_v46 = vld [vmem:[%s4917_s17 + $0x70] sm:$0xff]  ;;  %v3931_v48 = vld [vmem:[%s6367_s4 + $0xa4] ss:$8 sps:$4 sm:$0xff]   ;;  %v3933_v49 = vld [vmem:[%s6367_s4 + $0xa0] ss:$8 sps:$4 sm:$0xff]   ;;  %p4695_p12 = pnand %p4694_p11, %p4839_p5  ;;  %s4699_s20 = scalar_lea.vmem %s4698_s19, 8192 }
  0x26   : > { %v421_v50 = vpack.c.bf16 %v334_v46, %v332_v45  ;;  %v336_v51 = vld [vmem:[%s4917_s17 + $0x80] sm:$0xff]  ;;  %v338_v52 = vld [vmem:[%s4917_s17 + $0x90] sm:$0xff]  ;;  %p4700_p0 = scmp.lt.s32.totalorder %s6238_s29, %s4698_s19  ;;  %p4701_p1 = scmp.lt.s32.totalorder %s4699_s20, %s4693_s16 }
  0x27   : > { %526 = vmatpush1.bf16.msra.mxu0 %v3891_v10  ;;  %856 = vmatpush1.bf16.msra.mxu1 %v3912_v26  ;;  %v422_v53 = vpack.c.bf16 %v338_v52, %v336_v51  ;;  %v340_v54 = vld [vmem:[%s4917_s17 + $0xa0] sm:$0xff]  ;;  %v342_v55 = vld [vmem:[%s4917_s17 + $0xb0] sm:$0xff]  ;;  %p4696_p13 = pneg %p4695_p12 }
  0x28   : > { %527 = vmatprep.subr.bf16.mxu0 %v3892_v11  ;;  %857 = vmatprep.subr.bf16.mxu1 %v3913_v27  ;;  %v423_v56 = vpack.c.bf16 %v342_v55, %v340_v54  ;;  %v344_v57 = vld [vmem:[%s4917_s17 + $0xc0] sm:$0xff]  ;;  %v346_v58 = vld [vmem:[%s4917_s17 + $0xd0] sm:$0xff]  ;;  %p4702_p2 = por %p4701_p1, %p4700_p0 }
  0x29   : > { %v424_v59 = vpack.c.bf16 %v346_v58, %v344_v57  ;;  %v348_v60 = vld [vmem:[%s4917_s17 + $0xe0] sm:$0xff]  ;;  %v350_v61 = vld [vmem:[%s4917_s17 + $0xf0] sm:$0xff] }
  0x2a   : > { %v425_v62 = vpack.c.bf16 %v350_v61, %v348_v60  ;;  %v3934_v63 = vld [vmem:[%s6367_s4 + $0xb4] ss:$8 sps:$4 sm:$0xff]   ;;  %v3936_v0 = vld [vmem:[%s6367_s4 + $0xb0] ss:$8 sps:$4 sm:$0xff]   ;;  %v3937_v1 = vld [vmem:[%s6367_s4 + $0xc4] ss:$8 sps:$4 sm:$0xff]   ;;  %p4703_p3 = pnand %p4702_p2, %p4696_p13 }
  0x2b   : > { %528 = vmatpush1.bf16.msra.mxu0 %v3894_v14  ;;  %858 = vmatpush1.bf16.msra.mxu1 %v3915_v29  ;;  %v3939_v3 = vld [vmem:[%s6367_s4 + $0xc0] ss:$8 sps:$4 sm:$0xff]   ;;  %v3940_v4 = vld [vmem:[%s6367_s4 + $0xd4] ss:$8 sps:$4 sm:$0xff]   ;;  %v3942_v5 = vld [vmem:[%s6367_s4 + $0xd0] ss:$8 sps:$4 sm:$0xff]  }
  0x2c   : > { %529 = vmatprep.subr.bf16.mxu0 %v3895_v16  ;;  %859 = vmatprep.subr.bf16.mxu1 %v3916_v30  ;;  %v3943_v6 = vld [vmem:[%s6367_s4 + $0xe4] ss:$8 sps:$4 sm:$0xff]   ;;  %v3945_v7 = vld [vmem:[%s6367_s4 + $0xe0] ss:$8 sps:$4 sm:$0xff]   ;;  %v3946_v8 = vld [vmem:[%s6367_s4 + $0xf4] ss:$8 sps:$4 sm:$0xff]  }
  0x2d   : > { %v3948_v9 = vld [vmem:[%s6367_s4 + $0xf0] ss:$8 sps:$4 sm:$0xff]   ;;  %v3949_v10 = vld [vmem:[%s6365_s2 + $0x80] ss:$8 sps:$4 sm:$0xff]   ;;  %v3951_v11 = vld [vmem:[%s6365_s2 + $0x84] ss:$8 sps:$4 sm:$0xff]  }
  0x2e   : > { %v3954_v12 = vld [vmem:[%s6365_s2 + $0x94] ss:$8 sps:$4 sm:$0xff]   ;;  %v3952_v13 = vld [vmem:[%s6365_s2 + $0x90] ss:$8 sps:$4 sm:$0xff]   ;;  %v3957_v14 = vld [vmem:[%s6365_s2 + $0xa4] ss:$8 sps:$4 sm:$0xff]  }
  0x2f   : > { %530 = vmatpush1.bf16.msra.mxu0 %v3897_v19  ;;  %860 = vmatpush1.bf16.msra.mxu1 %v3918_v33  ;;  %v3955_v15 = vld [vmem:[%s6365_s2 + $0xa0] ss:$8 sps:$4 sm:$0xff]   ;;  %v3960_v16 = vld [vmem:[%s6365_s2 + $0xb4] ss:$8 sps:$4 sm:$0xff]   ;;  %v3958_v17 = vld [vmem:[%s6365_s2 + $0xb0] ss:$8 sps:$4 sm:$0xff]  }
  0x30   : > { %531 = vmatprep.subr.bf16.mxu0 %v3898_v20  ;;  %861 = vmatprep.subr.bf16.mxu1 %v3919_v34  ;;  %v428_v19 = vshrl.u32 %v427_v18, 7  ;;  %v384_v21 = vld [vmem:[%s6366_s3] sm:$0x3] }
  0x32   : > { %v5051_v20 = vsub.s32 0, %v428_v19  ;;  %v5056_v22 = vsub.s32 1, %v428_v19 }
  0x33   : > { %532 = vmatpush1.bf16.msra.mxu0 %v3900_v23  ;;  %862 = vmatpush1.bf16.msra.mxu1 %v3921_v35 }
  0x34   : > { %863 = vmatprep.subr.bf16.mxu1 %v3922_v37  ;;  %1243 = vmatprep.subr.bf16.mxu0 %v3951_v11  ;;  %v5059_v23 = vrot.slane %v384_v21, %v5051_v20  ;;  %v5062_v24 = vrot.slane %v384_v21, %v5056_v22 }
  0x36   : > { %550 = vmatmul.mubr.bf16.vlgmr.msra.gmra.mrb[0].mxu0 %v418_v28 }
  0x37   : > { %559 = vmatprep.mubr.bf16.mxu0 %v6371_v2  ;;  %864 = vmatpush1.bf16.msra.mxu1 %v3924_v40 }
  0x38   : > { %865 = vmatprep.subr.bf16.mxu1 %v3925_v41  ;;  %1244 = vmatpush1.bf16.msra.mxu0 %v3949_v10 }
  0x39   : > { %1245 = vmatprep.subr.bf16.mxu0 %v3954_v12 }
  0x3b   : > { %866 = vmatpush1.bf16.msra.mxu1 %v3927_v42 }
  0x3c   : > { %867 = vmatprep.subr.bf16.mxu1 %v3928_v44  ;;  %1246 = vmatpush1.bf16.msra.mxu0 %v3952_v13 }
  0x3d   : > { %1247 = vmatprep.subr.bf16.mxu0 %v3957_v14 }
  0x3e   : > { %560 = vmatmul.mubr.bf16.gmra.mrb[4].mxu0 %v419_v36 }
  0x3f   : > { %569 = vmatprep.mubr.bf16.mxu0 %v6371_v2  ;;  %868 = vmatpush1.bf16.msra.mxu1 %v3930_v47 }
  0x40   : > { %869 = vmatprep.subr.bf16.mxu1 %v3931_v48  ;;  %1248 = vmatpush1.bf16.msra.mxu0 %v3955_v15 }
  0x41   : > { %1249 = vmatprep.subr.bf16.mxu0 %v3960_v16 }
  0x43   : > { %870 = vmatpush1.bf16.msra.mxu1 %v3933_v49 }
  0x44   : > { %871 = vmatprep.subr.bf16.mxu1 %v3934_v63  ;;  %1250 = vmatpush1.bf16.msra.mxu0 %v3958_v17 }
  0x46   : > { %570 = vmatmul.mubr.bf16.gmra.mrb[8].mxu0 %v420_v43 }
  0x47   : > { %579 = vmatprep.mubr.bf16.mxu0 %v6371_v2  ;;  %872 = vmatpush1.bf16.msra.mxu1 %v3936_v0 }
  0x48   : > { %873 = vmatprep.subr.bf16.mxu1 %v3937_v1 }
  0x4b   : > { %874 = vmatpush1.bf16.msra.mxu1 %v3939_v3 }
  0x4c   : > { %875 = vmatprep.subr.bf16.mxu1 %v3940_v4 }
  0x4e   : > { %580 = vmatmul.mubr.bf16.gmra.mrb[12].mxu0 %v421_v50 }
  0x4f   : > { %589 = vmatprep.mubr.bf16.mxu0 %v6371_v2  ;;  %876 = vmatpush1.bf16.msra.mxu1 %v3942_v5 }
  0x50   : > { %877 = vmatprep.subr.bf16.mxu1 %v3943_v6 }
  0x53   : > { %878 = vmatpush1.bf16.msra.mxu1 %v3945_v7 }
  0x54   : > { %879 = vmatprep.subr.bf16.mxu1 %v3946_v8 }
  0x56   : > { %590 = vmatmul.mubr.bf16.gmra.mrb[16].mxu0 %v422_v53 }
  0x57   : > { %599 = vmatprep.mubr.bf16.mxu0 %v6371_v2  ;;  %880 = vmatpush1.bf16.msra.mxu1 %v3948_v9 }
  0x5e   : > { %600 = vmatmul.mubr.bf16.gmra.mrb[20].mxu0 %v423_v56 }
  0x5f   : > { %609 = vmatprep.mubr.bf16.mxu0 %v6371_v2 }
  0x66   : > { %610 = vmatmul.mubr.bf16.gmra.mrb[24].mxu0 %v424_v59 }
  0x67   : > { %619 = vmatprep.mubr.bf16.mxu0 %v6371_v2 }
  0x6e   : > { %620 = vmatmul.mubr.bf16.gmra.mrb[28].mxu0 %v425_v62 }
  0x6f   : > { %1275 = vmatprep.mubr.bf16.mxu0 %v6371_v2 }
 0x109   : > { %v551_v25 = vpop.f32.mrb[0].mxu0 }
 0x10a   : > { %v552_v26 = vadd.f32 %v551_v25, %v5059_v23  ;;  %v553_v27 = vpop.f32.mrb[1].mxu0 }
 0x10b   : > { %v554_v28 = vadd.f32 %v553_v27, %v5062_v24  ;;  %v555_v29 = vpop.f32.mrb[2].mxu0 }
 0x10c   : > { %4165 = vtanh.f32 %v552_v26  ;;  %v556_v30 = vadd.f32 %v555_v29, %v5059_v23  ;;  %v557_v31 = vpop.f32.mrb[3].mxu0 }
 0x10d   : > { %4167 = vtanh.f32 %v554_v28  ;;  %v558_v32 = vadd.f32 %v557_v31, %v5062_v24 }
 0x10e   : > { %4169 = vtanh.f32 %v556_v30 }
 0x10f   : > { %4171 = vtanh.f32 %v558_v32 }
 0x111   : > { %v561_v33 = vpop.f32.mrb[4].mxu0 }
 0x112   : > { %v562_v34 = vadd.f32 %v561_v33, %v5059_v23  ;;  %v563_v35 = vpop.f32.mrb[5].mxu0 }
 0x113   : > { %v564_v36 = vadd.f32 %v563_v35, %v5062_v24  ;;  %v565_v37 = vpop.f32.mrb[6].mxu0 }
 0x114   : > { %4173 = vtanh.f32 %v562_v34  ;;  %v566_v38 = vadd.f32 %v565_v37, %v5059_v23  ;;  %v567_v39 = vpop.f32.mrb[7].mxu0 }
 0x115   : > { %4175 = vtanh.f32 %v564_v36  ;;  %v568_v40 = vadd.f32 %v567_v39, %v5062_v24 }
 0x116   : > { %v4166_v41 = vpop.eup %4165  ;;  %4177 = vtanh.f32 %v566_v38 }
 0x117   : > { %v4168_v42 = vpop.eup %4167  ;;  %4179 = vtanh.f32 %v568_v40 }
 0x118   : > { %v4170_v43 = vpop.eup %4169 }
 0x119   : > { %v4172_v44 = vpop.eup %4171  ;;  %v571_v45 = vpop.f32.mrb[8].mxu0  ;;  %v662_v46 = vpack.c.bf16 %v4170_v43, %v4166_v41 }
 0x11a   : > { %v572_v47 = vadd.f32 %v571_v45, %v5059_v23  ;;  %v573_v48 = vpop.f32.mrb[9].mxu0  ;;  %v663_v49 = vpack.c.bf16 %v4172_v44, %v4168_v42 }
 0x11b   : > { %v574_v50 = vadd.f32 %v573_v48, %v5062_v24  ;;  %v575_v51 = vpop.f32.mrb[10].mxu0 }
 0x11c   : > { %4181 = vtanh.f32 %v572_v47  ;;  %v576_v52 = vadd.f32 %v575_v51, %v5059_v23  ;;  %v577_v53 = vpop.f32.mrb[11].mxu0  ;;  %881 = vmatprep.mubr.bf16.mxu1 %v663_v49 }
 0x11d   : > { %4183 = vtanh.f32 %v574_v50  ;;  %v578_v54 = vadd.f32 %v577_v53, %v5062_v24  ;;  %882 = vmatmul.mubr.bf16.vlgmr.msra.gmra.mrb[0].mxu1 %v662_v46 }
 0x11e   : > { %v4174_v55 = vpop.eup %4173  ;;  %4185 = vtanh.f32 %v576_v52 }
 0x11f   : > { %v4176_v56 = vpop.eup %4175  ;;  %4187 = vtanh.f32 %v578_v54 }
 0x120   : > { %v4178_v57 = vpop.eup %4177 }
 0x121   : > { %v4180_v58 = vpop.eup %4179  ;;  %v581_v59 = vpop.f32.mrb[12].mxu0  ;;  %v664_v60 = vpack.c.bf16 %v4178_v57, %v4174_v55 }
 0x122   : > { %v582_v61 = vadd.f32 %v581_v59, %v5059_v23  ;;  %v583_v62 = vpop.f32.mrb[13].mxu0  ;;  %v665_v63 = vpack.c.bf16 %v4180_v58, %v4176_v56 }
 0x123   : > { %v584_v0 = vadd.f32 %v583_v62, %v5062_v24  ;;  %v585_v1 = vpop.f32.mrb[14].mxu0 }
 0x124   : > { %4189 = vtanh.f32 %v582_v61  ;;  %v586_v3 = vadd.f32 %v585_v1, %v5059_v23  ;;  %v587_v4 = vpop.f32.mrb[15].mxu0  ;;  %891 = vmatprep.mubr.bf16.mxu1 %v665_v63 }
 0x125   : > { %4191 = vtanh.f32 %v584_v0  ;;  %v588_v5 = vadd.f32 %v587_v4, %v5062_v24  ;;  %892 = vmatmul.mubr.bf16.gmra.mrb[4].mxu1 %v664_v60 }
 0x126   : > { %v4182_v6 = vpop.eup %4181  ;;  %4193 = vtanh.f32 %v586_v3 }
 0x127   : > { %v4184_v7 = vpop.eup %4183  ;;  %4195 = vtanh.f32 %v588_v5 }
 0x128   : > { %v4186_v8 = vpop.eup %4185 }
 0x129   : > { %v4188_v9 = vpop.eup %4187  ;;  %v591_v10 = vpop.f32.mrb[16].mxu0  ;;  %v666_v11 = vpack.c.bf16 %v4186_v8, %v4182_v6 }
 0x12a   : > { %v592_v12 = vadd.f32 %v591_v10, %v5059_v23  ;;  %v593_v13 = vpop.f32.mrb[17].mxu0  ;;  %v667_v14 = vpack.c.bf16 %v4188_v9, %v4184_v7 }
 0x12b   : > { %v594_v15 = vadd.f32 %v593_v13, %v5062_v24  ;;  %v595_v16 = vpop.f32.mrb[18].mxu0 }
 0x12c   : > { %4197 = vtanh.f32 %v592_v12  ;;  %v596_v17 = vadd.f32 %v595_v16, %v5059_v23  ;;  %v597_v18 = vpop.f32.mrb[19].mxu0  ;;  %901 = vmatprep.mubr.bf16.mxu1 %v667_v14  ;;  %v3961_v14 = vld [vmem:[%s6365_s2 + $0xc0] ss:$8 sps:$4 sm:$0xff]   ;;  %v3964_v16 = vld [vmem:[%s6365_s2 + $0xd0] ss:$8 sps:$4 sm:$0xff]  }
 0x12d   : > { %4199 = vtanh.f32 %v594_v15  ;;  %v598_v19 = vadd.f32 %v597_v18, %v5062_v24  ;;  %902 = vmatmul.mubr.bf16.gmra.mrb[8].mxu1 %v666_v11  ;;  %v3966_v15 = vld [vmem:[%s6365_s2 + $0xd4] ss:$8 sps:$4 sm:$0xff]   ;;  %v3967_v18 = vld [vmem:[%s6365_s2 + $0xe0] ss:$8 sps:$4 sm:$0xff]  }
 0x12e   : > { %v4190_v21 = vpop.eup %4189  ;;  %4201 = vtanh.f32 %v596_v17  ;;  %v3969_v17 = vld [vmem:[%s6365_s2 + $0xe4] ss:$8 sps:$4 sm:$0xff]  }
 0x12f   : > { %v4192_v25 = vpop.eup %4191  ;;  %4203 = vtanh.f32 %v598_v19  ;;  %v3972_v19 = vld [vmem:[%s6365_s2 + $0xf4] ss:$8 sps:$4 sm:$0xff]  }
 0x130   : > { %v4194_v26 = vpop.eup %4193 }
 0x131   : > { %v4196_v27 = vpop.eup %4195  ;;  %v601_v28 = vpop.f32.mrb[20].mxu0  ;;  %v668_v29 = vpack.c.bf16 %v4194_v26, %v4190_v21  ;;  %v3970_v21 = vld [vmem:[%s6365_s2 + $0xf0] ss:$8 sps:$4 sm:$0xff]  }
 0x132   : > { %v602_v30 = vadd.f32 %v601_v28, %v5059_v23  ;;  %v603_v31 = vpop.f32.mrb[21].mxu0  ;;  %v669_v32 = vpack.c.bf16 %v4196_v27, %v4192_v25  ;;  %v417_v25 = vld [vmem:[%s6368_s5] sm:$0x3] }
 0x133   : > { %v604_v33 = vadd.f32 %v603_v31, %v5062_v24  ;;  %v605_v34 = vpop.f32.mrb[22].mxu0  ;;  %v5124_v26 = vrot.slane %v417_v25, %v5051_v20 }
 0x134   : > { %4205 = vtanh.f32 %v602_v30  ;;  %v606_v35 = vadd.f32 %v605_v34, %v5059_v23  ;;  %v607_v36 = vpop.f32.mrb[23].mxu0  ;;  %911 = vmatprep.mubr.bf16.mxu1 %v669_v32 }
 0x135   : > { %4207 = vtanh.f32 %v604_v33  ;;  %v608_v37 = vadd.f32 %v607_v36, %v5062_v24  ;;  %912 = vmatmul.mubr.bf16.gmra.mrb[12].mxu1 %v668_v29 }
 0x136   : > { %v4198_v38 = vpop.eup %4197  ;;  %4209 = vtanh.f32 %v606_v35 }
 0x137   : > { %v4200_v39 = vpop.eup %4199  ;;  %4211 = vtanh.f32 %v608_v37 }
 0x138   : > { %v4202_v40 = vpop.eup %4201 }
 0x139   : > { %v4204_v41 = vpop.eup %4203  ;;  %v611_v42 = vpop.f32.mrb[24].mxu0  ;;  %v670_v43 = vpack.c.bf16 %v4202_v40, %v4198_v38 }
 0x13a   : > { %v612_v44 = vadd.f32 %v611_v42, %v5059_v23  ;;  %v613_v45 = vpop.f32.mrb[25].mxu0  ;;  %v671_v46 = vpack.c.bf16 %v4204_v41, %v4200_v39 }
 0x13b   : > { %v614_v47 = vadd.f32 %v613_v45, %v5062_v24  ;;  %v615_v48 = vpop.f32.mrb[26].mxu0 }
 0x13c   : > { %4213 = vtanh.f32 %v612_v44  ;;  %v616_v49 = vadd.f32 %v615_v48, %v5059_v23  ;;  %v617_v50 = vpop.f32.mrb[27].mxu0  ;;  %921 = vmatprep.mubr.bf16.mxu1 %v671_v46 }
 0x13d   : > { %4215 = vtanh.f32 %v614_v47  ;;  %v618_v51 = vadd.f32 %v617_v50, %v5062_v24  ;;  %922 = vmatmul.mubr.bf16.gmra.mrb[16].mxu1 %v670_v43 }
 0x13e   : > { %v4206_v52 = vpop.eup %4205  ;;  %4217 = vtanh.f32 %v616_v49 }
 0x13f   : > { %v4208_v53 = vpop.eup %4207  ;;  %4219 = vtanh.f32 %v618_v51 }
 0x140   : > { %v4210_v54 = vpop.eup %4209 }
 0x141   : > { %v4212_v55 = vpop.eup %4211  ;;  %v621_v56 = vpop.f32.mrb[28].mxu0  ;;  %v672_v57 = vpack.c.bf16 %v4210_v54, %v4206_v52  ;;  %v5141_v52 = vrot.slane %v417_v25, %v5056_v22 }
 0x142   : > { %v622_v58 = vadd.f32 %v621_v56, %v5059_v23  ;;  %v623_v59 = vpop.f32.mrb[29].mxu0  ;;  %v673_v60 = vpack.c.bf16 %v4212_v55, %v4208_v53  ;;  %v321_v53 = vld [vmem:[%s4917_s17 + $0x8] sm:$0xff] }
 0x143   : > { %v624_v61 = vadd.f32 %v623_v59, %v5062_v24  ;;  %v625_v62 = vpop.f32.mrb[30].mxu0  ;;  %v323_v59 = vld [vmem:[%s4917_s17 + $0x18] sm:$0xff] }
 0x144   : > { %4221 = vtanh.f32 %v622_v58  ;;  %v626_v63 = vadd.f32 %v625_v62, %v5059_v23  ;;  %v627_v0 = vpop.f32.mrb[31].mxu0  ;;  %931 = vmatprep.mubr.bf16.mxu1 %v673_v60 }
 0x145   : > { %4223 = vtanh.f32 %v624_v61  ;;  %v628_v1 = vadd.f32 %v627_v0, %v5062_v24  ;;  %932 = vmatmul.mubr.bf16.gmra.mrb[20].mxu1 %v672_v57  ;;  %v3963_v24 = vld [vmem:[%s6365_s2 + $0xc4] ss:$8 sps:$4 sm:$0xff]  }
 0x146   : > { %v4214_v3 = vpop.eup %4213  ;;  %4225 = vtanh.f32 %v626_v63  ;;  %1251 = vmatprep.subr.bf16.mxu0 %v3963_v24 }
 0x147   : > { %v4216_v4 = vpop.eup %4215  ;;  %4227 = vtanh.f32 %v628_v1  ;;  %1252 = vmatpush1.bf16.msra.mxu0 %v3961_v14 }
 0x148   : > { %v4218_v5 = vpop.eup %4217  ;;  %1253 = vmatprep.subr.bf16.mxu0 %v3966_v15  ;;  %v327_v15 = vld [vmem:[%s4917_s17 + $0x38] sm:$0xff] }
 0x149   : > { %v4220_v6 = vpop.eup %4219  ;;  %v674_v7 = vpack.c.bf16 %v4218_v5, %v4214_v3 }
 0x14a   : > { %v675_v8 = vpack.c.bf16 %v4220_v6, %v4216_v4 }
 0x14b   : > { %1254 = vmatpush1.bf16.msra.mxu0 %v3964_v16 }
 0x14c   : > { %941 = vmatprep.mubr.bf16.mxu1 %v675_v8  ;;  %1255 = vmatprep.subr.bf16.mxu0 %v3969_v17 }
 0x14d   : > { %942 = vmatmul.mubr.bf16.gmra.mrb[24].mxu1 %v674_v7 }
 0x14e   : > { %v4222_v9 = vpop.eup %4221 }
 0x14f   : > { %v4224_v10 = vpop.eup %4223  ;;  %1256 = vmatpush1.bf16.msra.mxu0 %v3967_v18 }
 0x150   : > { %v4226_v11 = vpop.eup %4225  ;;  %1257 = vmatprep.subr.bf16.mxu0 %v3972_v19 }
 0x151   : > { %v4228_v23 = vpop.eup %4227  ;;  %v676_v12 = vpack.c.bf16 %v4226_v11, %v4222_v9 }
 0x152   : > { %v677_v13 = vpack.c.bf16 %v4228_v23, %v4224_v10  ;;  %v325_v10 = vld [vmem:[%s4917_s17 + $0x28] sm:$0xff] }
 0x153   : > { %1258 = vmatpush1.bf16.msra.mxu0 %v3970_v21 }
 0x154   : > { %951 = vmatprep.mubr.bf16.mxu1 %v677_v13 }
 0x155   : > { %952 = vmatmul.mubr.bf16.gmra.mrb[28].mxu1 %v676_v12 }
 0x1f0   : > { %v883_v27 = vpop.f32.mrb[0].mxu1 }
 0x1f1   : > { %v884_v28 = vadd.f32 %v883_v27, %v5124_v26  ;;  %v885_v29 = vpop.f32.mrb[1].mxu1 }
 0x1f2   : > { %v887_v30 = vpop.f32.mrb[2].mxu1  ;;  %v886_v61 = vadd.f32 %v885_v29, %v5141_v52 }
 0x1f3   : > { %4229 = vtanh.f32 %v884_v28  ;;  %v888_v31 = vadd.f32 %v887_v30, %v5124_v26  ;;  %v889_v32 = vpop.f32.mrb[3].mxu1 }
 0x1f4   : > { %v890_v5 = vadd.f32 %v889_v32, %v5141_v52 }
 0x1f5   : > { %4231 = vtanh.f32 %v888_v31 }
 0x1f8   : > { %v893_v33 = vpop.f32.mrb[4].mxu1 }
 0x1f9   : > { %v894_v34 = vadd.f32 %v893_v33, %v5124_v26  ;;  %v5129_v35 = vpop.f32.mrb[5].mxu1 }
 0x1fa   : > { %v897_v36 = vpop.f32.mrb[6].mxu1  ;;  %v896_v17 = vadd.f32 %v5129_v35, %v5141_v52 }
 0x1fb   : > { %4233 = vtanh.f32 %v894_v34  ;;  %v898_v37 = vadd.f32 %v897_v36, %v5124_v26  ;;  %v5132_v38 = vpop.f32.mrb[7].mxu1  ;;  %v329_v34 = vld [vmem:[%s4917_s17 + $0x48] sm:$0xff] }
 0x1fc   : > { %v900_v29 = vadd.f32 %v5132_v38, %v5141_v52 }
 0x1fd   : > { %v4230_v39 = vpop.eup %4229  ;;  %4235 = vtanh.f32 %v898_v37 }
 0x1fe   : > { %v978_v40 = vmul.f32 1.442695, %v4230_v39  ;;  %1042 = vadd.xlane.f32.xlu0 %v4230_v39 }
 0x1ff   : > { %v4232_v41 = vpop.eup %4231 }
 0x200   : > { %4237 = vpow2.f32 %v978_v40  ;;  %v980_v42 = vmul.f32 1.442695, %v4232_v41  ;;  %v903_v43 = vpop.f32.mrb[8].mxu1 }
 0x201   : > { %v904_v44 = vadd.f32 %v903_v43, %v5124_v26  ;;  %v5135_v45 = vpop.f32.mrb[9].mxu1 }
 0x202   : > { %4239 = vpow2.f32 %v980_v42  ;;  %v907_v46 = vpop.f32.mrb[10].mxu1  ;;  %1044 = vadd.xlane.f32.xlu0 %v4232_v41  ;;  %v331_v41 = vld [vmem:[%s4917_s17 + $0x58] sm:$0xff]  ;;  %v906_v43 = vadd.f32 %v5135_v45, %v5141_v52 }
 0x203   : > { %4241 = vtanh.f32 %v904_v44  ;;  %v908_v47 = vadd.f32 %v907_v46, %v5124_v26  ;;  %v5138_v48 = vpop.f32.mrb[11].mxu1 }
 0x205   : > { %v4234_v49 = vpop.eup %4233  ;;  %4243 = vtanh.f32 %v908_v47 }
 0x206   : > { %v982_v50 = vmul.f32 1.442695, %v4234_v49  ;;  %1046 = vadd.xlane.f32.xlu1 %v4234_v49 }
 0x207   : > { %v4236_v51 = vpop.eup %4235 }
 0x208   : > { %4245 = vpow2.f32 %v982_v50  ;;  %v984_v54 = vmul.f32 1.442695, %v4236_v51  ;;  %v913_v55 = vpop.f32.mrb[12].mxu1 }
 0x209   : > { %v914_v56 = vadd.f32 %v913_v55, %v5124_v26  ;;  %v5145_v57 = vpop.f32.mrb[13].mxu1 }
 0x20a   : > { %v4238_v58 = vpop.eup %4237  ;;  %4247 = vpow2.f32 %v984_v54  ;;  %v917_v60 = vpop.f32.mrb[14].mxu1  ;;  %1048 = vadd.xlane.f32.xlu1 %v4236_v51 }
 0x20b   : > { %v1010_v62 = vmul.f32 %v4238_v58, %v321_v53  ;;  %4249 = vtanh.f32 %v914_v56  ;;  %v918_v63 = vadd.f32 %v917_v60, %v5124_v26  ;;  %v5150_v0 = vpop.f32.mrb[15].mxu1  ;;  %v910_v53 = vadd.f32 %v5138_v48, %v5141_v52  ;;  %v333_v58 = vld [vmem:[%s4917_s17 + $0x68] sm:$0xff] }
 0x20c   : > { %v4240_v1 = vpop.eup %4239 }
 0x20d   : > { %v4242_v3 = vpop.eup %4241  ;;  %v5152_v4 = vadd.f32 %v1010_v62, %v886_v61  ;;  %v1011_v6 = vmul.f32 %v4240_v1, %v323_v59  ;;  %4251 = vtanh.f32 %v918_v63  ;;  %v335_v1 = vld [vmem:[%s4917_s17 + $0x78] sm:$0xff] }
 0x20e   : > { %v986_v7 = vmul.f32 1.442695, %v4242_v3  ;;  %1050 = vadd.xlane.f32.xlu0 %v4242_v3 }
 0x20f   : > { %v4244_v8 = vpop.eup %4243  ;;  %v5155_v9 = vadd.f32 %v1011_v6, %v890_v5  ;;  %v916_v5 = vadd.f32 %v5145_v57, %v5141_v52 }
 0x210   : > { %4253 = vpow2.f32 %v986_v7  ;;  %v988_v11 = vmul.f32 1.442695, %v4244_v8  ;;  %v923_v23 = vpop.f32.mrb[16].mxu1  ;;  %1052 = vadd.xlane.f32.xlu1 %v4244_v8 }
 0x211   : > { %v1144_v12 = vpack.c.bf16 %v5155_v9, %v5152_v4  ;;  %v924_v13 = vadd.f32 %v923_v23, %v5124_v26  ;;  %v5161_v24 = vpop.f32.mrb[17].mxu1 }
 0x212   : > { %v4246_v14 = vpop.eup %4245  ;;  %4255 = vpow2.f32 %v988_v11  ;;  %v927_v16 = vpop.f32.mrb[18].mxu1 }
 0x213   : > { %v1012_v18 = vmul.f32 %v4246_v14, %v325_v10  ;;  %4257 = vtanh.f32 %v924_v13  ;;  %v928_v19 = vadd.f32 %v927_v16, %v5124_v26  ;;  %v5167_v21 = vpop.f32.mrb[19].mxu1  ;;  %1276 = vmatmul.mubr.bf16.vlgmr.msra.gmra.mrb[32].mxu0 %v1144_v12  ;;  %v920_v12 = vadd.f32 %v5150_v0, %v5141_v52  ;;  %v337_v16 = vld [vmem:[%s4917_s17 + $0x88] sm:$0xff] }
 0x214   : > { %v4248_v25 = vpop.eup %4247  ;;  %1285 = vmatprep.mubr.bf16.mxu0 %v6371_v2 }
 0x215   : > { %v4250_v27 = vpop.eup %4249  ;;  %v5170_v28 = vadd.f32 %v1012_v18, %v896_v17  ;;  %v1013_v30 = vmul.f32 %v4248_v25, %v327_v15  ;;  %4259 = vtanh.f32 %v928_v19 }
 0x216   : > { %v990_v31 = vmul.f32 1.442695, %v4250_v27  ;;  %1054 = vadd.xlane.f32.xlu0 %v4250_v27 }
 0x217   : > { %v4252_v32 = vpop.eup %4251  ;;  %v5174_v33 = vadd.f32 %v1013_v30, %v900_v29  ;;  %v339_v29 = vld [vmem:[%s4917_s17 + $0x98] sm:$0xff] }
 0x218   : > { %4261 = vpow2.f32 %v990_v31  ;;  %v992_v35 = vmul.f32 1.442695, %v4252_v32  ;;  %v933_v36 = vpop.f32.mrb[20].mxu1  ;;  %1056 = vadd.xlane.f32.xlu1 %v4252_v32  ;;  %v926_v31 = vadd.f32 %v5161_v24, %v5141_v52 }
 0x219   : > { %v934_v37 = vadd.f32 %v933_v36, %v5124_v26  ;;  %v5178_v39 = vpop.f32.mrb[21].mxu1  ;;  %v1145_v38 = vpack.c.bf16 %v5174_v33, %v5170_v28 }
 0x21a   : > { %v4254_v40 = vpop.eup %4253  ;;  %4263 = vpow2.f32 %v992_v35  ;;  %v937_v42 = vpop.f32.mrb[22].mxu1 }
 0x21b   : > { %v1014_v44 = vmul.f32 %v4254_v40, %v329_v34  ;;  %4265 = vtanh.f32 %v934_v37  ;;  %v938_v46 = vadd.f32 %v937_v42, %v5124_v26  ;;  %v5186_v47 = vpop.f32.mrb[23].mxu1  ;;  %1286 = vmatmul.mubr.bf16.gmra.mrb[36].mxu0 %v1145_v38  ;;  %v930_v40 = vadd.f32 %v5167_v21, %v5141_v52 }
 0x21c   : > { %v4256_v49 = vpop.eup %4255  ;;  %1295 = vmatprep.mubr.bf16.mxu0 %v6371_v2  ;;  %v936_v21 = vadd.f32 %v5178_v39, %v5141_v52  ;;  %v3975_v39 = vld [vmem:[%s6367_s4 + $0x104] ss:$8 sps:$4 sm:$0xff]  }
 0x21d   : > { %v4258_v50 = vpop.eup %4257  ;;  %v5189_v51 = vadd.f32 %v1014_v44, %v906_v43  ;;  %v1015_v54 = vmul.f32 %v4256_v49, %v331_v41  ;;  %4267 = vtanh.f32 %v938_v46  ;;  %1575 = vmatprep.subr.bf16.mxu1 %v3975_v39  ;;  %v4009_v39 = vld [vmem:[%s6367_s4 + $0x1c0] ss:$8 sps:$4 sm:$0xff]  }
 0x21e   : > { %v994_v45 = vmul.f32 1.442695, %v4258_v50  ;;  %1058 = vadd.xlane.f32.xlu0 %v4258_v50  ;;  %v343_v50 = vld [vmem:[%s4917_s17 + $0xb8] sm:$0xff] }
 0x21f   : > { %v4260_v55 = vpop.eup %4259  ;;  %v5193_v56 = vadd.f32 %v1015_v54, %v910_v53 }
 0x220   : > { %4269 = vpow2.f32 %v994_v45  ;;  %v996_v59 = vmul.f32 1.442695, %v4260_v55  ;;  %v943_v60 = vpop.f32.mrb[24].mxu1  ;;  %1060 = vadd.xlane.f32.xlu1 %v4260_v55 }
 0x221   : > { %v944_v61 = vadd.f32 %v943_v60, %v5124_v26  ;;  %v5197_v62 = vpop.f32.mrb[25].mxu1  ;;  %v1146_v48 = vpack.c.bf16 %v5193_v56, %v5189_v51 }
 0x222   : > { %v4262_v63 = vpop.eup %4261  ;;  %4271 = vpow2.f32 %v996_v59  ;;  %v947_v3 = vpop.f32.mrb[26].mxu1 }
 0x223   : > { %v1016_v6 = vmul.f32 %v4262_v63, %v333_v58  ;;  %4273 = vtanh.f32 %v944_v61  ;;  %v948_v7 = vadd.f32 %v947_v3, %v5124_v26  ;;  %v5205_v8 = vpop.f32.mrb[27].mxu1  ;;  %1296 = vmatmul.mubr.bf16.gmra.mrb[40].mxu0 %v1146_v48  ;;  %v940_v58 = vadd.f32 %v5186_v47, %v5141_v52  ;;  %v3973_v61 = vld [vmem:[%s6367_s4 + $0x100] ss:$8 sps:$4 sm:$0xff]  }
 0x224   : > { %v4264_v10 = vpop.eup %4263  ;;  %1305 = vmatprep.mubr.bf16.mxu0 %v6371_v2  ;;  %1576 = vmatpush1.bf16.msra.mxu1 %v3973_v61  ;;  %v4011_v61 = vld [vmem:[%s6367_s4 + $0x1c4] ss:$8 sps:$4 sm:$0xff]  }
 0x225   : > { %v4266_v11 = vpop.eup %4265  ;;  %v5208_v23 = vadd.f32 %v1016_v6, %v916_v5  ;;  %v1017_v13 = vmul.f32 %v4264_v10, %v335_v1  ;;  %4275 = vtanh.f32 %v948_v7  ;;  %v345_v1 = vld [vmem:[%s4917_s17 + $0xc8] sm:$0xff]  ;;  %v347_v6 = vld [vmem:[%s4917_s17 + $0xd8] sm:$0xff]  ;;  %v946_v7 = vadd.f32 %v5197_v62, %v5141_v52 }
 0x226   : > { %v998_v57 = vmul.f32 1.442695, %v4266_v11  ;;  %1062 = vadd.xlane.f32.xlu0 %v4266_v11 }
 0x227   : > { %v4268_v14 = vpop.eup %4267  ;;  %v5212_v15 = vadd.f32 %v1017_v13, %v920_v12  ;;  %v3976_v12 = vld [vmem:[%s6367_s4 + $0x110] ss:$8 sps:$4 sm:$0xff]   ;;  %v3978_v13 = vld [vmem:[%s6367_s4 + $0x114] ss:$8 sps:$4 sm:$0xff]  }
 0x228   : > { %4277 = vpow2.f32 %v998_v57  ;;  %v1000_v17 = vmul.f32 1.442695, %v4268_v14  ;;  %v953_v18 = vpop.f32.mrb[28].mxu1  ;;  %1064 = vadd.xlane.f32.xlu1 %v4268_v14  ;;  %v950_v14 = vadd.f32 %v5205_v8, %v5141_v52  ;;  %1577 = vmatprep.subr.bf16.mxu1 %v3978_v13  ;;  %v351_v8 = vld [vmem:[%s4917_s17 + $0xf8] sm:$0xff]  ;;  %v4029_v13 = vld [vmem:[%s6365_s2 + $0x124] ss:$8 sps:$4 sm:$0xff]  }
 0x229   : > { %v954_v19 = vadd.f32 %v953_v18, %v5124_v26  ;;  %v5216_v25 = vpop.f32.mrb[29].mxu1  ;;  %v1147_v0 = vpack.c.bf16 %v5212_v15, %v5208_v23  ;;  %1578 = vmatpush1.bf16.msra.mxu1 %v3976_v12  ;;  %v3979_v18 = vld [vmem:[%s6367_s4 + $0x120] ss:$8 sps:$4 sm:$0xff]   ;;  %v4024_v12 = vld [vmem:[%s6365_s2 + $0x110] ss:$8 sps:$4 sm:$0xff]  }
 0x22a   : > { %v4270_v27 = vpop.eup %4269  ;;  %4279 = vpow2.f32 %v1000_v17  ;;  %v957_v30 = vpop.f32.mrb[30].mxu1 }
 0x22b   : > { %v1018_v32 = vmul.f32 %v4270_v27, %v337_v16  ;;  %4281 = vtanh.f32 %v954_v19  ;;  %v958_v34 = vadd.f32 %v957_v30, %v5124_v26  ;;  %v5224_v35 = vpop.f32.mrb[31].mxu1  ;;  %1306 = vmatmul.mubr.bf16.gmra.mrb[44].mxu0 %v1147_v0  ;;  %v341_v26 = vld [vmem:[%s4917_s17 + $0xa8] sm:$0xff] }
 0x22c   : > { %v4272_v36 = vpop.eup %4271  ;;  %1315 = vmatprep.mubr.bf16.mxu0 %v6371_v2  ;;  %v3981_v16 = vld [vmem:[%s6367_s4 + $0x124] ss:$8 sps:$4 sm:$0xff]  }
 0x22d   : > { %v4274_v37 = vpop.eup %4273  ;;  %v5227_v38 = vadd.f32 %v1018_v32, %v926_v31  ;;  %v1019_v41 = vmul.f32 %v4272_v36, %v339_v29  ;;  %4283 = vtanh.f32 %v958_v34  ;;  %v349_v19 = vld [vmem:[%s4917_s17 + $0xe8] sm:$0xff]  ;;  %1579 = vmatprep.subr.bf16.mxu1 %v3981_v16  ;;  %v956_v29 = vadd.f32 %v5216_v25, %v5141_v52  ;;  %v3982_v32 = vld [vmem:[%s6367_s4 + $0x130] ss:$8 sps:$4 sm:$0xff]   ;;  %v3984_v34 = vld [vmem:[%s6367_s4 + $0x134] ss:$8 sps:$4 sm:$0xff]  }
 0x22e   : > { %v1002_v24 = vmul.f32 1.442695, %v4274_v37  ;;  %1066 = vadd.xlane.f32.xlu0 %v4274_v37  ;;  %1580 = vmatpush1.bf16.msra.mxu1 %v3979_v18  ;;  %v960_v37 = vadd.f32 %v5224_v35, %v5141_v52  ;;  %v3988_v35 = vld [vmem:[%s6367_s4 + $0x150] ss:$8 sps:$4 sm:$0xff]   ;;  %v3516_v18 = vld [vmem:[%s6366_s3 + $0x2] sm:$0x3] }
 0x22f   : > { %v4276_v42 = vpop.eup %4275  ;;  %v5231_v43 = vadd.f32 %v1019_v41, %v930_v40  ;;  %1581 = vmatprep.subr.bf16.mxu1 %v3984_v34  ;;  %v3987_v40 = vld [vmem:[%s6367_s4 + $0x144] ss:$8 sps:$4 sm:$0xff]   ;;  %v4030_v16 = vld [vmem:[%s6365_s2 + $0x130] ss:$8 sps:$4 sm:$0xff]  }
 0x230   : > { %4285 = vpow2.f32 %v1002_v24  ;;  %v1004_v44 = vmul.f32 1.442695, %v4276_v42  ;;  %1068 = vadd.xlane.f32.xlu1 %v4276_v42  ;;  %v3985_v24 = vld [vmem:[%s6367_s4 + $0x140] ss:$8 sps:$4 sm:$0xff]   ;;  %v3990_v42 = vld [vmem:[%s6367_s4 + $0x154] ss:$8 sps:$4 sm:$0xff]  }
 0x231   : > { %v1148_v46 = vpack.c.bf16 %v5231_v43, %v5227_v38 }
 0x232   : > { %v4278_v49 = vpop.eup %4277  ;;  %4287 = vpow2.f32 %v1004_v44  ;;  %1582 = vmatpush1.bf16.msra.mxu1 %v3982_v32  ;;  %v3991_v44 = vld [vmem:[%s6367_s4 + $0x160] ss:$8 sps:$4 sm:$0xff]  }
 0x233   : > { %v1020_v53 = vmul.f32 %v4278_v49, %v341_v26  ;;  %1316 = vmatmul.mubr.bf16.gmra.mrb[48].mxu0 %v1148_v46  ;;  %1583 = vmatprep.subr.bf16.mxu1 %v3987_v40  ;;  %v3993_v26 = vld [vmem:[%s6367_s4 + $0x164] ss:$8 sps:$4 sm:$0xff]   ;;  %v3996_v46 = vld [vmem:[%s6367_s4 + $0x174] ss:$8 sps:$4 sm:$0xff]   ;;  %v3994_v49 = vld [vmem:[%s6367_s4 + $0x170] ss:$8 sps:$4 sm:$0xff]  }
 0x234   : > { %v4280_v54 = vpop.eup %4279  ;;  %1325 = vmatprep.mubr.bf16.mxu0 %v6371_v2 }
 0x235   : > { %v4282_v45 = vpop.eup %4281  ;;  %v5240_v55 = vadd.f32 %v1020_v53, %v936_v21  ;;  %v1021_v59 = vmul.f32 %v4280_v54, %v343_v50  ;;  %v3999_v50 = vld [vmem:[%s6367_s4 + $0x184] ss:$8 sps:$4 sm:$0xff]   ;;  %v3997_v21 = vld [vmem:[%s6367_s4 + $0x180] ss:$8 sps:$4 sm:$0xff]   ;;  %v4002_v53 = vld [vmem:[%s6367_s4 + $0x194] ss:$8 sps:$4 sm:$0xff]  }
 0x236   : > { %v1006_v60 = vmul.f32 1.442695, %v4282_v45  ;;  %1070 = vadd.xlane.f32.xlu0 %v4282_v45  ;;  %1584 = vmatpush1.bf16.msra.mxu1 %v3985_v24  ;;  %v4000_v54 = vld [vmem:[%s6367_s4 + $0x190] ss:$8 sps:$4 sm:$0xff]   ;;  %v4005_v45 = vld [vmem:[%s6367_s4 + $0x1a4] ss:$8 sps:$4 sm:$0xff]  }
 0x237   : > { %v4284_v48 = vpop.eup %4283  ;;  %v5250_v63 = vadd.f32 %v1021_v59, %v940_v58  ;;  %1585 = vmatprep.subr.bf16.mxu1 %v3990_v42  ;;  %v4003_v58 = vld [vmem:[%s6367_s4 + $0x1a0] ss:$8 sps:$4 sm:$0xff]   ;;  %v4008_v59 = vld [vmem:[%s6367_s4 + $0x1b4] ss:$8 sps:$4 sm:$0xff]  }
 0x238   : > { %4289 = vpow2.f32 %v1006_v60  ;;  %v1008_v3 = vmul.f32 1.442695, %v4284_v48  ;;  %1072 = vadd.xlane.f32.xlu1 %v4284_v48  ;;  %v4006_v60 = vld [vmem:[%s6367_s4 + $0x1b0] ss:$8 sps:$4 sm:$0xff]  }
 0x239   : > { %v1149_v47 = vpack.c.bf16 %v5250_v63, %v5240_v55  ;;  %v4012_v48 = vld [vmem:[%s6367_s4 + $0x1d0] ss:$8 sps:$4 sm:$0xff]  }
 0x23a   : > { %v4286_v5 = vpop.eup %4285  ;;  %4291 = vpow2.f32 %v1008_v3  ;;  %1586 = vmatpush1.bf16.msra.mxu1 %v3988_v35  ;;  %v4017_v3 = vld [vmem:[%s6367_s4 + $0x1e4] ss:$8 sps:$4 sm:$0xff]  }
 0x23b   : > { %v1022_v10 = vmul.f32 %v4286_v5, %v345_v1  ;;  %1326 = vmatmul.mubr.bf16.gmra.mrb[52].mxu0 %v1149_v47  ;;  %1587 = vmatprep.subr.bf16.mxu1 %v3993_v26  ;;  %v4014_v1 = vld [vmem:[%s6367_s4 + $0x1d4] ss:$8 sps:$4 sm:$0xff]   ;;  %v4015_v47 = vld [vmem:[%s6367_s4 + $0x1e0] ss:$8 sps:$4 sm:$0xff]   ;;  %v4018_v5 = vld [vmem:[%s6367_s4 + $0x1f0] ss:$8 sps:$4 sm:$0xff]  }
 0x23c   : > { %v4288_v11 = vpop.eup %4287  ;;  %1335 = vmatprep.mubr.bf16.mxu0 %v6371_v2 }
 0x23d   : > { %v5265_v57 = vadd.f32 %v1022_v10, %v946_v7  ;;  %v1023_v62 = vmul.f32 %v4288_v11, %v347_v6  ;;  %v4020_v6 = vld [vmem:[%s6367_s4 + $0x1f4] ss:$8 sps:$4 sm:$0xff]   ;;  %v4021_v7 = vld [vmem:[%s6365_s2 + $0x100] ss:$8 sps:$4 sm:$0xff]   ;;  %v4023_v10 = vld [vmem:[%s6365_s2 + $0x104] ss:$8 sps:$4 sm:$0xff]  }
 0x23e   : > { %1588 = vmatpush1.bf16.msra.mxu1 %v3991_v44  ;;  %v4026_v11 = vld [vmem:[%s6365_s2 + $0x114] ss:$8 sps:$4 sm:$0xff]   ;;  %1969 = vmatprep.subr.bf16.mxu0 %v4023_v10 }
 0x23f   : > { %v5272_v17 = vadd.f32 %v1023_v62, %v950_v14  ;;  %1589 = vmatprep.subr.bf16.mxu1 %v3996_v46  ;;  %1970 = vmatpush1.bf16.msra.mxu0 %v4021_v7  ;;  %v4027_v14 = vld [vmem:[%s6365_s2 + $0x120] ss:$8 sps:$4 sm:$0xff]   ;;  %v4032_v62 = vld [vmem:[%s6365_s2 + $0x134] ss:$8 sps:$4 sm:$0xff]  }
 0x240   : > { %1971 = vmatprep.subr.bf16.mxu0 %v4026_v11 }
 0x241   : > { %v1150_v0 = vpack.c.bf16 %v5272_v17, %v5265_v57 }
 0x242   : > { %v4290_v27 = vpop.eup %4289  ;;  %1590 = vmatpush1.bf16.msra.mxu1 %v3994_v49 }
 0x243   : > { %v1024_v30 = vmul.f32 %v4290_v27, %v349_v19  ;;  %1336 = vmatmul.mubr.bf16.gmra.mrb[56].mxu0 %v1150_v0  ;;  %1591 = vmatprep.subr.bf16.mxu1 %v3999_v50  ;;  %v5399_v19 = vrot.slane %v3516_v18, %v5051_v20  ;;  %v5402_v0 = vrot.slane %v3516_v18, %v5056_v22 }
 0x244   : > { %v4292_v31 = vpop.eup %4291  ;;  %1345 = vmatprep.mubr.bf16.mxu0 %v6371_v2  ;;  %1972 = vmatpush1.bf16.msra.mxu0 %v4024_v12 }
 0x245   : > { %v5290_v36 = vadd.f32 %v1024_v30, %v956_v29  ;;  %v1025_v25 = vmul.f32 %v4292_v31, %v351_v8  ;;  %1973 = vmatprep.subr.bf16.mxu0 %v4029_v13 }
 0x246   : > { %1592 = vmatpush1.bf16.msra.mxu1 %v3997_v21 }
 0x247   : > { %v5297_v41 = vadd.f32 %v1025_v25, %v960_v37  ;;  %1593 = vmatprep.subr.bf16.mxu1 %v4002_v53 }
 0x248   : > { %1974 = vmatpush1.bf16.msra.mxu0 %v4027_v14 }
 0x249   : > { %v1151_v52 = vpack.c.bf16 %v5297_v41, %v5290_v36  ;;  %1975 = vmatprep.subr.bf16.mxu0 %v4032_v62 }
 0x24a   : > { %1594 = vmatpush1.bf16.msra.mxu1 %v4000_v54 }
 0x24b   : > { %1346 = vmatmul.mubr.bf16.gmra.mrb[60].mxu0 %v1151_v52  ;;  %1595 = vmatprep.subr.bf16.mxu1 %v4005_v45 }
 0x24c   : > { %2001 = vmatprep.mubr.bf16.mxu0 %v6371_v2  ;;  %1976 = vmatpush1.bf16.msra.mxu0 %v4030_v16 }
 0x24e   : > { %1596 = vmatpush1.bf16.msra.mxu1 %v4003_v58 }
 0x24f   : > { %1597 = vmatprep.subr.bf16.mxu1 %v4008_v59 }
 0x252   : > { %1598 = vmatpush1.bf16.msra.mxu1 %v4006_v60 }
 0x253   : > { %1599 = vmatprep.subr.bf16.mxu1 %v4011_v61 }
 0x256   : > { %1600 = vmatpush1.bf16.msra.mxu1 %v4009_v39 }
 0x257   : > { %1601 = vmatprep.subr.bf16.mxu1 %v4014_v1 }
 0x25a   : > { %1602 = vmatpush1.bf16.msra.mxu1 %v4012_v48 }
 0x25b   : > { %1603 = vmatprep.subr.bf16.mxu1 %v4017_v3 }
 0x25e   : > { %1604 = vmatpush1.bf16.msra.mxu1 %v4015_v47 }
 0x25f   : > { %1605 = vmatprep.subr.bf16.mxu1 %v4020_v6 }
 0x262   : > { %1606 = vmatpush1.bf16.msra.mxu1 %v4018_v5 }
 0x2e6   : > { %v1277_v27 = vpop.f32.mrb[32].mxu0 }
 0x2e7   : > { %v1278_v8 = vadd.f32 %v1277_v27, %v5399_v19  ;;  %v1279_v29 = vpop.f32.mrb[33].mxu0 }
 0x2e8   : > { %v1280_v30 = vadd.f32 %v1279_v29, %v5402_v0  ;;  %v1281_v31 = vpop.f32.mrb[34].mxu0 }
 0x2e9   : > { %4293 = vtanh.f32 %v1278_v8  ;;  %v1282_v32 = vadd.f32 %v1281_v31, %v5399_v19  ;;  %v1283_v34 = vpop.f32.mrb[35].mxu0 }
 0x2ea   : > { %4295 = vtanh.f32 %v1280_v30  ;;  %v1284_v37 = vadd.f32 %v1283_v34, %v5402_v0 }
 0x2eb   : > { %4297 = vtanh.f32 %v1282_v32 }
 0x2ec   : > { %4299 = vtanh.f32 %v1284_v37 }
 0x2ee   : > { %v1287_v25 = vpop.f32.mrb[36].mxu0 }
 0x2ef   : > { %v1288_v40 = vadd.f32 %v1287_v25, %v5399_v19  ;;  %v1289_v24 = vpop.f32.mrb[37].mxu0 }
 0x2f0   : > { %v1290_v42 = vadd.f32 %v1289_v24, %v5402_v0  ;;  %v1291_v52 = vpop.f32.mrb[38].mxu0 }
 0x2f1   : > { %4301 = vtanh.f32 %v1288_v40  ;;  %v1292_v35 = vadd.f32 %v1291_v52, %v5399_v19  ;;  %v1293_v26 = vpop.f32.mrb[39].mxu0 }
 0x2f2   : > { %4303 = vtanh.f32 %v1290_v42  ;;  %v1294_v44 = vadd.f32 %v1293_v26, %v5402_v0 }
 0x2f3   : > { %v4294_v46 = vpop.eup %4293  ;;  %4305 = vtanh.f32 %v1292_v35 }
 0x2f4   : > { %v4296_v49 = vpop.eup %4295  ;;  %4307 = vtanh.f32 %v1294_v44 }
 0x2f5   : > { %v4298_v50 = vpop.eup %4297 }
 0x2f6   : > { %v4300_v21 = vpop.eup %4299  ;;  %v1297_v53 = vpop.f32.mrb[40].mxu0  ;;  %v1388_v54 = vpack.c.bf16 %v4298_v50, %v4294_v46 }
 0x2f7   : > { %v1298_v45 = vadd.f32 %v1297_v53, %v5399_v19  ;;  %v1299_v58 = vpop.f32.mrb[41].mxu0  ;;  %v1389_v59 = vpack.c.bf16 %v4300_v21, %v4296_v49 }
 0x2f8   : > { %v1300_v60 = vadd.f32 %v1299_v58, %v5402_v0  ;;  %v1301_v61 = vpop.f32.mrb[42].mxu0 }
 0x2f9   : > { %4309 = vtanh.f32 %v1298_v45  ;;  %v1302_v39 = vadd.f32 %v1301_v61, %v5399_v19  ;;  %v1303_v48 = vpop.f32.mrb[43].mxu0  ;;  %1607 = vmatprep.mubr.bf16.mxu1 %v1389_v59 }
 0x2fa   : > { %4311 = vtanh.f32 %v1300_v60  ;;  %v1304_v1 = vadd.f32 %v1303_v48, %v5402_v0  ;;  %1608 = vmatmul.mubr.bf16.vlgmr.msra.gmra.mrb[32].mxu1 %v1388_v54 }
 0x2fb   : > { %v4302_v3 = vpop.eup %4301  ;;  %4313 = vtanh.f32 %v1302_v39 }
 0x2fc   : > { %v4304_v47 = vpop.eup %4303  ;;  %4315 = vtanh.f32 %v1304_v1 }
 0x2fd   : > { %v4306_v5 = vpop.eup %4305 }
 0x2fe   : > { %v4308_v6 = vpop.eup %4307  ;;  %v1307_v7 = vpop.f32.mrb[44].mxu0  ;;  %v1390_v10 = vpack.c.bf16 %v4306_v5, %v4302_v3 }
 0x2ff   : > { %v1308_v11 = vadd.f32 %v1307_v7, %v5399_v19  ;;  %v1309_v12 = vpop.f32.mrb[45].mxu0  ;;  %v1391_v13 = vpack.c.bf16 %v4308_v6, %v4304_v47 }
 0x300   : > { %v1310_v14 = vadd.f32 %v1309_v12, %v5402_v0  ;;  %v1311_v62 = vpop.f32.mrb[46].mxu0 }
 0x301   : > { %4317 = vtanh.f32 %v1308_v11  ;;  %v1312_v16 = vadd.f32 %v1311_v62, %v5399_v19  ;;  %v1313_v18 = vpop.f32.mrb[47].mxu0  ;;  %1617 = vmatprep.mubr.bf16.mxu1 %v1391_v13 }
 0x302   : > { %4319 = vtanh.f32 %v1310_v14  ;;  %v1314_v27 = vadd.f32 %v1313_v18, %v5402_v0  ;;  %1618 = vmatmul.mubr.bf16.gmra.mrb[36].mxu1 %v1390_v10 }
 0x303   : > { %v4310_v8 = vpop.eup %4309  ;;  %4321 = vtanh.f32 %v1312_v16 }
 0x304   : > { %v4312_v29 = vpop.eup %4311  ;;  %4323 = vtanh.f32 %v1314_v27 }
 0x305   : > { %v4314_v30 = vpop.eup %4313 }
 0x306   : > { %v4316_v31 = vpop.eup %4315  ;;  %v1317_v32 = vpop.f32.mrb[48].mxu0  ;;  %v1392_v34 = vpack.c.bf16 %v4314_v30, %v4310_v8 }
 0x307   : > { %v1318_v37 = vadd.f32 %v1317_v32, %v5399_v19  ;;  %v1319_v25 = vpop.f32.mrb[49].mxu0  ;;  %v1393_v40 = vpack.c.bf16 %v4316_v31, %v4312_v29 }
 0x308   : > { %v1320_v24 = vadd.f32 %v1319_v25, %v5402_v0  ;;  %v1321_v42 = vpop.f32.mrb[50].mxu0 }
 0x309   : > { %4325 = vtanh.f32 %v1318_v37  ;;  %v1322_v52 = vadd.f32 %v1321_v42, %v5399_v19  ;;  %v1323_v35 = vpop.f32.mrb[51].mxu0  ;;  %1627 = vmatprep.mubr.bf16.mxu1 %v1393_v40 }
 0x30a   : > { %4327 = vtanh.f32 %v1320_v24  ;;  %v1324_v26 = vadd.f32 %v1323_v35, %v5402_v0  ;;  %1628 = vmatmul.mubr.bf16.gmra.mrb[40].mxu1 %v1392_v34 }
 0x30b   : > { %v4318_v44 = vpop.eup %4317  ;;  %4329 = vtanh.f32 %v1322_v52 }
 0x30c   : > { %v4320_v46 = vpop.eup %4319  ;;  %4331 = vtanh.f32 %v1324_v26 }
 0x30d   : > { %v4322_v49 = vpop.eup %4321 }
 0x30e   : > { %v4324_v50 = vpop.eup %4323  ;;  %v1327_v21 = vpop.f32.mrb[52].mxu0  ;;  %v1394_v53 = vpack.c.bf16 %v4322_v49, %v4318_v44 }
 0x30f   : > { %v1328_v54 = vadd.f32 %v1327_v21, %v5399_v19  ;;  %v1329_v45 = vpop.f32.mrb[53].mxu0  ;;  %v1395_v58 = vpack.c.bf16 %v4324_v50, %v4320_v46 }
 0x310   : > { %v1330_v59 = vadd.f32 %v1329_v45, %v5402_v0  ;;  %v1331_v60 = vpop.f32.mrb[54].mxu0 }
 0x311   : > { %4333 = vtanh.f32 %v1328_v54  ;;  %v1332_v61 = vadd.f32 %v1331_v60, %v5399_v19  ;;  %v1333_v39 = vpop.f32.mrb[55].mxu0  ;;  %1637 = vmatprep.mubr.bf16.mxu1 %v1395_v58  ;;  %v4033_v60 = vld [vmem:[%s6365_s2 + $0x140] ss:$8 sps:$4 sm:$0xff]  }
 0x312   : > { %4335 = vtanh.f32 %v1330_v59  ;;  %v1334_v48 = vadd.f32 %v1333_v39, %v5402_v0  ;;  %1638 = vmatmul.mubr.bf16.gmra.mrb[44].mxu1 %v1394_v53  ;;  %v4036_v39 = vld [vmem:[%s6365_s2 + $0x150] ss:$8 sps:$4 sm:$0xff]  }
 0x313   : > { %v4326_v1 = vpop.eup %4325  ;;  %4337 = vtanh.f32 %v1332_v61  ;;  %v4038_v61 = vld [vmem:[%s6365_s2 + $0x154] ss:$8 sps:$4 sm:$0xff]  }
 0x314   : > { %v4328_v3 = vpop.eup %4327  ;;  %4339 = vtanh.f32 %v1334_v48  ;;  %v4041_v48 = vld [vmem:[%s6365_s2 + $0x164] ss:$8 sps:$4 sm:$0xff]  }
 0x315   : > { %v4330_v47 = vpop.eup %4329 }
 0x316   : > { %v4332_v5 = vpop.eup %4331  ;;  %v1337_v6 = vpop.f32.mrb[56].mxu0  ;;  %v1396_v7 = vpack.c.bf16 %v4330_v47, %v4326_v1  ;;  %v4039_v1 = vld [vmem:[%s6365_s2 + $0x160] ss:$8 sps:$4 sm:$0xff]   ;;  %v4042_v47 = vld [vmem:[%s6365_s2 + $0x170] ss:$8 sps:$4 sm:$0xff]  }
 0x317   : > { %v1338_v10 = vadd.f32 %v1337_v6, %v5399_v19  ;;  %v1339_v11 = vpop.f32.mrb[57].mxu0  ;;  %v1397_v12 = vpack.c.bf16 %v4332_v5, %v4328_v3  ;;  %v4044_v3 = vld [vmem:[%s6365_s2 + $0x174] ss:$8 sps:$4 sm:$0xff]   ;;  %v3549_v5 = vld [vmem:[%s6368_s5 + $0x2] sm:$0x3] }
 0x318   : > { %v1340_v13 = vadd.f32 %v1339_v11, %v5402_v0  ;;  %v1341_v14 = vpop.f32.mrb[58].mxu0  ;;  %v5464_v6 = vrot.slane %v3549_v5, %v5051_v20 }
 0x319   : > { %4341 = vtanh.f32 %v1338_v10  ;;  %v1342_v62 = vadd.f32 %v1341_v14, %v5399_v19  ;;  %v1343_v16 = vpop.f32.mrb[59].mxu0  ;;  %1647 = vmatprep.mubr.bf16.mxu1 %v1397_v12 }
 0x31a   : > { %4343 = vtanh.f32 %v1340_v13  ;;  %v1344_v18 = vadd.f32 %v1343_v16, %v5402_v0  ;;  %1648 = vmatmul.mubr.bf16.gmra.mrb[48].mxu1 %v1396_v7 }
 0x31b   : > { %v4334_v27 = vpop.eup %4333  ;;  %4345 = vtanh.f32 %v1342_v62 }
 0x31c   : > { %v4336_v8 = vpop.eup %4335  ;;  %4347 = vtanh.f32 %v1344_v18 }
 0x31d   : > { %v4338_v29 = vpop.eup %4337 }
 0x31e   : > { %v4340_v30 = vpop.eup %4339  ;;  %v1347_v31 = vpop.f32.mrb[60].mxu0  ;;  %v1398_v32 = vpack.c.bf16 %v4338_v29, %v4334_v27 }
 0x31f   : > { %v1348_v34 = vadd.f32 %v1347_v31, %v5399_v19  ;;  %v1349_v37 = vpop.f32.mrb[61].mxu0  ;;  %v1399_v25 = vpack.c.bf16 %v4340_v30, %v4336_v8 }
 0x320   : > { %v1350_v40 = vadd.f32 %v1349_v37, %v5402_v0  ;;  %v1351_v24 = vpop.f32.mrb[62].mxu0 }
 0x321   : > { %4349 = vtanh.f32 %v1348_v34  ;;  %v1352_v42 = vadd.f32 %v1351_v24, %v5399_v19  ;;  %v1353_v52 = vpop.f32.mrb[63].mxu0  ;;  %1657 = vmatprep.mubr.bf16.mxu1 %v1399_v25 }
 0x322   : > { %4351 = vtanh.f32 %v1350_v40  ;;  %v1354_v35 = vadd.f32 %v1353_v52, %v5402_v0  ;;  %1658 = vmatmul.mubr.bf16.gmra.mrb[52].mxu1 %v1398_v32  ;;  %v4035_v0 = vld [vmem:[%s6365_s2 + $0x144] ss:$8 sps:$4 sm:$0xff]  }
 0x323   : > { %v4342_v26 = vpop.eup %4341  ;;  %4353 = vtanh.f32 %v1352_v42  ;;  %1977 = vmatprep.subr.bf16.mxu0 %v4035_v0 }
 0x324   : > { %v4344_v44 = vpop.eup %4343  ;;  %4355 = vtanh.f32 %v1354_v35  ;;  %1978 = vmatpush1.bf16.msra.mxu0 %v4033_v60 }
 0x325   : > { %v4346_v46 = vpop.eup %4345  ;;  %1979 = vmatprep.subr.bf16.mxu0 %v4038_v61 }
 0x326   : > { %v4348_v49 = vpop.eup %4347  ;;  %v1400_v50 = vpack.c.bf16 %v4346_v46, %v4342_v26  ;;  %v5481_v46 = vrot.slane %v3549_v5, %v5056_v22 }
 0x327   : > { %v1401_v21 = vpack.c.bf16 %v4348_v49, %v4344_v44 }
 0x328   : > { %1980 = vmatpush1.bf16.msra.mxu0 %v4036_v39 }
 0x329   : > { %1667 = vmatprep.mubr.bf16.mxu1 %v1401_v21  ;;  %1981 = vmatprep.subr.bf16.mxu0 %v4041_v48 }
 0x32a   : > { %1668 = vmatmul.mubr.bf16.gmra.mrb[56].mxu1 %v1400_v50 }
 0x32b   : > { %v4350_v53 = vpop.eup %4349 }
 0x32c   : > { %v4352_v54 = vpop.eup %4351  ;;  %1982 = vmatpush1.bf16.msra.mxu0 %v4039_v1 }
 0x32d   : > { %v4354_v45 = vpop.eup %4353  ;;  %1983 = vmatprep.subr.bf16.mxu0 %v4044_v3  ;;  %v4678_v3 = vld [vmem:[%s4917_s17 + $0x10] sm:$0xff] }
 0x32e   : > { %v4356_v19 = vpop.eup %4355  ;;  %v1402_v58 = vpack.c.bf16 %v4354_v45, %v4350_v53 }
 0x32f   : > { %v1403_v59 = vpack.c.bf16 %v4356_v19, %v4352_v54 }
 0x330   : > { %1984 = vmatpush1.bf16.msra.mxu0 %v4042_v47 }
 0x331   : > { %1677 = vmatprep.mubr.bf16.mxu1 %v1403_v59 }
 0x332   : > { %1678 = vmatmul.mubr.bf16.gmra.mrb[60].mxu1 %v1402_v58  ;;  %v4677_v58 = vld [vmem:[%s4917_s17] sm:$0xff] }
 0x3cd   : > { %v1609_v7 = vpop.f32.mrb[32].mxu1 }
 0x3ce   : > { %v1610_v10 = vadd.f32 %v1609_v7, %v5464_v6  ;;  %v1611_v11 = vpop.f32.mrb[33].mxu1 }
 0x3cf   : > { %v1613_v12 = vpop.f32.mrb[34].mxu1  ;;  %v1612_v19 = vadd.f32 %v1611_v11, %v5481_v46 }
 0x3d0   : > { %4357 = vtanh.f32 %v1610_v10  ;;  %v1614_v13 = vadd.f32 %v1613_v12, %v5464_v6  ;;  %v1615_v14 = vpop.f32.mrb[35].mxu1 }
 0x3d1   : > { %v1616_v1 = vadd.f32 %v1615_v14, %v5481_v46 }
 0x3d2   : > { %4359 = vtanh.f32 %v1614_v13 }
 0x3d5   : > { %v1619_v62 = vpop.f32.mrb[36].mxu1 }
 0x3d6   : > { %v1620_v16 = vadd.f32 %v1619_v62, %v5464_v6  ;;  %v5469_v18 = vpop.f32.mrb[37].mxu1 }
 0x3d7   : > { %v1623_v27 = vpop.f32.mrb[38].mxu1 }
 0x3d8   : > { %4361 = vtanh.f32 %v1620_v16  ;;  %v1624_v8 = vadd.f32 %v1623_v27, %v5464_v6  ;;  %v5472_v29 = vpop.f32.mrb[39].mxu1 }
 0x3da   : > { %v4358_v30 = vpop.eup %4357  ;;  %4363 = vtanh.f32 %v1624_v8  ;;  %v1622_v8 = vadd.f32 %v5469_v18, %v5481_v46 }
 0x3db   : > { %v1704_v31 = vmul.f32 1.442695, %v4358_v30  ;;  %1768 = vadd.xlane.f32.xlu0 %v4358_v30  ;;  %v4679_v30 = vld [vmem:[%s4917_s17 + $0x20] sm:$0xff] }
 0x3dc   : > { %v4360_v32 = vpop.eup %4359 }
 0x3dd   : > { %4365 = vpow2.f32 %v1704_v31  ;;  %v1706_v34 = vmul.f32 1.442695, %v4360_v32  ;;  %v1629_v37 = vpop.f32.mrb[40].mxu1  ;;  %1770 = vadd.xlane.f32.xlu1 %v4360_v32 }
 0x3de   : > { %v1630_v25 = vadd.f32 %v1629_v37, %v5464_v6  ;;  %v5475_v40 = vpop.f32.mrb[41].mxu1 }
 0x3df   : > { %4367 = vpow2.f32 %v1706_v34  ;;  %v1633_v24 = vpop.f32.mrb[42].mxu1 }
 0x3e0   : > { %4369 = vtanh.f32 %v1630_v25  ;;  %v1634_v42 = vadd.f32 %v1633_v24, %v5464_v6  ;;  %v5478_v52 = vpop.f32.mrb[43].mxu1 }
 0x3e2   : > { %v4362_v35 = vpop.eup %4361  ;;  %4371 = vtanh.f32 %v1634_v42  ;;  %v1626_v42 = vadd.f32 %v5472_v29, %v5481_v46 }
 0x3e3   : > { %v1708_v26 = vmul.f32 1.442695, %v4362_v35  ;;  %1772 = vadd.xlane.f32.xlu0 %v4362_v35  ;;  %v4680_v35 = vld [vmem:[%s4917_s17 + $0x30] sm:$0xff] }
 0x3e4   : > { %v4364_v44 = vpop.eup %4363 }
 0x3e5   : > { %4373 = vpow2.f32 %v1708_v26  ;;  %v1710_v49 = vmul.f32 1.442695, %v4364_v44  ;;  %v1639_v50 = vpop.f32.mrb[44].mxu1  ;;  %1774 = vadd.xlane.f32.xlu1 %v4364_v44 }
 0x3e6   : > { %v1640_v21 = vadd.f32 %v1639_v50, %v5464_v6  ;;  %v5484_v53 = vpop.f32.mrb[45].mxu1 }
 0x3e7   : > { %v4366_v54 = vpop.eup %4365  ;;  %4375 = vpow2.f32 %v1710_v49  ;;  %v1643_v45 = vpop.f32.mrb[46].mxu1 }
 0x3e8   : > { %v1736_v59 = vmul.f32 %v4677_v58, %v4366_v54  ;;  %4377 = vtanh.f32 %v1640_v21  ;;  %v1644_v0 = vadd.f32 %v1643_v45, %v5464_v6  ;;  %v5489_v60 = vpop.f32.mrb[47].mxu1 }
 0x3e9   : > { %v4368_v61 = vpop.eup %4367 }
 0x3ea   : > { %v4370_v39 = vpop.eup %4369  ;;  %v5491_v48 = vadd.f32 %v1736_v59, %v1612_v19  ;;  %v1737_v47 = vmul.f32 %v4678_v3, %v4368_v61  ;;  %4379 = vtanh.f32 %v1644_v0  ;;  %v1632_v59 = vadd.f32 %v5475_v40, %v5481_v46  ;;  %v4681_v0 = vld [vmem:[%s4917_s17 + $0x40] sm:$0xff] }
 0x3eb   : > { %v1712_v5 = vmul.f32 1.442695, %v4370_v39  ;;  %1776 = vadd.xlane.f32.xlu0 %v4370_v39 }
 0x3ec   : > { %v4372_v7 = vpop.eup %4371  ;;  %v5495_v10 = vadd.f32 %v1737_v47, %v1616_v1 }
 0x3ed   : > { %4381 = vpow2.f32 %v1712_v5  ;;  %v1714_v11 = vmul.f32 1.442695, %v4372_v7  ;;  %v1649_v12 = vpop.f32.mrb[48].mxu1  ;;  %1778 = vadd.xlane.f32.xlu1 %v4372_v7  ;;  %v1636_v7 = vadd.f32 %v5478_v52, %v5481_v46 }
 0x3ee   : > { %v1870_v13 = vpack.c.bf16 %v5495_v10, %v5491_v48  ;;  %v1650_v62 = vadd.f32 %v1649_v12, %v5464_v6  ;;  %v5500_v16 = vpop.f32.mrb[49].mxu1 }
 0x3ef   : > { %v4374_v14 = vpop.eup %4373  ;;  %4383 = vpow2.f32 %v1714_v11  ;;  %v1653_v27 = vpop.f32.mrb[50].mxu1  ;;  %v4682_v11 = vld [vmem:[%s4917_s17 + $0x50] sm:$0xff] }
 0x3f0   : > { %v1738_v31 = vmul.f32 %v4679_v30, %v4374_v14  ;;  %4385 = vtanh.f32 %v1650_v62  ;;  %v1654_v32 = vadd.f32 %v1653_v27, %v5464_v6  ;;  %v5506_v34 = vpop.f32.mrb[51].mxu1  ;;  %2002 = vmatmul.mubr.bf16.vlgmr.msra.gmra.mrb[64].mxu0 %v1870_v13 }
 0x3f1   : > { %v4376_v37 = vpop.eup %4375  ;;  %2011 = vmatprep.mubr.bf16.mxu0 %v6371_v2 }
 0x3f2   : > { %v4378_v25 = vpop.eup %4377  ;;  %v5509_v24 = vadd.f32 %v1738_v31, %v1622_v8  ;;  %v1739_v26 = vmul.f32 %v4680_v35, %v4376_v37  ;;  %4387 = vtanh.f32 %v1654_v32  ;;  %v1642_v37 = vadd.f32 %v5484_v53, %v5481_v46 }
 0x3f3   : > { %v1716_v18 = vmul.f32 1.442695, %v4378_v25  ;;  %1780 = vadd.xlane.f32.xlu0 %v4378_v25  ;;  %v4683_v25 = vld [vmem:[%s4917_s17 + $0x60] sm:$0xff] }
 0x3f4   : > { %v4380_v44 = vpop.eup %4379  ;;  %v5514_v49 = vadd.f32 %v1739_v26, %v1626_v42 }
 0x3f5   : > { %4389 = vpow2.f32 %v1716_v18  ;;  %v1718_v50 = vmul.f32 1.442695, %v4380_v44  ;;  %v1659_v21 = vpop.f32.mrb[52].mxu1  ;;  %1782 = vadd.xlane.f32.xlu1 %v4380_v44 }
 0x3f6   : > { %v1660_v54 = vadd.f32 %v1659_v21, %v5464_v6  ;;  %v5517_v45 = vpop.f32.mrb[53].mxu1  ;;  %v1871_v29 = vpack.c.bf16 %v5514_v49, %v5509_v24  ;;  %v1646_v21 = vadd.f32 %v5489_v60, %v5481_v46 }
 0x3f7   : > { %v4382_v19 = vpop.eup %4381  ;;  %4391 = vpow2.f32 %v1718_v50  ;;  %v1663_v58 = vpop.f32.mrb[54].mxu1 }
 0x3f8   : > { %v1740_v61 = vmul.f32 %v4681_v0, %v4382_v19  ;;  %4393 = vtanh.f32 %v1660_v54  ;;  %v1664_v39 = vadd.f32 %v1663_v58, %v5464_v6  ;;  %v5525_v1 = vpop.f32.mrb[55].mxu1  ;;  %2012 = vmatmul.mubr.bf16.gmra.mrb[68].mxu0 %v1871_v29  ;;  %v4684_v54 = vld [vmem:[%s4917_s17 + $0x70] sm:$0xff] }
 0x3f9   : > { %v4384_v3 = vpop.eup %4383  ;;  %2021 = vmatprep.mubr.bf16.mxu0 %v6371_v2 }
 0x3fa   : > { %v4386_v47 = vpop.eup %4385  ;;  %v5528_v5 = vadd.f32 %v1740_v61, %v1632_v59  ;;  %v1741_v12 = vmul.f32 %v4682_v11, %v4384_v3  ;;  %4395 = vtanh.f32 %v1664_v39  ;;  %v4685_v11 = vld [vmem:[%s4917_s17 + $0x80] sm:$0xff] }
 0x3fb   : > { %v1720_v40 = vmul.f32 1.442695, %v4386_v47  ;;  %1784 = vadd.xlane.f32.xlu0 %v4386_v47 }
 0x3fc   : > { %v4388_v13 = vpop.eup %4387  ;;  %v5533_v62 = vadd.f32 %v1741_v12, %v1636_v7  ;;  %v1652_v7 = vadd.f32 %v5500_v16, %v5481_v46 }
 0x3fd   : > { %4397 = vpow2.f32 %v1720_v40  ;;  %v1722_v14 = vmul.f32 1.442695, %v4388_v13  ;;  %v1669_v27 = vpop.f32.mrb[56].mxu1  ;;  %1786 = vadd.xlane.f32.xlu1 %v4388_v13 }
 0x3fe   : > { %v1670_v8 = vadd.f32 %v1669_v27, %v5464_v6  ;;  %v5536_v30 = vpop.f32.mrb[57].mxu1  ;;  %v1872_v52 = vpack.c.bf16 %v5533_v62, %v5528_v5 }
 0x3ff   : > { %v4390_v31 = vpop.eup %4389  ;;  %4399 = vpow2.f32 %v1722_v14  ;;  %v1673_v32 = vpop.f32.mrb[58].mxu1 }
 0x400   : > { %v1742_v42 = vmul.f32 %v4683_v25, %v4390_v31  ;;  %4401 = vtanh.f32 %v1670_v8  ;;  %v1674_v35 = vadd.f32 %v1673_v32, %v5464_v6  ;;  %v5544_v26 = vpop.f32.mrb[59].mxu1  ;;  %2022 = vmatmul.mubr.bf16.gmra.mrb[72].mxu0 %v1872_v52  ;;  %v1656_v52 = vadd.f32 %v5506_v34, %v5481_v46  ;;  %v4686_v31 = vld [vmem:[%s4917_s17 + $0x90] sm:$0xff] }
 0x401   : > { %v4392_v18 = vpop.eup %4391  ;;  %2031 = vmatprep.mubr.bf16.mxu0 %v6371_v2  ;;  %v1662_v34 = vadd.f32 %v5517_v45, %v5481_v46  ;;  %v4045_v45 = vld [vmem:[%s6367_s4 + $0x200] ss:$8 sps:$4 sm:$0xff]  }
 0x402   : > { %v4394_v44 = vpop.eup %4393  ;;  %v5547_v50 = vadd.f32 %v1742_v42, %v1642_v37  ;;  %v1743_v29 = vmul.f32 %v4684_v54, %v4392_v18  ;;  %4403 = vtanh.f32 %v1674_v35  ;;  %v4687_v18 = vld [vmem:[%s4917_s17 + $0xa0] sm:$0xff] }
 0x403   : > { %v1724_v53 = vmul.f32 1.442695, %v4394_v44  ;;  %1788 = vadd.xlane.f32.xlu0 %v4394_v44 }
 0x404   : > { %v4396_v19 = vpop.eup %4395  ;;  %v5552_v58 = vadd.f32 %v1743_v29, %v1646_v21 }
 0x405   : > { %4405 = vpow2.f32 %v1724_v53  ;;  %v1726_v59 = vmul.f32 1.442695, %v4396_v19  ;;  %v1679_v0 = vpop.f32.mrb[60].mxu1  ;;  %1790 = vadd.xlane.f32.xlu1 %v4396_v19  ;;  %v1666_v53 = vadd.f32 %v5525_v1, %v5481_v46  ;;  %v4688_v19 = vld [vmem:[%s4917_s17 + $0xb0] sm:$0xff] }
 0x406   : > { %v1680_v61 = vadd.f32 %v1679_v0, %v5464_v6  ;;  %v5555_v39 = vpop.f32.mrb[61].mxu1  ;;  %v1873_v60 = vpack.c.bf16 %v5552_v58, %v5547_v50 }
 0x407   : > { %v4398_v3 = vpop.eup %4397  ;;  %4407 = vpow2.f32 %v1726_v59  ;;  %v1683_v47 = vpop.f32.mrb[62].mxu1 }
 0x408   : > { %v1744_v12 = vmul.f32 %v4685_v11, %v4398_v3  ;;  %4409 = vtanh.f32 %v1680_v61  ;;  %v1684_v40 = vadd.f32 %v1683_v47, %v5464_v6  ;;  %v5563_v13 = vpop.f32.mrb[63].mxu1  ;;  %2032 = vmatmul.mubr.bf16.gmra.mrb[76].mxu0 %v1873_v60  ;;  %v4047_v61 = vld [vmem:[%s6367_s4 + $0x204] ss:$8 sps:$4 sm:$0xff]   ;;  %v1672_v11 = vadd.f32 %v5536_v30, %v5481_v46 }
 0x409   : > { %v4400_v14 = vpop.eup %4399  ;;  %2041 = vmatprep.mubr.bf16.mxu0 %v6371_v2  ;;  %2301 = vmatprep.subr.bf16.mxu1 %v4047_v61  ;;  %v1676_v30 = vadd.f32 %v5544_v26, %v5481_v46 }
 0x40a   : > { %v4402_v27 = vpop.eup %4401  ;;  %v5566_v8 = vadd.f32 %v1744_v12, %v1652_v7  ;;  %v1745_v16 = vmul.f32 %v4686_v31, %v4400_v14  ;;  %4411 = vtanh.f32 %v1684_v40  ;;  %2302 = vmatpush1.bf16.msra.mxu1 %v4045_v45  ;;  %v4689_v12 = vld [vmem:[%s4917_s17 + $0xc0] sm:$0xff] }
 0x40b   : > { %v1728_v32 = vmul.f32 1.442695, %v4402_v27  ;;  %1792 = vadd.xlane.f32.xlu0 %v4402_v27  ;;  %v4048_v27 = vld [vmem:[%s6367_s4 + $0x210] ss:$8 sps:$4 sm:$0xff]   ;;  %v4059_v45 = vld [vmem:[%s6367_s4 + $0x244] ss:$8 sps:$4 sm:$0xff]  }
 0x40c   : > { %v4404_v37 = vpop.eup %4403  ;;  %v5571_v6 = vadd.f32 %v1745_v16, %v1656_v52  ;;  %v4050_v52 = vld [vmem:[%s6367_s4 + $0x214] ss:$8 sps:$4 sm:$0xff]  }
 0x40d   : > { %4413 = vpow2.f32 %v1728_v32  ;;  %v1730_v25 = vmul.f32 1.442695, %v4404_v37  ;;  %1794 = vadd.xlane.f32.xlu1 %v4404_v37  ;;  %v4690_v16 = vld [vmem:[%s4917_s17 + $0xd0] sm:$0xff]  ;;  %2303 = vmatprep.subr.bf16.mxu1 %v4050_v52  ;;  %v4053_v37 = vld [vmem:[%s6367_s4 + $0x224] ss:$8 sps:$4 sm:$0xff]  }
 0x40e   : > { %v1874_v42 = vpack.c.bf16 %v5571_v6, %v5566_v8  ;;  %2304 = vmatpush1.bf16.msra.mxu1 %v4048_v27  ;;  %v4074_v27 = vld [vmem:[%s6367_s4 + $0x294] ss:$8 sps:$4 sm:$0xff]   ;;  %v4072_v52 = vld [vmem:[%s6367_s4 + $0x290] ss:$8 sps:$4 sm:$0xff]  }
 0x40f   : > { %v4406_v35 = vpop.eup %4405  ;;  %4415 = vpow2.f32 %v1730_v25  ;;  %2305 = vmatprep.subr.bf16.mxu1 %v4053_v37  ;;  %v4078_v37 = vld [vmem:[%s6367_s4 + $0x2b0] ss:$8 sps:$4 sm:$0xff]  }
 0x410   : > { %v1746_v44 = vmul.f32 %v4687_v18, %v4406_v35  ;;  %2042 = vmatmul.mubr.bf16.gmra.mrb[80].mxu0 %v1874_v42  ;;  %v4051_v42 = vld [vmem:[%s6367_s4 + $0x220] ss:$8 sps:$4 sm:$0xff]  }
 0x411   : > { %v4408_v21 = vpop.eup %4407  ;;  %2051 = vmatprep.mubr.bf16.mxu0 %v6371_v2  ;;  %v4691_v18 = vld [vmem:[%s4917_s17 + $0xe0] sm:$0xff] }
 0x412   : > { %v4410_v54 = vpop.eup %4409  ;;  %v5579_v29 = vadd.f32 %v1746_v44, %v1662_v34  ;;  %v1747_v59 = vmul.f32 %v4688_v19, %v4408_v21  ;;  %v1682_v34 = vadd.f32 %v5555_v39, %v5481_v46  ;;  %2306 = vmatpush1.bf16.msra.mxu1 %v4051_v42  ;;  %v1686_v39 = vadd.f32 %v5563_v13, %v5481_v46  ;;  %v4060_v13 = vld [vmem:[%s6367_s4 + $0x250] ss:$8 sps:$4 sm:$0xff]   ;;  %v4083_v42 = vld [vmem:[%s6367_s4 + $0x2c4] ss:$8 sps:$4 sm:$0xff]  }
 0x413   : > { %v1732_v0 = vmul.f32 1.442695, %v4410_v54  ;;  %1796 = vadd.xlane.f32.xlu0 %v4410_v54  ;;  %v4054_v54 = vld [vmem:[%s6367_s4 + $0x230] ss:$8 sps:$4 sm:$0xff]  }
 0x414   : > { %v4412_v60 = vpop.eup %4411  ;;  %v5590_v3 = vadd.f32 %v1747_v59, %v1666_v53  ;;  %v4056_v53 = vld [vmem:[%s6367_s4 + $0x234] ss:$8 sps:$4 sm:$0xff]  }
 0x415   : > { %4417 = vpow2.f32 %v1732_v0  ;;  %v1734_v47 = vmul.f32 1.442695, %v4412_v60  ;;  %1798 = vadd.xlane.f32.xlu1 %v4412_v60  ;;  %v4692_v59 = vld [vmem:[%s4917_s17 + $0xf0] sm:$0xff]  ;;  %2307 = vmatprep.subr.bf16.mxu1 %v4056_v53  ;;  %v4057_v60 = vld [vmem:[%s6367_s4 + $0x240] ss:$8 sps:$4 sm:$0xff]   ;;  %s6236_s17 = scalar_lea.hbm %s6369_s6, %s3802_s23 }
 0x416   : > { %v1875_v1 = vpack.c.bf16 %v5590_v3, %v5579_v29  ;;  %2308 = vmatpush1.bf16.msra.mxu1 %v4054_v54  ;;  %v4087_v54 = vld [vmem:[%s6367_s4 + $0x2e0] ss:$8 sps:$4 sm:$0xff]  }
 0x417   : > { %v4414_v7 = vpop.eup %4413  ;;  %4419 = vpow2.f32 %v1734_v47  ;;  %2309 = vmatprep.subr.bf16.mxu1 %v4059_v45  ;;  %v4062_v47 = vld [vmem:[%s6367_s4 + $0x254] ss:$8 sps:$4 sm:$0xff]  }
 0x418   : > { %v1748_v40 = vmul.f32 %v4689_v12, %v4414_v7  ;;  %2052 = vmatmul.mubr.bf16.gmra.mrb[84].mxu0 %v1875_v1  ;;  %v4065_v1 = vld [vmem:[%s6367_s4 + $0x264] ss:$8 sps:$4 sm:$0xff]   ;;  %v4063_v7 = vld [vmem:[%s6367_s4 + $0x260] ss:$8 sps:$4 sm:$0xff]   ;;  %v4066_v12 = vld [vmem:[%s6367_s4 + $0x270] ss:$8 sps:$4 sm:$0xff]  }
 0x419   : > { %v4416_v14 = vpop.eup %4415  ;;  %2061 = vmatprep.mubr.bf16.mxu0 %v6371_v2 }
 0x41a   : > { %v5604_v31 = vadd.f32 %v1748_v40, %v1672_v11  ;;  %v1749_v32 = vmul.f32 %v4690_v16, %v4416_v14  ;;  %2310 = vmatpush1.bf16.msra.mxu1 %v4057_v60  ;;  %v4068_v11 = vld [vmem:[%s6367_s4 + $0x274] ss:$8 sps:$4 sm:$0xff]   ;;  %v4071_v40 = vld [vmem:[%s6367_s4 + $0x284] ss:$8 sps:$4 sm:$0xff]   ;;  %v4069_v14 = vld [vmem:[%s6367_s4 + $0x280] ss:$8 sps:$4 sm:$0xff]  }
 0x41b   : > { %2311 = vmatprep.subr.bf16.mxu1 %v4062_v47  ;;  %v4075_v16 = vld [vmem:[%s6367_s4 + $0x2a0] ss:$8 sps:$4 sm:$0xff]  }
 0x41c   : > { %v5612_v25 = vadd.f32 %v1749_v32, %v1676_v30  ;;  %v4077_v30 = vld [vmem:[%s6367_s4 + $0x2a4] ss:$8 sps:$4 sm:$0xff]   ;;  %v4080_v32 = vld [vmem:[%s6367_s4 + $0x2b4] ss:$8 sps:$4 sm:$0xff]  }
 0x41e   : > { %v1876_v35 = vpack.c.bf16 %v5612_v25, %v5604_v31  ;;  %2312 = vmatpush1.bf16.msra.mxu1 %v4060_v13 }
 0x41f   : > { %v4418_v26 = vpop.eup %4417  ;;  %2313 = vmatprep.subr.bf16.mxu1 %v4065_v1 }
 0x420   : > { %v1750_v44 = vmul.f32 %v4691_v18, %v4418_v26  ;;  %2062 = vmatmul.mubr.bf16.gmra.mrb[88].mxu0 %v1876_v35  ;;  %v4081_v35 = vld [vmem:[%s6367_s4 + $0x2c0] ss:$8 sps:$4 sm:$0xff]   ;;  %v4084_v26 = vld [vmem:[%s6367_s4 + $0x2d0] ss:$8 sps:$4 sm:$0xff]   ;;  %v5699_v18 = vpop.xlane.xlu0 %1042 }
 0x421   : > { %v4420_v21 = vpop.eup %4419  ;;  %2071 = vmatprep.mubr.bf16.mxu0 %v6371_v2 }
 0x422   : > { %v5629_v19 = vadd.f32 %v1750_v44, %v1682_v34  ;;  %v1751_v0 = vmul.f32 %v4692_v59, %v4420_v21  ;;  %2314 = vmatpush1.bf16.msra.mxu1 %v4063_v7  ;;  %v4086_v34 = vld [vmem:[%s6367_s4 + $0x2d4] ss:$8 sps:$4 sm:$0xff]   ;;  %v1047_v44 = vpop.xlane.xlu1 %1046  ;;  %v4089_v21 = vld [vmem:[%s6367_s4 + $0x2e4] ss:$8 sps:$4 sm:$0xff]  }
 0x423   : > { %2315 = vmatprep.subr.bf16.mxu1 %v4068_v11  ;;  %v4092_v59 = vld [vmem:[%s6367_s4 + $0x2f4] ss:$8 sps:$4 sm:$0xff]  }
 0x424   : > { %v5637_v61 = vadd.f32 %v1751_v0, %v1686_v39  ;;  %v5707_v53 = vpop.xlane.xlu0 %1044  ;;  %v4090_v39 = vld [vmem:[%s6367_s4 + $0x2f0] ss:$8 sps:$4 sm:$0xff]  }
 0x426   : > { %v1877_v46 = vpack.c.bf16 %v5637_v61, %v5629_v19  ;;  %2316 = vmatpush1.bf16.msra.mxu1 %v4066_v12  ;;  %v1049_v0 = vpop.xlane.xlu1 %1048 }
 0x427   : > { %2317 = vmatprep.subr.bf16.mxu1 %v4071_v40 }
 0x428   : > { %2072 = vmatmul.mubr.bf16.gmra.mrb[92].mxu0 %v1877_v46  ;;  %v1051_v45 = vpop.xlane.xlu0 %1050 }
 0x429   : > { %2727 = vmatprep.mubr.bf16.mxu0 %v6371_v2 }
 0x42a   : > { %2318 = vmatpush1.bf16.msra.mxu1 %v4069_v14  ;;  %v1053_v60 = vpop.xlane.xlu1 %1052 }
 0x42b   : > { %2319 = vmatprep.subr.bf16.mxu1 %v4074_v27 }
 0x42c   : > { %v1055_v47 = vpop.xlane.xlu0 %1054 }
 0x42e   : > { %2320 = vmatpush1.bf16.msra.mxu1 %v4072_v52  ;;  %v1057_v46 = vpop.xlane.xlu1 %1056  ;;  %v354_v52 = vld [vmem:[%s5729_s22 + $0x10] sm:$0xff] }
 0x42f   : > { %2321 = vmatprep.subr.bf16.mxu1 %v4077_v30 }
 0x430   : > { %v1059_v13 = vpop.xlane.xlu0 %1058 }
 0x432   : > { %2322 = vmatpush1.bf16.msra.mxu1 %v4075_v16  ;;  %v1061_v1 = vpop.xlane.xlu1 %1060  ;;  %v355_v16 = vld [vmem:[%s5729_s22 + $0x18] sm:$0xff] }
 0x433   : > { %2323 = vmatprep.subr.bf16.mxu1 %v4080_v32 }
 0x434   : > { %v1063_v7 = vpop.xlane.xlu0 %1062 }
 0x436   : > { %2324 = vmatpush1.bf16.msra.mxu1 %v4078_v37  ;;  %v1065_v11 = vpop.xlane.xlu1 %1064  ;;  %v1076_v37 = vsub.f32 %v354_v52, %v1047_v44  ;;  %v358_v44 = vld [vmem:[%s5729_s22 + $0x30] sm:$0xff] }
 0x437   : > { %2325 = vmatprep.subr.bf16.mxu1 %v4083_v42  ;;  %v1080_v52 = vsub.f32 %v358_v44, %v1055_v47  ;;  %v363_v47 = vld [vmem:[%s5729_s22 + $0x58] sm:$0xff]  ;;  %v4093_v44 = vld [vmem:[%s6365_s2 + $0x180] ss:$8 sps:$4 sm:$0xff]  }
 0x438   : > { %v5715_v12 = vpop.xlane.xlu0 %1066 }
 0x43a   : > { %2326 = vmatpush1.bf16.msra.mxu1 %v4081_v35  ;;  %v5717_v40 = vpop.xlane.xlu1 %1068  ;;  %v1077_v35 = vsub.f32 %v355_v16, %v1049_v0  ;;  %v359_v0 = vld [vmem:[%s5729_s22 + $0x38] sm:$0xff] }
 0x43b   : > { %2327 = vmatprep.subr.bf16.mxu1 %v4086_v34 }
 0x43c   : > { %v5720_v14 = vpop.xlane.xlu0 %1070 }
 0x43d   : > { %6375 = vst [vmem:[#allocation5_spill] sm:$0xff] %v5720_v14 }
 0x43e   : > { %2328 = vmatpush1.bf16.msra.mxu1 %v4084_v26  ;;  %v5722_v27 = vpop.xlane.xlu1 %1072 }
 0x43f   : > { %2329 = vmatprep.subr.bf16.mxu1 %v4089_v21  ;;  %6376 = vst [vmem:[#allocation6_spill] sm:$0xff] %v5722_v27 }
 0x442   : > { %2330 = vmatpush1.bf16.msra.mxu1 %v4087_v54  ;;  %v356_v54 = vld [vmem:[%s5729_s22 + $0x20] sm:$0xff] }
 0x443   : > { %2331 = vmatprep.subr.bf16.mxu1 %v4092_v59  ;;  %v1078_v59 = vsub.f32 %v356_v54, %v1051_v45  ;;  %v360_v45 = vld [vmem:[%s5729_s22 + $0x40] sm:$0xff]  ;;  %v361_v54 = vld [vmem:[%s5729_s22 + $0x48] sm:$0xff] }
 0x446   : > { %2332 = vmatpush1.bf16.msra.mxu1 %v4090_v39  ;;  %v357_v39 = vld [vmem:[%s5729_s22 + $0x28] sm:$0xff] }
 0x447   : > { %v1079_v27 = vsub.f32 %v357_v39, %v1053_v60  ;;  %v1082_v60 = vsub.f32 %v360_v45, %v1059_v13  ;;  %v1083_v39 = vsub.f32 %v361_v54, %v1061_v1  ;;  %v4095_v13 = vld [vmem:[%s6365_s2 + $0x184] ss:$8 sps:$4 sm:$0xff]   ;;  %v4098_v1 = vld [vmem:[%s6365_s2 + $0x194] ss:$8 sps:$4 sm:$0xff]  }
 0x448   : > { %2695 = vmatprep.subr.bf16.mxu0 %v4095_v13  ;;  %v364_v45 = vld [vmem:[%s5729_s22 + $0x60] sm:$0xff]  ;;  %v365_v54 = vld [vmem:[%s5729_s22 + $0x68] sm:$0xff] }
 0x449   : > { %2696 = vmatpush1.bf16.msra.mxu0 %v4093_v44  ;;  %v4102_v44 = vld [vmem:[%s6365_s2 + $0x1b0] ss:$8 sps:$4 sm:$0xff]  }
 0x44a   : > { %2697 = vmatprep.subr.bf16.mxu0 %v4098_v1 }
 0x468   : > { %v5732_v30 = vpop.xlane.xlu0 %1768 }
 0x469   : > { %6377 = vst [vmem:[#allocation7_spill] sm:$0xff] %v5732_v30 }
 0x46a   : > { %v5735_v32 = vpop.xlane.xlu1 %1770 }
 0x46b   : > { %6378 = vst [vmem:[#allocation8_spill] sm:$0xff] %v5735_v32 }
 0x470   : > { %v1773_v42 = vpop.xlane.xlu0 %1772 }
 0x471   : > { %v5737_v26 = vsub.f32 %v1076_v37, %v1773_v42  ;;  %v1081_v37 = vsub.f32 %v359_v0, %v1057_v46 }
 0x472   : > { %v1775_v34 = vpop.xlane.xlu1 %1774 }
 0x473   : > { %v5739_v21 = vsub.f32 %v1077_v35, %v1775_v34 }
 0x478   : > { %v1777_v2 = vpop.xlane.xlu0 %1776 }
 0x479   : > { %v5743_v14 = vsub.f32 %v1078_v59, %v1777_v2 }
 0x47a   : > { %v1779_v30 = vpop.xlane.xlu1 %1778 }
 0x47b   : > { %v5745_v32 = vsub.f32 %v1079_v27, %v1779_v30 }
 0x47d   : > { %6379 = vst [vmem:[#allocation9_spill] sm:$0xff] %v5745_v32  ;;  %v362_v32 = vld [vmem:[%s5729_s22 + $0x50] sm:$0xff] }
 0x47e   : > { %v1084_v46 = vsub.f32 %v362_v32, %v1063_v7  ;;  %v4096_v7 = vld [vmem:[%s6365_s2 + $0x190] ss:$8 sps:$4 sm:$0xff]  }
 0x47f   : > { %2698 = vmatpush1.bf16.msra.mxu0 %v4096_v7 }
 0x480   : > { %v1781_v16 = vpop.xlane.xlu0 %1780 }
 0x481   : > { %v5749_v42 = vsub.f32 %v1080_v52, %v1781_v16  ;;  %v1085_v52 = vsub.f32 %v363_v47, %v1065_v11  ;;  %v4099_v11 = vld [vmem:[%s6365_s2 + $0x1a0] ss:$8 sps:$4 sm:$0xff]  }
 0x482   : > { %v1783_v35 = vpop.xlane.xlu1 %1782 }
 0x483   : > { %v5751_v34 = vsub.f32 %v1081_v37, %v1783_v35  ;;  %v4101_v35 = vld [vmem:[%s6365_s2 + $0x1a4] ss:$8 sps:$4 sm:$0xff]  }
 0x484   : > { %2699 = vmatprep.subr.bf16.mxu0 %v4101_v35 }
 0x485   : > { %2700 = vmatpush1.bf16.msra.mxu0 %v4099_v11 }
 0x488   : > { %v1785_v2 = vpop.xlane.xlu0 %1784 }
 0x489   : > { %v5755_v59 = vsub.f32 %v1082_v60, %v1785_v2  ;;  %v1086_v60 = vsub.f32 %v364_v45, %v5715_v12  ;;  %v4104_v2 = vld [vmem:[%s6365_s2 + $0x1b4] ss:$8 sps:$4 sm:$0xff]   ;;  %v3614_v12 = vld [vmem:[%s6366_s3 + $0x4] sm:$0x3] }
 0x48a   : > { %v1787_v27 = vpop.xlane.xlu1 %1786  ;;  %2701 = vmatprep.subr.bf16.mxu0 %v4104_v2 }
 0x48b   : > { %6380 = vst [vmem:[#allocation10_spill] sm:$0xff] %v5755_v59  ;;  %v5757_v30 = vsub.f32 %v1083_v39, %v1787_v27  ;;  %v1087_v27 = vsub.f32 %v365_v54, %v5717_v40  ;;  %2702 = vmatpush1.bf16.msra.mxu0 %v4102_v44  ;;  %v5804_v40 = vrot.slane %v3614_v12, %v5056_v22 }
 0x48d   : > { %6381 = vst [vmem:[#allocation11_spill] sm:$0xff] %v5757_v30 }
 0x490   : > { %v1789_v0 = vpop.xlane.xlu0 %1788 }
 0x491   : > { %v5770_v16 = vsub.f32 %v1084_v46, %v1789_v0  ;;  %v5801_v0 = vrot.slane %v3614_v12, %v5051_v20 }
 0x492   : > { %v1791_v37 = vpop.xlane.xlu1 %1790 }
 0x493   : > { %6382 = vst [vmem:[#allocation12_spill] sm:$0xff] %v5770_v16  ;;  %v5775_v32 = vsub.f32 %v1085_v52, %v1791_v37 }
 0x495   : > { %6383 = vst [vmem:[#allocation13_spill] sm:$0xff] %v5775_v32 }
 0x498   : > { %v1793_v39 = vpop.xlane.xlu0 %1792 }
 0x499   : > { %v5790_v47 = vsub.f32 %v1086_v60, %v1793_v39 }
 0x49a   : > { %v1795_v46 = vpop.xlane.xlu1 %1794 }
 0x49b   : > { %6384 = vst [vmem:[#allocation14_spill] sm:$0xff] %v5790_v47  ;;  %v5795_v13 = vsub.f32 %v1087_v27, %v1795_v46 }
 0x49d   : > { %6385 = vst [vmem:[#allocation15_spill] sm:$0xff] %v5795_v13 }
 0x4c3   : > { %v2003_v1 = vpop.f32.mrb[64].mxu0 }
 0x4c4   : > { %v2004_v52 = vadd.f32 %v2003_v1, %v5801_v0  ;;  %v2005_v37 = vpop.f32.mrb[65].mxu0 }
 0x4c5   : > { %v2006_v7 = vadd.f32 %v2005_v37, %v5804_v40  ;;  %v2007_v35 = vpop.f32.mrb[66].mxu0 }
 0x4c6   : > { %4421 = vtanh.f32 %v2004_v52  ;;  %v2008_v45 = vadd.f32 %v2007_v35, %v5801_v0  ;;  %v2009_v54 = vpop.f32.mrb[67].mxu0 }
 0x4c7   : > { %4423 = vtanh.f32 %v2006_v7  ;;  %v2010_v11 = vadd.f32 %v2009_v54, %v5804_v40 }
 0x4c8   : > { %4425 = vtanh.f32 %v2008_v45 }
 0x4c9   : > { %4427 = vtanh.f32 %v2010_v11 }
 0x4cb   : > { %v2013_v60 = vpop.f32.mrb[68].mxu0 }
 0x4cc   : > { %v2014_v2 = vadd.f32 %v2013_v60, %v5801_v0  ;;  %v2015_v39 = vpop.f32.mrb[69].mxu0 }
 0x4cd   : > { %v2016_v27 = vadd.f32 %v2015_v39, %v5804_v40  ;;  %v2017_v46 = vpop.f32.mrb[70].mxu0 }
 0x4ce   : > { %4429 = vtanh.f32 %v2014_v2  ;;  %v2018_v44 = vadd.f32 %v2017_v46, %v5801_v0  ;;  %v2019_v12 = vpop.f32.mrb[71].mxu0 }
 0x4cf   : > { %4431 = vtanh.f32 %v2016_v27  ;;  %v2020_v1 = vadd.f32 %v2019_v12, %v5804_v40 }
 0x4d0   : > { %v4422_v52 = vpop.eup %4421  ;;  %4433 = vtanh.f32 %v2018_v44 }
 0x4d1   : > { %v4424_v37 = vpop.eup %4423  ;;  %4435 = vtanh.f32 %v2020_v1 }
 0x4d2   : > { %v4426_v7 = vpop.eup %4425 }
 0x4d3   : > { %v4428_v35 = vpop.eup %4427  ;;  %v2023_v45 = vpop.f32.mrb[72].mxu0  ;;  %v2114_v54 = vpack.c.bf16 %v4426_v7, %v4422_v52 }
 0x4d4   : > { %v2024_v11 = vadd.f32 %v2023_v45, %v5801_v0  ;;  %v2025_v60 = vpop.f32.mrb[73].mxu0  ;;  %v2115_v39 = vpack.c.bf16 %v4428_v35, %v4424_v37 }
 0x4d5   : > { %v2026_v2 = vadd.f32 %v2025_v60, %v5804_v40  ;;  %v2027_v13 = vpop.f32.mrb[74].mxu0 }
 0x4d6   : > { %4437 = vtanh.f32 %v2024_v11  ;;  %v2028_v27 = vadd.f32 %v2027_v13, %v5801_v0  ;;  %v2029_v46 = vpop.f32.mrb[75].mxu0  ;;  %2333 = vmatprep.mubr.bf16.mxu1 %v2115_v39 }
 0x4d7   : > { %4439 = vtanh.f32 %v2026_v2  ;;  %v2030_v44 = vadd.f32 %v2029_v46, %v5804_v40  ;;  %2334 = vmatmul.mubr.bf16.vlgmr.msra.gmra.mrb[64].mxu1 %v2114_v54 }
 0x4d8   : > { %v4430_v12 = vpop.eup %4429  ;;  %4441 = vtanh.f32 %v2028_v27 }
 0x4d9   : > { %v4432_v1 = vpop.eup %4431  ;;  %4443 = vtanh.f32 %v2030_v44 }
 0x4da   : > { %v4434_v52 = vpop.eup %4433 }
 0x4db   : > { %v4436_v7 = vpop.eup %4435  ;;  %v2033_v45 = vpop.f32.mrb[76].mxu0  ;;  %v2116_v37 = vpack.c.bf16 %v4434_v52, %v4430_v12 }
 0x4dc   : > { %v2034_v35 = vadd.f32 %v2033_v45, %v5801_v0  ;;  %v2035_v60 = vpop.f32.mrb[77].mxu0  ;;  %v2117_v11 = vpack.c.bf16 %v4436_v7, %v4432_v1 }
 0x4dd   : > { %v2036_v13 = vadd.f32 %v2035_v60, %v5804_v40  ;;  %v2037_v47 = vpop.f32.mrb[78].mxu0 }
 0x4de   : > { %4445 = vtanh.f32 %v2034_v35  ;;  %v2038_v39 = vadd.f32 %v2037_v47, %v5801_v0  ;;  %v2039_v2 = vpop.f32.mrb[79].mxu0  ;;  %2343 = vmatprep.mubr.bf16.mxu1 %v2117_v11 }
 0x4df   : > { %4447 = vtanh.f32 %v2036_v13  ;;  %v2040_v54 = vadd.f32 %v2039_v2, %v5804_v40  ;;  %2344 = vmatmul.mubr.bf16.gmra.mrb[68].mxu1 %v2116_v37 }
 0x4e0   : > { %v4438_v27 = vpop.eup %4437  ;;  %4449 = vtanh.f32 %v2038_v39 }
 0x4e1   : > { %v4440_v46 = vpop.eup %4439  ;;  %4451 = vtanh.f32 %v2040_v54 }
 0x4e2   : > { %v4442_v44 = vpop.eup %4441 }
 0x4e3   : > { %v4444_v12 = vpop.eup %4443  ;;  %v2043_v52 = vpop.f32.mrb[80].mxu0  ;;  %v2118_v1 = vpack.c.bf16 %v4442_v44, %v4438_v27 }
 0x4e4   : > { %v2044_v7 = vadd.f32 %v2043_v52, %v5801_v0  ;;  %v2045_v45 = vpop.f32.mrb[81].mxu0  ;;  %v2119_v35 = vpack.c.bf16 %v4444_v12, %v4440_v46 }
 0x4e5   : > { %v2046_v47 = vadd.f32 %v2045_v45, %v5804_v40  ;;  %v2047_v60 = vpop.f32.mrb[82].mxu0 }
 0x4e6   : > { %4453 = vtanh.f32 %v2044_v7  ;;  %v2048_v11 = vadd.f32 %v2047_v60, %v5801_v0  ;;  %v2049_v13 = vpop.f32.mrb[83].mxu0  ;;  %2353 = vmatprep.mubr.bf16.mxu1 %v2119_v35 }
 0x4e7   : > { %4455 = vtanh.f32 %v2046_v47  ;;  %v2050_v37 = vadd.f32 %v2049_v13, %v5804_v40  ;;  %2354 = vmatmul.mubr.bf16.gmra.mrb[72].mxu1 %v2118_v1 }
 0x4e8   : > { %v4446_v39 = vpop.eup %4445  ;;  %4457 = vtanh.f32 %v2048_v11 }
 0x4e9   : > { %v4448_v2 = vpop.eup %4447  ;;  %4459 = vtanh.f32 %v2050_v37 }
 0x4ea   : > { %v4450_v54 = vpop.eup %4449 }
 0x4eb   : > { %v4452_v27 = vpop.eup %4451  ;;  %v2053_v44 = vpop.f32.mrb[84].mxu0  ;;  %v2120_v46 = vpack.c.bf16 %v4450_v54, %v4446_v39 }
 0x4ec   : > { %v2054_v12 = vadd.f32 %v2053_v44, %v5801_v0  ;;  %v2055_v52 = vpop.f32.mrb[85].mxu0  ;;  %v2121_v7 = vpack.c.bf16 %v4452_v27, %v4448_v2 }
 0x4ed   : > { %v2056_v45 = vadd.f32 %v2055_v52, %v5804_v40  ;;  %v2057_v60 = vpop.f32.mrb[86].mxu0 }
 0x4ee   : > { %4461 = vtanh.f32 %v2054_v12  ;;  %v2058_v35 = vadd.f32 %v2057_v60, %v5801_v0  ;;  %v2059_v47 = vpop.f32.mrb[87].mxu0  ;;  %2363 = vmatprep.mubr.bf16.mxu1 %v2121_v7 }
 0x4ef   : > { %4463 = vtanh.f32 %v2056_v45  ;;  %v2060_v1 = vadd.f32 %v2059_v47, %v5804_v40  ;;  %2364 = vmatmul.mubr.bf16.gmra.mrb[76].mxu1 %v2120_v46 }
 0x4f0   : > { %v4454_v11 = vpop.eup %4453  ;;  %4465 = vtanh.f32 %v2058_v35 }
 0x4f1   : > { %v4456_v13 = vpop.eup %4455  ;;  %4467 = vtanh.f32 %v2060_v1 }
 0x4f2   : > { %v4458_v37 = vpop.eup %4457 }
 0x4f3   : > { %v4460_v39 = vpop.eup %4459  ;;  %v2063_v54 = vpop.f32.mrb[88].mxu0  ;;  %v2122_v2 = vpack.c.bf16 %v4458_v37, %v4454_v11 }
 0x4f4   : > { %v2064_v27 = vadd.f32 %v2063_v54, %v5801_v0  ;;  %v2065_v44 = vpop.f32.mrb[89].mxu0  ;;  %v2123_v12 = vpack.c.bf16 %v4460_v39, %v4456_v13 }
 0x4f5   : > { %v2066_v52 = vadd.f32 %v2065_v44, %v5804_v40  ;;  %v2067_v60 = vpop.f32.mrb[90].mxu0 }
 0x4f6   : > { %4469 = vtanh.f32 %v2064_v27  ;;  %v2068_v7 = vadd.f32 %v2067_v60, %v5801_v0  ;;  %v2069_v45 = vpop.f32.mrb[91].mxu0  ;;  %2373 = vmatprep.mubr.bf16.mxu1 %v2123_v12 }
 0x4f7   : > { %4471 = vtanh.f32 %v2066_v52  ;;  %v2070_v46 = vadd.f32 %v2069_v45, %v5804_v40  ;;  %2374 = vmatmul.mubr.bf16.gmra.mrb[80].mxu1 %v2122_v2 }
 0x4f8   : > { %v4462_v35 = vpop.eup %4461  ;;  %4473 = vtanh.f32 %v2068_v7 }
 0x4f9   : > { %v4464_v47 = vpop.eup %4463  ;;  %4475 = vtanh.f32 %v2070_v46 }
 0x4fa   : > { %v4466_v1 = vpop.eup %4465 }
 0x4fb   : > { %v4468_v11 = vpop.eup %4467  ;;  %v2073_v37 = vpop.f32.mrb[92].mxu0  ;;  %v2124_v13 = vpack.c.bf16 %v4466_v1, %v4462_v35 }
 0x4fc   : > { %v2074_v39 = vadd.f32 %v2073_v37, %v5801_v0  ;;  %v2075_v54 = vpop.f32.mrb[93].mxu0  ;;  %v2125_v27 = vpack.c.bf16 %v4468_v11, %v4464_v47 }
 0x4fd   : > { %v2076_v44 = vadd.f32 %v2075_v54, %v5804_v40  ;;  %v2077_v60 = vpop.f32.mrb[94].mxu0 }
 0x4fe   : > { %4477 = vtanh.f32 %v2074_v39  ;;  %v2078_v12 = vadd.f32 %v2077_v60, %v5801_v0  ;;  %v2079_v52 = vpop.f32.mrb[95].mxu0  ;;  %2383 = vmatprep.mubr.bf16.mxu1 %v2125_v27  ;;  %v4108_v60 = vld [vmem:[%s6365_s2 + $0x1d0] ss:$8 sps:$4 sm:$0xff]  }
 0x4ff   : > { %4479 = vtanh.f32 %v2076_v44  ;;  %v2080_v2 = vadd.f32 %v2079_v52, %v5804_v40  ;;  %2384 = vmatmul.mubr.bf16.gmra.mrb[84].mxu1 %v2124_v13  ;;  %v4107_v40 = vld [vmem:[%s6365_s2 + $0x1c4] ss:$8 sps:$4 sm:$0xff]   ;;  %v4105_v13 = vld [vmem:[%s6365_s2 + $0x1c0] ss:$8 sps:$4 sm:$0xff]   ;;  %v4110_v44 = vld [vmem:[%s6365_s2 + $0x1d4] ss:$8 sps:$4 sm:$0xff]  }
 0x500   : > { %v4470_v7 = vpop.eup %4469  ;;  %4481 = vtanh.f32 %v2078_v12  ;;  %2703 = vmatprep.subr.bf16.mxu0 %v4107_v40  ;;  %v4113_v12 = vld [vmem:[%s6365_s2 + $0x1e4] ss:$8 sps:$4 sm:$0xff]   ;;  %v4111_v52 = vld [vmem:[%s6365_s2 + $0x1e0] ss:$8 sps:$4 sm:$0xff]  }
 0x501   : > { %v4472_v45 = vpop.eup %4471  ;;  %4483 = vtanh.f32 %v2080_v2  ;;  %2704 = vmatpush1.bf16.msra.mxu0 %v4105_v13  ;;  %v4116_v2 = vld [vmem:[%s6365_s2 + $0x1f4] ss:$8 sps:$4 sm:$0xff]  }
 0x502   : > { %v4474_v46 = vpop.eup %4473  ;;  %2705 = vmatprep.subr.bf16.mxu0 %v4110_v44 }
 0x503   : > { %v4476_v35 = vpop.eup %4475  ;;  %v2126_v1 = vpack.c.bf16 %v4474_v46, %v4470_v7  ;;  %v4114_v7 = vld [vmem:[%s6365_s2 + $0x1f0] ss:$8 sps:$4 sm:$0xff]  }
 0x504   : > { %v2127_v47 = vpack.c.bf16 %v4476_v35, %v4472_v45  ;;  %v3647_v45 = vld [vmem:[%s6368_s5 + $0x4] sm:$0x3] }
 0x505   : > { %2706 = vmatpush1.bf16.msra.mxu0 %v4108_v60  ;;  %v5866_v46 = vrot.slane %v3647_v45, %v5051_v20 }
 0x506   : > { %2393 = vmatprep.mubr.bf16.mxu1 %v2127_v47  ;;  %2707 = vmatprep.subr.bf16.mxu0 %v4113_v12 }
 0x507   : > { %2394 = vmatmul.mubr.bf16.gmra.mrb[88].mxu1 %v2126_v1 }
 0x508   : > { %v4478_v11 = vpop.eup %4477 }
 0x509   : > { %v4480_v37 = vpop.eup %4479  ;;  %2708 = vmatpush1.bf16.msra.mxu0 %v4111_v52 }
 0x50a   : > { %v4482_v39 = vpop.eup %4481  ;;  %2709 = vmatprep.subr.bf16.mxu0 %v4116_v2 }
 0x50b   : > { %v4484_v0 = vpop.eup %4483  ;;  %v2128_v54 = vpack.c.bf16 %v4482_v39, %v4478_v11 }
 0x50c   : > { %v2129_v27 = vpack.c.bf16 %v4484_v0, %v4480_v37 }
 0x50d   : > { %2710 = vmatpush1.bf16.msra.mxu0 %v4114_v7 }
 0x50e   : > { %2403 = vmatprep.mubr.bf16.mxu1 %v2129_v27 }
 0x50f   : > { %2404 = vmatmul.mubr.bf16.gmra.mrb[92].mxu1 %v2128_v54 }
 0x5aa   : > { %v2335_v35 = vpop.f32.mrb[64].mxu1 }
 0x5ab   : > { %v2336_v1 = vadd.f32 %v2335_v35, %v5866_v46  ;;  %v2337_v47 = vpop.f32.mrb[65].mxu1 }
 0x5ac   : > { %v2339_v11 = vpop.f32.mrb[66].mxu1 }
 0x5ad   : > { %4485 = vtanh.f32 %v2336_v1  ;;  %v2340_v37 = vadd.f32 %v2339_v11, %v5866_v46  ;;  %v2341_v39 = vpop.f32.mrb[67].mxu1 }
 0x5af   : > { %4487 = vtanh.f32 %v2340_v37 }
 0x5b2   : > { %v2345_v0 = vpop.f32.mrb[68].mxu1 }
 0x5b3   : > { %v2346_v54 = vadd.f32 %v2345_v0, %v5866_v46  ;;  %v5871_v27 = vpop.f32.mrb[69].mxu1 }
 0x5b4   : > { %v2349_v40 = vpop.f32.mrb[70].mxu1 }
 0x5b5   : > { %4489 = vtanh.f32 %v2346_v54  ;;  %v2350_v13 = vadd.f32 %v2349_v40, %v5866_v46  ;;  %v5874_v44 = vpop.f32.mrb[71].mxu1 }
 0x5b7   : > { %v4486_v60 = vpop.eup %4485  ;;  %4491 = vtanh.f32 %v2350_v13 }
 0x5b8   : > { %v2430_v12 = vmul.f32 1.442695, %v4486_v60  ;;  %2494 = vadd.xlane.f32.xlu0 %v4486_v60  ;;  %v5884_v60 = vrot.slane %v3647_v45, %v5056_v22 }
 0x5b9   : > { %v4488_v52 = vpop.eup %4487 }
 0x5ba   : > { %4493 = vpow2.f32 %v2430_v12  ;;  %v2432_v2 = vmul.f32 1.442695, %v4488_v52  ;;  %v2355_v7 = vpop.f32.mrb[72].mxu1  ;;  %2496 = vadd.xlane.f32.xlu1 %v4488_v52  ;;  %v2342_v30 = vadd.f32 %v2341_v39, %v5884_v60 }
 0x5bb   : > { %v2356_v35 = vadd.f32 %v2355_v7, %v5866_v46  ;;  %v5877_v1 = vpop.f32.mrb[73].mxu1 }
 0x5bc   : > { %4495 = vpow2.f32 %v2432_v2  ;;  %v2359_v11 = vpop.f32.mrb[74].mxu1 }
 0x5bd   : > { %4497 = vtanh.f32 %v2356_v35  ;;  %v2360_v37 = vadd.f32 %v2359_v11, %v5866_v46  ;;  %v5880_v0 = vpop.f32.mrb[75].mxu1 }
 0x5bf   : > { %v4490_v54 = vpop.eup %4489  ;;  %4499 = vtanh.f32 %v2360_v37  ;;  %v2338_v37 = vadd.f32 %v2337_v47, %v5884_v60 }
 0x5c0   : > { %v2434_v40 = vmul.f32 1.442695, %v4490_v54  ;;  %2498 = vadd.xlane.f32.xlu0 %v4490_v54 }
 0x5c1   : > { %v4492_v13 = vpop.eup %4491 }
 0x5c2   : > { %4501 = vpow2.f32 %v2434_v40  ;;  %v2436_v12 = vmul.f32 1.442695, %v4492_v13  ;;  %v2365_v52 = vpop.f32.mrb[76].mxu1  ;;  %2500 = vadd.xlane.f32.xlu1 %v4492_v13 }
 0x5c3   : > { %v2366_v2 = vadd.f32 %v2365_v52, %v5866_v46  ;;  %v5889_v7 = vpop.f32.mrb[77].mxu1 }
 0x5c4   : > { %v4494_v35 = vpop.eup %4493  ;;  %4503 = vpow2.f32 %v2436_v12  ;;  %v2369_v11 = vpop.f32.mrb[78].mxu1 }
 0x5c5   : > { %v2462_v54 = vmul.f32 %v4494_v35, %v5152_v4  ;;  %4505 = vtanh.f32 %v2366_v2  ;;  %v2370_v45 = vadd.f32 %v2369_v11, %v5866_v46  ;;  %v5894_v40 = vpop.f32.mrb[79].mxu1 }
 0x5c6   : > { %v4496_v32 = vpop.eup %4495 }
 0x5c7   : > { %v4498_v13 = vpop.eup %4497  ;;  %v2478_v16 = vadd.f32 %v2462_v54, %v2338_v37  ;;  %v2463_v52 = vmul.f32 %v4496_v32, %v5155_v9  ;;  %4507 = vtanh.f32 %v2370_v45  ;;  %v2348_v37 = vadd.f32 %v5871_v27, %v5884_v60 }
 0x5c8   : > { %v2438_v59 = vmul.f32 1.442695, %v4498_v13  ;;  %2502 = vadd.xlane.f32.xlu0 %v4498_v13  ;;  %v6386_v45 = vmov 0  }
 0x5c9   : > { %v4500_v12 = vpop.eup %4499  ;;  %3284 = vst [vmem:[%s5898_s14 + $0x8] sm:$0xff] %v2478_v16  ;;  %v2479_v4 = vadd.f32 %v2463_v52, %v2342_v30 }
 0x5ca   : > { %4509 = vpow2.f32 %v2438_v59  ;;  %v2440_v47 = vmul.f32 1.442695, %v4500_v12  ;;  %v2375_v2 = vpop.f32.mrb[80].mxu1  ;;  %2504 = vadd.xlane.f32.xlu1 %v4500_v12  ;;  %v2352_v12 = vadd.f32 %v5874_v44, %v5884_v60 }
 0x5cb   : > { %v2596_v35 = vpack.c.bf16 %v2479_v4, %v2478_v16  ;;  %3285 = vst [vmem:[%s5898_s14 + $0x18] sm:$0xff] %v2479_v4  ;;  %v2376_v39 = vadd.f32 %v2375_v2, %v5866_v46  ;;  %v5903_v11 = vpop.f32.mrb[81].mxu1 }
 0x5cc   : > { %v4502_v9 = vpop.eup %4501  ;;  %4511 = vpow2.f32 %v2440_v47  ;;  %v2379_v32 = vpop.f32.mrb[82].mxu1 }
 0x5cd   : > { %v2464_v54 = vmul.f32 %v4502_v9, %v5170_v28  ;;  %4513 = vtanh.f32 %v2376_v39  ;;  %v2380_v59 = vadd.f32 %v2379_v32, %v5866_v46  ;;  %v5909_v30 = vpop.f32.mrb[83].mxu1  ;;  %2728 = vmatmul.mubr.bf16.vlgmr.msra.gmra.mrb[96].mxu0 %v2596_v35 }
 0x5ce   : > { %v4504_v16 = vpop.eup %4503  ;;  %2737 = vmatprep.mubr.bf16.mxu0 %v6386_v45 }
 0x5cf   : > { %v4506_v13 = vpop.eup %4505  ;;  %v2480_v52 = vadd.f32 %v2464_v54, %v2348_v37  ;;  %v2465_v27 = vmul.f32 %v4504_v16, %v5174_v33  ;;  %4515 = vtanh.f32 %v2380_v59  ;;  %v2358_v33 = vadd.f32 %v5877_v1, %v5884_v60 }
 0x5d0   : > { %v2442_v4 = vmul.f32 1.442695, %v4506_v13  ;;  %2506 = vadd.xlane.f32.xlu0 %v4506_v13 }
 0x5d1   : > { %v4508_v28 = vpop.eup %4507  ;;  %3286 = vst [vmem:[%s5898_s14 + $0x28] sm:$0xff] %v2480_v52  ;;  %v2481_v47 = vadd.f32 %v2465_v27, %v2352_v12  ;;  %v2362_v27 = vadd.f32 %v5880_v0, %v5884_v60 }
 0x5d2   : > { %4517 = vpow2.f32 %v2442_v4  ;;  %v2444_v2 = vmul.f32 1.442695, %v4508_v28  ;;  %v2385_v35 = vpop.f32.mrb[84].mxu1  ;;  %2508 = vadd.xlane.f32.xlu1 %v4508_v28 }
 0x5d3   : > { %3287 = vst [vmem:[%s5898_s14 + $0x38] sm:$0xff] %v2481_v47  ;;  %v2386_v39 = vadd.f32 %v2385_v35, %v5866_v46  ;;  %v5918_v9 = vpop.f32.mrb[85].mxu1  ;;  %v2597_v32 = vpack.c.bf16 %v2481_v47, %v2480_v52 }
 0x5d4   : > { %v4510_v37 = vpop.eup %4509  ;;  %4519 = vpow2.f32 %v2444_v2  ;;  %v2389_v44 = vpop.f32.mrb[86].mxu1 }
 0x5d5   : > { %v2466_v54 = vmul.f32 %v4510_v37, %v5189_v51  ;;  %4521 = vtanh.f32 %v2386_v39  ;;  %v2390_v59 = vadd.f32 %v2389_v44, %v5866_v46  ;;  %v5924_v16 = vpop.f32.mrb[87].mxu1  ;;  %2738 = vmatmul.mubr.bf16.gmra.mrb[100].mxu0 %v2597_v32 }
 0x5d6   : > { %v4512_v13 = vpop.eup %4511  ;;  %2747 = vmatprep.mubr.bf16.mxu0 %v6386_v45 }
 0x5d7   : > { %v4514_v52 = vpop.eup %4513  ;;  %v2482_v12 = vadd.f32 %v2466_v54, %v2358_v33  ;;  %v2467_v1 = vmul.f32 %v4512_v13, %v5193_v56  ;;  %4523 = vtanh.f32 %v2390_v59  ;;  %v2368_v56 = vadd.f32 %v5889_v7, %v5884_v60 }
 0x5d8   : > { %v2446_v4 = vmul.f32 1.442695, %v4514_v52  ;;  %2510 = vadd.xlane.f32.xlu0 %v4514_v52 }
 0x5d9   : > { %v4516_v51 = vpop.eup %4515  ;;  %3288 = vst [vmem:[%s5898_s14 + $0x48] sm:$0xff] %v2482_v12  ;;  %v2483_v28 = vadd.f32 %v2467_v1, %v2362_v27 }
 0x5da   : > { %4525 = vpow2.f32 %v2446_v4  ;;  %v2448_v47 = vmul.f32 1.442695, %v4516_v51  ;;  %v2395_v2 = vpop.f32.mrb[88].mxu1  ;;  %2512 = vadd.xlane.f32.xlu1 %v4516_v51 }
 0x5db   : > { %3289 = vst [vmem:[%s5898_s14 + $0x58] sm:$0xff] %v2483_v28  ;;  %v2396_v35 = vadd.f32 %v2395_v2, %v5866_v46  ;;  %v5933_v39 = vpop.f32.mrb[89].mxu1  ;;  %v2598_v32 = vpack.c.bf16 %v2483_v28, %v2482_v12  ;;  %v2372_v12 = vadd.f32 %v5894_v40, %v5884_v60 }
 0x5dc   : > { %v4518_v37 = vpop.eup %4517  ;;  %4527 = vpow2.f32 %v2448_v47  ;;  %v2399_v0 = vpop.f32.mrb[90].mxu1 }
 0x5dd   : > { %v2468_v44 = vmul.f32 %v4518_v37, %v5208_v23  ;;  %4529 = vtanh.f32 %v2396_v35  ;;  %v2400_v33 = vadd.f32 %v2399_v0, %v5866_v46  ;;  %v5939_v54 = vpop.f32.mrb[91].mxu1  ;;  %2748 = vmatmul.mubr.bf16.gmra.mrb[104].mxu0 %v2598_v32 }
 0x5de   : > { %v4520_v59 = vpop.eup %4519  ;;  %2757 = vmatprep.mubr.bf16.mxu0 %v6386_v45 }
 0x5df   : > { %v4522_v13 = vpop.eup %4521  ;;  %v2484_v52 = vadd.f32 %v2468_v44, %v2368_v56  ;;  %v2469_v7 = vmul.f32 %v4520_v59, %v5212_v15  ;;  %4531 = vtanh.f32 %v2400_v33  ;;  %v2378_v15 = vadd.f32 %v5903_v11, %v5884_v60 }
 0x5e0   : > { %v2450_v27 = vmul.f32 1.442695, %v4522_v13  ;;  %2514 = vadd.xlane.f32.xlu0 %v4522_v13  ;;  %v2382_v59 = vadd.f32 %v5909_v30, %v5884_v60 }
 0x5e1   : > { %v4524_v23 = vpop.eup %4523  ;;  %3290 = vst [vmem:[%s5898_s14 + $0x68] sm:$0xff] %v2484_v52  ;;  %v2485_v1 = vadd.f32 %v2469_v7, %v2372_v12 }
 0x5e2   : > { %4533 = vpow2.f32 %v2450_v27  ;;  %v2452_v4 = vmul.f32 1.442695, %v4524_v23  ;;  %v2405_v51 = vpop.f32.mrb[92].mxu1  ;;  %2516 = vadd.xlane.f32.xlu1 %v4524_v23  ;;  %v2388_v27 = vadd.f32 %v5918_v9, %v5884_v60  ;;  %v4117_v9 = vld [vmem:[%s6367_s4 + $0x300] ss:$8 sps:$4 sm:$0xff]  }
 0x5e3   : > { %3291 = vst [vmem:[%s5898_s14 + $0x78] sm:$0xff] %v2485_v1  ;;  %v2406_v28 = vadd.f32 %v2405_v51, %v5866_v46  ;;  %v5948_v47 = vpop.f32.mrb[93].mxu1  ;;  %v2599_v2 = vpack.c.bf16 %v2485_v1, %v2484_v52 }
 0x5e4   : > { %v4526_v35 = vpop.eup %4525  ;;  %4535 = vpow2.f32 %v2452_v4  ;;  %v2409_v40 = vpop.f32.mrb[94].mxu1  ;;  %v2392_v4 = vadd.f32 %v5924_v16, %v5884_v60 }
 0x5e5   : > { %v2470_v32 = vmul.f32 %v4526_v35, %v5227_v38  ;;  %4537 = vtanh.f32 %v2406_v28  ;;  %v2410_v37 = vadd.f32 %v2409_v40, %v5866_v46  ;;  %v5954_v0 = vpop.f32.mrb[95].mxu1  ;;  %2758 = vmatmul.mubr.bf16.gmra.mrb[108].mxu0 %v2599_v2 }
 0x5e6   : > { %v4528_v56 = vpop.eup %4527  ;;  %2767 = vmatprep.mubr.bf16.mxu0 %v6386_v45 }
 0x5e7   : > { %v4530_v44 = vpop.eup %4529  ;;  %v2486_v33 = vadd.f32 %v2470_v32, %v2378_v15  ;;  %v2471_v11 = vmul.f32 %v4528_v56, %v5231_v43  ;;  %4539 = vtanh.f32 %v2410_v37  ;;  %v2398_v15 = vadd.f32 %v5933_v39, %v5884_v60  ;;  %v4122_v56 = vld [vmem:[%s6367_s4 + $0x314] ss:$8 sps:$4 sm:$0xff]   ;;  %v4120_v39 = vld [vmem:[%s6367_s4 + $0x310] ss:$8 sps:$4 sm:$0xff]  }
 0x5e8   : > { %v2454_v13 = vmul.f32 1.442695, %v4530_v44  ;;  %2518 = vadd.xlane.f32.xlu0 %v4530_v44 }
 0x5e9   : > { %v4532_v38 = vpop.eup %4531  ;;  %3292 = vst [vmem:[%s5898_s14 + $0x88] sm:$0xff] %v2486_v33  ;;  %v2487_v46 = vadd.f32 %v2471_v11, %v2382_v59 }
 0x5ea   : > { %4541 = vpow2.f32 %v2454_v13  ;;  %v2456_v52 = vmul.f32 1.442695, %v4532_v38  ;;  %2520 = vadd.xlane.f32.xlu1 %v4532_v38  ;;  %v2408_v38 = vadd.f32 %v5948_v47, %v5884_v60 }
 0x5eb   : > { %3293 = vst [vmem:[%s5898_s14 + $0x98] sm:$0xff] %v2487_v46  ;;  %v2600_v12 = vpack.c.bf16 %v2487_v46, %v2486_v33  ;;  %v2402_v33 = vadd.f32 %v5939_v54, %v5884_v60  ;;  %v4123_v54 = vld [vmem:[%s6367_s4 + $0x320] ss:$8 sps:$4 sm:$0xff]  }
 0x5ec   : > { %v4534_v7 = vpop.eup %4533  ;;  %4543 = vpow2.f32 %v2456_v52 }
 0x5ed   : > { %v2472_v30 = vmul.f32 %v4534_v7, %v5240_v55  ;;  %2768 = vmatmul.mubr.bf16.gmra.mrb[112].mxu0 %v2600_v12  ;;  %v4119_v55 = vld [vmem:[%s6367_s4 + $0x304] ss:$8 sps:$4 sm:$0xff]   ;;  %v4128_v12 = vld [vmem:[%s6367_s4 + $0x334] ss:$8 sps:$4 sm:$0xff]  }
 0x5ee   : > { %v4536_v43 = vpop.eup %4535  ;;  %2777 = vmatprep.mubr.bf16.mxu0 %v6386_v45  ;;  %3027 = vmatprep.subr.bf16.mxu0 %v4119_v55 }
 0x5ef   : > { %v4538_v23 = vpop.eup %4537  ;;  %v2488_v1 = vadd.f32 %v2472_v30, %v2388_v27  ;;  %v2473_v51 = vmul.f32 %v4536_v43, %v5250_v63  ;;  %3028 = vmatpush1.bf16.msra.mxu0 %v4117_v9  ;;  %3803 = vmatprep.subr.bf16.mxu1 %v4119_v55  ;;  %v2412_v27 = vadd.f32 %v5954_v0, %v5884_v60  ;;  %v4129_v60 = vld [vmem:[%s6367_s4 + $0x340] ss:$8 sps:$4 sm:$0xff]   ;;  %v4134_v0 = vld [vmem:[%s6367_s4 + $0x354] ss:$8 sps:$4 sm:$0xff]   ;;  %v4132_v43 = vld [vmem:[%s6367_s4 + $0x350] ss:$8 sps:$4 sm:$0xff]  }
 0x5f0   : > { %v2458_v28 = vmul.f32 1.442695, %v4538_v23  ;;  %2522 = vadd.xlane.f32.xlu0 %v4538_v23  ;;  %3819 = vmatpush1.bf16.msra.mxu1 %v4117_v9  ;;  %v4137_v23 = vld [vmem:[%s6367_s4 + $0x364] ss:$8 sps:$4 sm:$0xff]   ;;  %v4141_v9 = vld [vmem:[%s6367_s4 + $0x380] ss:$8 sps:$4 sm:$0xff]  }
 0x5f1   : > { %v4540_v2 = vpop.eup %4539  ;;  %3294 = vst [vmem:[%s5898_s14 + $0xa8] sm:$0xff] %v2488_v1  ;;  %v2489_v35 = vadd.f32 %v2473_v51, %v2392_v4  ;;  %3029 = vmatprep.subr.bf16.mxu0 %v4122_v56  ;;  %3804 = vmatprep.subr.bf16.mxu1 %v4122_v56  ;;  %v4140_v4 = vld [vmem:[%s6367_s4 + $0x374] ss:$8 sps:$4 sm:$0xff]   ;;  %v4138_v51 = vld [vmem:[%s6367_s4 + $0x370] ss:$8 sps:$4 sm:$0xff]  }
 0x5f2   : > { %4545 = vpow2.f32 %v2458_v28  ;;  %v2460_v40 = vmul.f32 1.442695, %v4540_v2  ;;  %2524 = vadd.xlane.f32.xlu1 %v4540_v2  ;;  %v4143_v28 = vld [vmem:[%s6367_s4 + $0x384] ss:$8 sps:$4 sm:$0xff]   ;;  %v4146_v55 = vld [vmem:[%s6367_s4 + $0x394] ss:$8 sps:$4 sm:$0xff]  }
 0x5f3   : > { %3295 = vst [vmem:[%s5898_s14 + $0xb8] sm:$0xff] %v2489_v35  ;;  %v2601_v16 = vpack.c.bf16 %v2489_v35, %v2488_v1  ;;  %3030 = vmatpush1.bf16.msra.mxu0 %v4120_v39  ;;  %v4135_v1 = vld [vmem:[%s6367_s4 + $0x360] ss:$8 sps:$4 sm:$0xff]   ;;  %v4144_v2 = vld [vmem:[%s6367_s4 + $0x390] ss:$8 sps:$4 sm:$0xff]  }
 0x5f4   : > { %v4542_v63 = vpop.eup %4541  ;;  %4547 = vpow2.f32 %v2460_v40  ;;  %3820 = vmatpush1.bf16.msra.mxu1 %v4120_v39  ;;  %v4149_v35 = vld [vmem:[%s6367_s4 + $0x3a4] ss:$8 sps:$4 sm:$0xff]   ;;  %v4147_v40 = vld [vmem:[%s6367_s4 + $0x3a0] ss:$8 sps:$4 sm:$0xff]   ;;  %v4156_v56 = vld [vmem:[%s6367_s4 + $0x3d0] ss:$8 sps:$4 sm:$0xff]  }
 0x5f5   : > { %v2474_v32 = vmul.f32 %v4542_v63, %v5265_v57  ;;  %2778 = vmatmul.mubr.bf16.gmra.mrb[116].mxu0 %v2601_v16  ;;  %v4125_v57 = vld [vmem:[%s6367_s4 + $0x324] ss:$8 sps:$4 sm:$0xff]   ;;  %v4152_v16 = vld [vmem:[%s6367_s4 + $0x3b4] ss:$8 sps:$4 sm:$0xff]   ;;  %v4150_v63 = vld [vmem:[%s6367_s4 + $0x3b0] ss:$8 sps:$4 sm:$0xff]  }
 0x5f6   : > { %v4544_v37 = vpop.eup %4543  ;;  %2787 = vmatprep.mubr.bf16.mxu0 %v6386_v45  ;;  %3031 = vmatprep.subr.bf16.mxu0 %v4125_v57  ;;  %v4162_v39 = vld [vmem:[%s6367_s4 + $0x3f0] ss:$8 sps:$4 sm:$0xff]  }
 0x5f7   : > { %v2490_v44 = vadd.f32 %v2474_v32, %v2398_v15  ;;  %v2475_v59 = vmul.f32 %v4544_v37, %v5272_v17  ;;  %3805 = vmatprep.subr.bf16.mxu1 %v4125_v57  ;;  %3032 = vmatpush1.bf16.msra.mxu0 %v4123_v54  ;;  %v4155_v15 = vld [vmem:[%s6367_s4 + $0x3c4] ss:$8 sps:$4 sm:$0xff]   ;;  %v4153_v32 = vld [vmem:[%s6367_s4 + $0x3c0] ss:$8 sps:$4 sm:$0xff]   ;;  %v4158_v37 = vld [vmem:[%s6367_s4 + $0x3d4] ss:$8 sps:$4 sm:$0xff]  }
 0x5f8   : > { %3821 = vmatpush1.bf16.msra.mxu1 %v4123_v54  ;;  %3033 = vmatprep.subr.bf16.mxu0 %v4128_v12  ;;  %v3712_v57 = vld [vmem:[%s6366_s3 + $0x6] sm:$0x3] }
 0x5f9   : > { %3296 = vst [vmem:[%s5898_s14 + $0xc8] sm:$0xff] %v2490_v44  ;;  %v2491_v11 = vadd.f32 %v2475_v59, %v2402_v33  ;;  %3806 = vmatprep.subr.bf16.mxu1 %v4128_v12  ;;  %v4159_v33 = vld [vmem:[%s6367_s4 + $0x3e0] ss:$8 sps:$4 sm:$0xff]   ;;  %v4164_v59 = vld [vmem:[%s6367_s4 + $0x3f4] ss:$8 sps:$4 sm:$0xff]   ;;  %v6092_v54 = vrot.slane %v3712_v57, %v5056_v22 }
 0x5fb   : > { %3297 = vst [vmem:[%s5898_s14 + $0xd8] sm:$0xff] %v2491_v11  ;;  %v2602_v17 = vpack.c.bf16 %v2491_v11, %v2490_v44  ;;  %v4161_v44 = vld [vmem:[%s6367_s4 + $0x3e4] ss:$8 sps:$4 sm:$0xff]   ;;  %v6089_v11 = vrot.slane %v3712_v57, %v5051_v20 }
 0x5fc   : > { %v4546_v13 = vpop.eup %4545 }
 0x5fd   : > { %v2476_v46 = vmul.f32 %v4546_v13, %v5290_v36  ;;  %2788 = vmatmul.mubr.bf16.gmra.mrb[120].mxu0 %v2602_v17  ;;  %v4126_v36 = vld [vmem:[%s6367_s4 + $0x330] ss:$8 sps:$4 sm:$0xff]  }
 0x5fe   : > { %v4548_v52 = vpop.eup %4547  ;;  %2797 = vmatprep.mubr.bf16.mxu0 %v6386_v45  ;;  %v4131_v45 = vld [vmem:[%s6367_s4 + $0x344] ss:$8 sps:$4 sm:$0xff]   ;;  %3822 = vmatpush1.bf16.msra.mxu1 %v4126_v36 }
 0x5ff   : > { %v2492_v7 = vadd.f32 %v2476_v46, %v2408_v38  ;;  %v2477_v30 = vmul.f32 %v4548_v52, %v5297_v41  ;;  %3034 = vmatpush1.bf16.msra.mxu0 %v4126_v36  ;;  %3807 = vmatprep.subr.bf16.mxu1 %v4131_v45 }
 0x600   : > { %3035 = vmatprep.subr.bf16.mxu0 %v4131_v45 }
 0x601   : > { %3298 = vst [vmem:[%s5898_s14 + $0xe8] sm:$0xff] %v2492_v7  ;;  %v2493_v47 = vadd.f32 %v2477_v30, %v2412_v27 }
 0x602   : > { %3823 = vmatpush1.bf16.msra.mxu1 %v4129_v60 }
 0x603   : > { %3299 = vst [vmem:[%s5898_s14 + $0xf8] sm:$0xff] %v2493_v47  ;;  %v2603_v41 = vpack.c.bf16 %v2493_v47, %v2492_v7  ;;  %3036 = vmatpush1.bf16.msra.mxu0 %v4129_v60  ;;  %3808 = vmatprep.subr.bf16.mxu1 %v4134_v0 }
 0x604   : > { %3037 = vmatprep.subr.bf16.mxu0 %v4134_v0 }
 0x605   : > { %2798 = vmatmul.mubr.bf16.gmra.mrb[124].mxu0 %v2603_v41 }
 0x606   : > { %3824 = vmatpush1.bf16.msra.mxu1 %v4132_v43 }
 0x607   : > { %3038 = vmatpush1.bf16.msra.mxu0 %v4132_v43  ;;  %3809 = vmatprep.subr.bf16.mxu1 %v4137_v23 }
 0x608   : > { %3039 = vmatprep.subr.bf16.mxu0 %v4137_v23 }
 0x60a   : > { %3825 = vmatpush1.bf16.msra.mxu1 %v4135_v1 }
 0x60b   : > { %3040 = vmatpush1.bf16.msra.mxu0 %v4135_v1  ;;  %3810 = vmatprep.subr.bf16.mxu1 %v4140_v4 }
 0x60c   : > { %3041 = vmatprep.subr.bf16.mxu0 %v4140_v4 }
 0x60e   : > { %3826 = vmatpush1.bf16.msra.mxu1 %v4138_v51 }
 0x60f   : > { %3042 = vmatpush1.bf16.msra.mxu0 %v4138_v51  ;;  %3811 = vmatprep.subr.bf16.mxu1 %v4143_v28 }
 0x610   : > { %3043 = vmatprep.subr.bf16.mxu0 %v4143_v28 }
 0x612   : > { %3827 = vmatpush1.bf16.msra.mxu1 %v4141_v9 }
 0x613   : > { %3044 = vmatpush1.bf16.msra.mxu0 %v4141_v9  ;;  %3812 = vmatprep.subr.bf16.mxu1 %v4146_v55 }
 0x614   : > { %3045 = vmatprep.subr.bf16.mxu0 %v4146_v55 }
 0x616   : > { %3828 = vmatpush1.bf16.msra.mxu1 %v4144_v2 }
 0x617   : > { %3046 = vmatpush1.bf16.msra.mxu0 %v4144_v2  ;;  %3813 = vmatprep.subr.bf16.mxu1 %v4149_v35 }
 0x618   : > { %3047 = vmatprep.subr.bf16.mxu0 %v4149_v35 }
 0x61a   : > { %3829 = vmatpush1.bf16.msra.mxu1 %v4147_v40 }
 0x61b   : > { %3048 = vmatpush1.bf16.msra.mxu0 %v4147_v40  ;;  %3814 = vmatprep.subr.bf16.mxu1 %v4152_v16 }
 0x61c   : > { %3049 = vmatprep.subr.bf16.mxu0 %v4152_v16 }
 0x61e   : > { %3830 = vmatpush1.bf16.msra.mxu1 %v4150_v63 }
 0x61f   : > { %3050 = vmatpush1.bf16.msra.mxu0 %v4150_v63  ;;  %3815 = vmatprep.subr.bf16.mxu1 %v4155_v15 }
 0x620   : > { %3051 = vmatprep.subr.bf16.mxu0 %v4155_v15 }
 0x622   : > { %3831 = vmatpush1.bf16.msra.mxu1 %v4153_v32 }
 0x623   : > { %3052 = vmatpush1.bf16.msra.mxu0 %v4153_v32  ;;  %3816 = vmatprep.subr.bf16.mxu1 %v4158_v37 }
 0x624   : > { %3053 = vmatprep.subr.bf16.mxu0 %v4158_v37 }
 0x626   : > { %3832 = vmatpush1.bf16.msra.mxu1 %v4156_v56 }
 0x627   : > { %3054 = vmatpush1.bf16.msra.mxu0 %v4156_v56  ;;  %3817 = vmatprep.subr.bf16.mxu1 %v4161_v44 }
 0x628   : > { %3055 = vmatprep.subr.bf16.mxu0 %v4161_v44 }
 0x62a   : > { %3833 = vmatpush1.bf16.msra.mxu1 %v4159_v33 }
 0x62b   : > { %3056 = vmatpush1.bf16.msra.mxu0 %v4159_v33  ;;  %3818 = vmatprep.subr.bf16.mxu1 %v4164_v59 }
 0x62c   : > { %3057 = vmatprep.subr.bf16.mxu0 %v4164_v59 }
 0x62e   : > { %3834 = vmatpush1.bf16.msra.mxu1 %v4162_v39 }
 0x62f   : > { %3058 = vmatpush1.bf16.msra.mxu0 %v4162_v39 }
 0x6a0   : > { %v2729_v17 = vpop.f32.mrb[96].mxu0 }
 0x6a1   : > { %v2730_v13 = vadd.f32 %v2729_v17, %v6089_v11  ;;  %v2731_v38 = vpop.f32.mrb[97].mxu0 }
 0x6a2   : > { %v2732_v46 = vadd.f32 %v2731_v38, %v6092_v54  ;;  %v2733_v52 = vpop.f32.mrb[98].mxu0 }
 0x6a3   : > { %4549 = vtanh.f32 %v2730_v13  ;;  %v2734_v12 = vadd.f32 %v2733_v52, %v6089_v11  ;;  %v2735_v7 = vpop.f32.mrb[99].mxu0 }
 0x6a4   : > { %4551 = vtanh.f32 %v2732_v46  ;;  %v2736_v27 = vadd.f32 %v2735_v7, %v6092_v54 }
 0x6a5   : > { %4553 = vtanh.f32 %v2734_v12 }
 0x6a6   : > { %4555 = vtanh.f32 %v2736_v27 }
 0x6a8   : > { %v2739_v30 = vpop.f32.mrb[100].mxu0 }
 0x6a9   : > { %v2740_v36 = vadd.f32 %v2739_v30, %v6089_v11  ;;  %v2741_v45 = vpop.f32.mrb[101].mxu0 }
 0x6aa   : > { %v2742_v47 = vadd.f32 %v2741_v45, %v6092_v54  ;;  %v2743_v60 = vpop.f32.mrb[102].mxu0 }
 0x6ab   : > { %4557 = vtanh.f32 %v2740_v36  ;;  %v2744_v41 = vadd.f32 %v2743_v60, %v6089_v11  ;;  %v2745_v0 = vpop.f32.mrb[103].mxu0 }
 0x6ac   : > { %4559 = vtanh.f32 %v2742_v47  ;;  %v2746_v43 = vadd.f32 %v2745_v0, %v6092_v54 }
 0x6ad   : > { %v4550_v23 = vpop.eup %4549  ;;  %4561 = vtanh.f32 %v2744_v41 }
 0x6ae   : > { %v4552_v1 = vpop.eup %4551  ;;  %4563 = vtanh.f32 %v2746_v43 }
 0x6af   : > { %v4554_v4 = vpop.eup %4553 }
 0x6b0   : > { %v4556_v51 = vpop.eup %4555  ;;  %v2749_v28 = vpop.f32.mrb[104].mxu0  ;;  %v2840_v9 = vpack.c.bf16 %v4554_v4, %v4550_v23 }
 0x6b1   : > { %v2750_v55 = vadd.f32 %v2749_v28, %v6089_v11  ;;  %v2751_v2 = vpop.f32.mrb[105].mxu0  ;;  %v2841_v35 = vpack.c.bf16 %v4556_v51, %v4552_v1 }
 0x6b2   : > { %v2752_v40 = vadd.f32 %v2751_v2, %v6092_v54  ;;  %v2753_v16 = vpop.f32.mrb[106].mxu0 }
 0x6b3   : > { %4565 = vtanh.f32 %v2750_v55  ;;  %v2754_v63 = vadd.f32 %v2753_v16, %v6089_v11  ;;  %v2755_v15 = vpop.f32.mrb[107].mxu0  ;;  %3059 = vmatprep.mubr.bf16.mxu0 %v2841_v35 }
 0x6b4   : > { %4567 = vtanh.f32 %v2752_v40  ;;  %v2756_v32 = vadd.f32 %v2755_v15, %v6092_v54  ;;  %3060 = vmatmul.mubr.bf16.vlgmr.msra.gmra.mrb[128].mxu0 %v2840_v9 }
 0x6b5   : > { %v4558_v37 = vpop.eup %4557  ;;  %4569 = vtanh.f32 %v2754_v63 }
 0x6b6   : > { %v4560_v56 = vpop.eup %4559  ;;  %4571 = vtanh.f32 %v2756_v32 }
 0x6b7   : > { %v4562_v44 = vpop.eup %4561 }
 0x6b8   : > { %v4564_v33 = vpop.eup %4563  ;;  %v2759_v59 = vpop.f32.mrb[108].mxu0  ;;  %v2842_v39 = vpack.c.bf16 %v4562_v44, %v4558_v37 }
 0x6b9   : > { %v2760_v57 = vadd.f32 %v2759_v59, %v6089_v11  ;;  %v2761_v17 = vpop.f32.mrb[109].mxu0  ;;  %v2843_v13 = vpack.c.bf16 %v4564_v33, %v4560_v56 }
 0x6ba   : > { %v2762_v38 = vadd.f32 %v2761_v17, %v6092_v54  ;;  %v2763_v46 = vpop.f32.mrb[110].mxu0 }
 0x6bb   : > { %4573 = vtanh.f32 %v2760_v57  ;;  %v2764_v52 = vadd.f32 %v2763_v46, %v6089_v11  ;;  %v2765_v12 = vpop.f32.mrb[111].mxu0  ;;  %3069 = vmatprep.mubr.bf16.mxu0 %v2843_v13 }
 0x6bc   : > { %4575 = vtanh.f32 %v2762_v38  ;;  %v2766_v7 = vadd.f32 %v2765_v12, %v6092_v54  ;;  %3070 = vmatmul.mubr.bf16.gmra.mrb[132].mxu0 %v2842_v39 }
 0x6bd   : > { %v4566_v27 = vpop.eup %4565  ;;  %4577 = vtanh.f32 %v2764_v52 }
 0x6be   : > { %v4568_v30 = vpop.eup %4567  ;;  %4579 = vtanh.f32 %v2766_v7 }
 0x6bf   : > { %v4570_v36 = vpop.eup %4569 }
 0x6c0   : > { %v4572_v45 = vpop.eup %4571  ;;  %v2769_v47 = vpop.f32.mrb[112].mxu0  ;;  %v2844_v60 = vpack.c.bf16 %v4570_v36, %v4566_v27 }
 0x6c1   : > { %v2770_v41 = vadd.f32 %v2769_v47, %v6089_v11  ;;  %v2771_v0 = vpop.f32.mrb[113].mxu0  ;;  %v2845_v43 = vpack.c.bf16 %v4572_v45, %v4568_v30 }
 0x6c2   : > { %v2772_v23 = vadd.f32 %v2771_v0, %v6092_v54  ;;  %v2773_v1 = vpop.f32.mrb[114].mxu0 }
 0x6c3   : > { %4581 = vtanh.f32 %v2770_v41  ;;  %v2774_v4 = vadd.f32 %v2773_v1, %v6089_v11  ;;  %v2775_v51 = vpop.f32.mrb[115].mxu0  ;;  %3079 = vmatprep.mubr.bf16.mxu1 %v2845_v43 }
 0x6c4   : > { %4583 = vtanh.f32 %v2772_v23  ;;  %v2776_v28 = vadd.f32 %v2775_v51, %v6092_v54  ;;  %3080 = vmatmul.mubr.bf16.vlgmr.msra.gmra.mrb[96].mxu1 %v2844_v60 }
 0x6c5   : > { %v4574_v9 = vpop.eup %4573  ;;  %4585 = vtanh.f32 %v2774_v4 }
 0x6c6   : > { %v4576_v55 = vpop.eup %4575  ;;  %4587 = vtanh.f32 %v2776_v28 }
 0x6c7   : > { %v4578_v2 = vpop.eup %4577 }
 0x6c8   : > { %v4580_v35 = vpop.eup %4579  ;;  %v2779_v40 = vpop.f32.mrb[116].mxu0  ;;  %v2846_v16 = vpack.c.bf16 %v4578_v2, %v4574_v9 }
 0x6c9   : > { %v2780_v63 = vadd.f32 %v2779_v40, %v6089_v11  ;;  %v2781_v15 = vpop.f32.mrb[117].mxu0  ;;  %v2847_v32 = vpack.c.bf16 %v4580_v35, %v4576_v55 }
 0x6ca   : > { %v2782_v37 = vadd.f32 %v2781_v15, %v6092_v54  ;;  %v2783_v56 = vpop.f32.mrb[118].mxu0 }
 0x6cb   : > { %4589 = vtanh.f32 %v2780_v63  ;;  %v2784_v44 = vadd.f32 %v2783_v56, %v6089_v11  ;;  %v2785_v33 = vpop.f32.mrb[119].mxu0  ;;  %3089 = vmatprep.mubr.bf16.mxu1 %v2847_v32 }
 0x6cc   : > { %4591 = vtanh.f32 %v2782_v37  ;;  %v2786_v59 = vadd.f32 %v2785_v33, %v6092_v54  ;;  %3090 = vmatmul.mubr.bf16.gmra.mrb[100].mxu1 %v2846_v16 }
 0x6cd   : > { %v4582_v39 = vpop.eup %4581  ;;  %4593 = vtanh.f32 %v2784_v44 }
 0x6ce   : > { %v4584_v57 = vpop.eup %4583  ;;  %4595 = vtanh.f32 %v2786_v59 }
 0x6cf   : > { %v4586_v17 = vpop.eup %4585 }
 0x6d0   : > { %v4588_v13 = vpop.eup %4587  ;;  %v2789_v38 = vpop.f32.mrb[120].mxu0  ;;  %v2848_v46 = vpack.c.bf16 %v4586_v17, %v4582_v39 }
 0x6d1   : > { %v2790_v52 = vadd.f32 %v2789_v38, %v6089_v11  ;;  %v2791_v12 = vpop.f32.mrb[121].mxu0  ;;  %v2849_v7 = vpack.c.bf16 %v4588_v13, %v4584_v57 }
 0x6d2   : > { %v2792_v27 = vadd.f32 %v2791_v12, %v6092_v54  ;;  %v2793_v30 = vpop.f32.mrb[122].mxu0 }
 0x6d3   : > { %4597 = vtanh.f32 %v2790_v52  ;;  %v2794_v36 = vadd.f32 %v2793_v30, %v6089_v11  ;;  %v2795_v45 = vpop.f32.mrb[123].mxu0  ;;  %3099 = vmatprep.mubr.bf16.mxu1 %v2849_v7 }
 0x6d4   : > { %4599 = vtanh.f32 %v2792_v27  ;;  %v2796_v47 = vadd.f32 %v2795_v45, %v6092_v54  ;;  %3100 = vmatmul.mubr.bf16.gmra.mrb[104].mxu1 %v2848_v46 }
 0x6d5   : > { %v4590_v60 = vpop.eup %4589  ;;  %4601 = vtanh.f32 %v2794_v36 }
 0x6d6   : > { %v4592_v41 = vpop.eup %4591  ;;  %4603 = vtanh.f32 %v2796_v47 }
 0x6d7   : > { %v4594_v0 = vpop.eup %4593 }
 0x6d8   : > { %v4596_v43 = vpop.eup %4595  ;;  %v2799_v23 = vpop.f32.mrb[124].mxu0  ;;  %v2850_v1 = vpack.c.bf16 %v4594_v0, %v4590_v60 }
 0x6d9   : > { %v2800_v4 = vadd.f32 %v2799_v23, %v6089_v11  ;;  %v2801_v51 = vpop.f32.mrb[125].mxu0  ;;  %v2851_v28 = vpack.c.bf16 %v4596_v43, %v4592_v41 }
 0x6da   : > { %v2802_v9 = vadd.f32 %v2801_v51, %v6092_v54  ;;  %v2803_v55 = vpop.f32.mrb[126].mxu0 }
 0x6db   : > { %4605 = vtanh.f32 %v2800_v4  ;;  %v2804_v2 = vadd.f32 %v2803_v55, %v6089_v11  ;;  %v2805_v35 = vpop.f32.mrb[127].mxu0  ;;  %3109 = vmatprep.mubr.bf16.mxu1 %v2851_v28 }
 0x6dc   : > { %4607 = vtanh.f32 %v2802_v9  ;;  %v2806_v40 = vadd.f32 %v2805_v35, %v6092_v54  ;;  %3110 = vmatmul.mubr.bf16.gmra.mrb[108].mxu1 %v2850_v1  ;;  %v3745_v54 = vld [vmem:[%s6368_s5 + $0x6] sm:$0x3] }
 0x6dd   : > { %v4598_v16 = vpop.eup %4597  ;;  %4609 = vtanh.f32 %v2804_v2  ;;  %v6130_v17 = vrot.slane %v3745_v54, %v5051_v20 }
 0x6de   : > { %v4600_v63 = vpop.eup %4599  ;;  %4611 = vtanh.f32 %v2806_v40  ;;  %v6145_v40 = vrot.slane %v3745_v54, %v5056_v22 }
 0x6df   : > { %v4602_v15 = vpop.eup %4601 }
 0x6e0   : > { %v4604_v32 = vpop.eup %4603  ;;  %v2852_v37 = vpack.c.bf16 %v4602_v15, %v4598_v16 }
 0x6e1   : > { %v2853_v56 = vpack.c.bf16 %v4604_v32, %v4600_v63 }
 0x6e3   : > { %3119 = vmatprep.mubr.bf16.mxu1 %v2853_v56 }
 0x6e4   : > { %3120 = vmatmul.mubr.bf16.gmra.mrb[112].mxu1 %v2852_v37 }
 0x6e5   : > { %v4606_v44 = vpop.eup %4605 }
 0x6e6   : > { %v4608_v33 = vpop.eup %4607 }
 0x6e7   : > { %v4610_v59 = vpop.eup %4609 }
 0x6e8   : > { %v4612_v11 = vpop.eup %4611  ;;  %v2854_v39 = vpack.c.bf16 %v4610_v59, %v4606_v44 }
 0x6e9   : > { %v2855_v57 = vpack.c.bf16 %v4612_v11, %v4608_v33 }
 0x6eb   : > { %3129 = vmatprep.mubr.bf16.mxu1 %v2855_v57 }
 0x6ec   : > { %3130 = vmatmul.mubr.bf16.gmra.mrb[116].mxu1 %v2854_v39 }
 0x787   : > { %v3061_v13 = vpop.f32.mrb[128].mxu0 }
 0x788   : > { %v3062_v38 = vadd.f32 %v3061_v13, %v6130_v17  ;;  %v3063_v46 = vpop.f32.mrb[129].mxu0 }
 0x789   : > { %v3065_v52 = vpop.f32.mrb[130].mxu0  ;;  %v3064_v44 = vadd.f32 %v3063_v46, %v6145_v40 }
 0x78a   : > { %4613 = vtanh.f32 %v3062_v38  ;;  %v3066_v12 = vadd.f32 %v3065_v52, %v6130_v17  ;;  %v3067_v7 = vpop.f32.mrb[131].mxu0 }
 0x78b   : > { %v3068_v54 = vadd.f32 %v3067_v7, %v6145_v40 }
 0x78c   : > { %4615 = vtanh.f32 %v3066_v12 }
 0x78f   : > { %v3071_v27 = vpop.f32.mrb[132].mxu0 }
 0x790   : > { %v3072_v30 = vadd.f32 %v3071_v27, %v6130_v17  ;;  %v3073_v36 = vpop.f32.mrb[133].mxu0 }
 0x791   : > { %v3075_v45 = vpop.f32.mrb[134].mxu0 }
 0x792   : > { %4617 = vtanh.f32 %v3072_v30  ;;  %v3076_v47 = vadd.f32 %v3075_v45, %v6130_v17  ;;  %v6136_v20 = vpop.f32.mrb[135].mxu0 }
 0x794   : > { %v4614_v60 = vpop.eup %4613  ;;  %4619 = vtanh.f32 %v3076_v47 }
 0x795   : > { %v3156_v41 = vmul.f32 1.442695, %v4614_v60  ;;  %3220 = vadd.xlane.f32.xlu0 %v4614_v60 }
 0x796   : > { %v4616_v0 = vpop.eup %4615 }
 0x797   : > { %4621 = vpow2.f32 %v3156_v41  ;;  %v3158_v43 = vmul.f32 1.442695, %v4616_v0  ;;  %v3081_v23 = vpop.f32.mrb[96].mxu1  ;;  %3222 = vadd.xlane.f32.xlu1 %v4616_v0 }
 0x798   : > { %v3082_v1 = vadd.f32 %v3081_v23, %v6130_v17  ;;  %v6139_v4 = vpop.f32.mrb[97].mxu1 }
 0x799   : > { %4623 = vpow2.f32 %v3158_v43  ;;  %v3085_v51 = vpop.f32.mrb[98].mxu1 }
 0x79a   : > { %4625 = vtanh.f32 %v3082_v1  ;;  %v3086_v28 = vadd.f32 %v3085_v51, %v6130_v17  ;;  %v6142_v9 = vpop.f32.mrb[99].mxu1  ;;  %v3078_v1 = vadd.f32 %v6136_v20, %v6145_v40 }
 0x79c   : > { %v4618_v55 = vpop.eup %4617  ;;  %4627 = vtanh.f32 %v3086_v28 }
 0x79d   : > { %v3160_v2 = vmul.f32 1.442695, %v4618_v55  ;;  %3224 = vadd.xlane.f32.xlu0 %v4618_v55 }
 0x79e   : > { %v4620_v35 = vpop.eup %4619 }
 0x79f   : > { %4629 = vpow2.f32 %v3160_v2  ;;  %v3162_v16 = vmul.f32 1.442695, %v4620_v35  ;;  %v3091_v63 = vpop.f32.mrb[100].mxu1  ;;  %3226 = vadd.xlane.f32.xlu1 %v4620_v35 }
 0x7a0   : > { %v3092_v15 = vadd.f32 %v3091_v63, %v6130_v17  ;;  %v6148_v32 = vpop.f32.mrb[101].mxu1 }
 0x7a1   : > { %v4622_v37 = vpop.eup %4621  ;;  %4631 = vpow2.f32 %v3162_v16  ;;  %v3095_v56 = vpop.f32.mrb[102].mxu1 }
 0x7a2   : > { %v3188_v33 = vmul.f32 %v4622_v37, %v5491_v48  ;;  %4633 = vtanh.f32 %v3092_v15  ;;  %v3096_v22 = vadd.f32 %v3095_v56, %v6130_v17  ;;  %v6153_v59 = vpop.f32.mrb[103].mxu1 }
 0x7a3   : > { %v4624_v11 = vpop.eup %4623 }
 0x7a4   : > { %v4626_v39 = vpop.eup %4625  ;;  %v3204_v57 = vadd.f32 %v3188_v33, %v3064_v44  ;;  %v3189_v13 = vmul.f32 %v4624_v11, %v5495_v10  ;;  %4635 = vtanh.f32 %v3096_v22  ;;  %v3074_v10 = vadd.f32 %v3073_v36, %v6145_v40 }
 0x7a5   : > { %v3164_v38 = vmul.f32 1.442695, %v4626_v39  ;;  %3228 = vadd.xlane.f32.xlu0 %v4626_v39  ;;  %v3088_v11 = vadd.f32 %v6142_v9, %v6145_v40 }
 0x7a6   : > { %v4628_v52 = vpop.eup %4627  ;;  %3268 = vst [vmem:[%s5898_s14] sm:$0xff] %v3204_v57  ;;  %v3205_v46 = vadd.f32 %v3189_v13, %v3068_v54 }
 0x7a7   : > { %4637 = vpow2.f32 %v3164_v38  ;;  %v3166_v48 = vmul.f32 1.442695, %v4628_v52  ;;  %v3101_v12 = vpop.f32.mrb[104].mxu1  ;;  %3230 = vadd.xlane.f32.xlu1 %v4628_v52 }
 0x7a8   : > { %3269 = vst [vmem:[%s5898_s14 + $0x10] sm:$0xff] %v3205_v46  ;;  %v3102_v27 = vadd.f32 %v3101_v12, %v6130_v17  ;;  %v6160_v30 = vpop.f32.mrb[105].mxu1 }
 0x7a9   : > { %v4630_v45 = vpop.eup %4629  ;;  %4639 = vpow2.f32 %v3166_v48  ;;  %v3105_v7 = vpop.f32.mrb[106].mxu1 }
 0x7aa   : > { %v3190_v47 = vmul.f32 %v4630_v45, %v5509_v24  ;;  %4641 = vtanh.f32 %v3102_v27  ;;  %v3106_v60 = vadd.f32 %v3105_v7, %v6130_v17  ;;  %v6165_v41 = vpop.f32.mrb[107].mxu1 }
 0x7ab   : > { %v4632_v0 = vpop.eup %4631 }
 0x7ac   : > { %v4634_v43 = vpop.eup %4633  ;;  %v3206_v23 = vadd.f32 %v3190_v47, %v3074_v10  ;;  %v3191_v51 = vmul.f32 %v4632_v0, %v5514_v49  ;;  %4643 = vtanh.f32 %v3106_v60  ;;  %v3084_v49 = vadd.f32 %v6139_v4, %v6145_v40 }
 0x7ad   : > { %v3168_v28 = vmul.f32 1.442695, %v4634_v43  ;;  %3232 = vadd.xlane.f32.xlu0 %v4634_v43  ;;  %v3098_v47 = vadd.f32 %v6153_v59, %v6145_v40 }
 0x7ae   : > { %v4636_v36 = vpop.eup %4635  ;;  %3270 = vst [vmem:[%s5898_s14 + $0x20] sm:$0xff] %v3206_v23  ;;  %v3207_v24 = vadd.f32 %v3191_v51, %v3078_v1 }
 0x7af   : > { %4645 = vpow2.f32 %v3168_v28  ;;  %v3170_v55 = vmul.f32 1.442695, %v4636_v36  ;;  %v3111_v2 = vpop.f32.mrb[108].mxu1  ;;  %3234 = vadd.xlane.f32.xlu1 %v4636_v36 }
 0x7b0   : > { %3271 = vst [vmem:[%s5898_s14 + $0x30] sm:$0xff] %v3207_v24  ;;  %v3112_v35 = vadd.f32 %v3111_v2, %v6130_v17  ;;  %v6173_v16 = vpop.f32.mrb[109].mxu1 }
 0x7b1   : > { %v4638_v63 = vpop.eup %4637  ;;  %4647 = vpow2.f32 %v3170_v55  ;;  %v3115_v20 = vpop.f32.mrb[110].mxu1 }
 0x7b2   : > { %v3192_v15 = vmul.f32 %v4638_v63, %v5528_v5  ;;  %4649 = vtanh.f32 %v3112_v35  ;;  %v3116_v37 = vadd.f32 %v3115_v20, %v6130_v17  ;;  %v6179_v56 = vpop.f32.mrb[111].mxu1  ;;  %v3108_v20 = vadd.f32 %v6165_v41, %v6145_v40 }
 0x7b3   : > { %v4640_v44 = vpop.eup %4639 }
 0x7b4   : > { %v4642_v33 = vpop.eup %4641  ;;  %v3208_v22 = vadd.f32 %v3192_v15, %v3084_v49  ;;  %v3193_v39 = vmul.f32 %v4640_v44, %v5533_v62  ;;  %4651 = vtanh.f32 %v3116_v37  ;;  %v3094_v62 = vadd.f32 %v6148_v32, %v6145_v40 }
 0x7b5   : > { %v3172_v57 = vmul.f32 1.442695, %v4642_v33  ;;  %3236 = vadd.xlane.f32.xlu0 %v4642_v33  ;;  %v3114_v44 = vadd.f32 %v6173_v16, %v6145_v40 }
 0x7b6   : > { %v4644_v4 = vpop.eup %4643  ;;  %3272 = vst [vmem:[%s5898_s14 + $0x40] sm:$0xff] %v3208_v22  ;;  %v3209_v5 = vadd.f32 %v3193_v39, %v3088_v11  ;;  %v3118_v11 = vadd.f32 %v6179_v56, %v6145_v40 }
 0x7b7   : > { %4653 = vpow2.f32 %v3172_v57  ;;  %v3174_v54 = vmul.f32 1.442695, %v4644_v4  ;;  %v3121_v13 = vpop.f32.mrb[112].mxu1  ;;  %3238 = vadd.xlane.f32.xlu1 %v4644_v4 }
 0x7b8   : > { %3273 = vst [vmem:[%s5898_s14 + $0x50] sm:$0xff] %v3209_v5  ;;  %v3122_v38 = vadd.f32 %v3121_v13, %v6130_v17  ;;  %v6187_v52 = vpop.f32.mrb[113].mxu1 }
 0x7b9   : > { %v4646_v46 = vpop.eup %4645  ;;  %4655 = vpow2.f32 %v3174_v54  ;;  %v3125_v9 = vpop.f32.mrb[114].mxu1  ;;  %v3124_v16 = vadd.f32 %v6187_v52, %v6145_v40 }
 0x7ba   : > { %v3194_v48 = vmul.f32 %v4646_v46, %v5547_v50  ;;  %4657 = vtanh.f32 %v3122_v38  ;;  %v3126_v12 = vadd.f32 %v3125_v9, %v6130_v17  ;;  %v6193_v27 = vpop.f32.mrb[115].mxu1 }
 0x7bb   : > { %v4648_v45 = vpop.eup %4647  ;;  %v3128_v38 = vadd.f32 %v6193_v27, %v6145_v40 }
 0x7bc   : > { %v4650_v7 = vpop.eup %4649  ;;  %v3210_v10 = vadd.f32 %v3194_v48, %v3094_v62  ;;  %v3195_v60 = vmul.f32 %v4648_v45, %v5552_v58  ;;  %4659 = vtanh.f32 %v3126_v12  ;;  %v3104_v58 = vadd.f32 %v6160_v30, %v6145_v40 }
 0x7bd   : > { %v3176_v0 = vmul.f32 1.442695, %v4650_v7  ;;  %3240 = vadd.xlane.f32.xlu0 %v4650_v7 }
 0x7be   : > { %v4652_v32 = vpop.eup %4651  ;;  %3274 = vst [vmem:[%s5898_s14 + $0x60] sm:$0xff] %v3210_v10  ;;  %v3211_v50 = vadd.f32 %v3195_v60, %v3098_v47 }
 0x7bf   : > { %4661 = vpow2.f32 %v3176_v0  ;;  %v3178_v43 = vmul.f32 1.442695, %v4652_v32  ;;  %v3131_v23 = vpop.f32.mrb[116].mxu1  ;;  %3242 = vadd.xlane.f32.xlu1 %v4652_v32 }
 0x7c0   : > { %3275 = vst [vmem:[%s5898_s14 + $0x70] sm:$0xff] %v3211_v50  ;;  %v3132_v1 = vadd.f32 %v3131_v23, %v6130_v17  ;;  %v3133_v51 = vpop.f32.mrb[117].mxu1 }
 0x7c1   : > { %v4654_v28 = vpop.eup %4653  ;;  %4663 = vpow2.f32 %v3178_v43  ;;  %v3135_v59 = vpop.f32.mrb[118].mxu1  ;;  %v3134_v52 = vadd.f32 %v3133_v51, %v6145_v40 }
 0x7c2   : > { %v3196_v36 = vmul.f32 %v4654_v28, %v5566_v8  ;;  %4665 = vtanh.f32 %v3132_v1  ;;  %v3136_v24 = vadd.f32 %v3135_v59, %v6130_v17  ;;  %v3137_v55 = vpop.f32.mrb[119].mxu1 }
 0x7c3   : > { %v4656_v2 = vpop.eup %4655  ;;  %v3138_v45 = vadd.f32 %v3137_v55, %v6145_v40 }
 0x7c4   : > { %v4658_v35 = vpop.eup %4657  ;;  %v3212_v63 = vadd.f32 %v3196_v36, %v3104_v58  ;;  %v3197_v49 = vmul.f32 %v4656_v2, %v5571_v6  ;;  %4667 = vtanh.f32 %v3136_v24 }
 0x7c5   : > { %v3180_v15 = vmul.f32 1.442695, %v4658_v35  ;;  %3244 = vadd.xlane.f32.xlu0 %v4658_v35 }
 0x7c6   : > { %v4660_v37 = vpop.eup %4659  ;;  %3276 = vst [vmem:[%s5898_s14 + $0x80] sm:$0xff] %v3212_v63  ;;  %v3213_v30 = vadd.f32 %v3197_v49, %v3108_v20 }
 0x7c7   : > { %4669 = vpow2.f32 %v3180_v15  ;;  %v3182_v8 = vmul.f32 1.442695, %v4660_v37  ;;  %3246 = vadd.xlane.f32.xlu1 %v4660_v37 }
 0x7c8   : > { %3277 = vst [vmem:[%s5898_s14 + $0x90] sm:$0xff] %v3213_v30 }
 0x7c9   : > { %v4662_v17 = vpop.eup %4661  ;;  %4671 = vpow2.f32 %v3182_v8 }
 0x7ca   : > { %v3198_v41 = vmul.f32 %v4662_v17, %v5579_v29 }
 0x7cb   : > { %v4664_v6 = vpop.eup %4663 }
 0x7cc   : > { %v4666_v33 = vpop.eup %4665  ;;  %v3214_v22 = vadd.f32 %v3198_v41, %v3114_v44  ;;  %v3199_v39 = vmul.f32 %v4664_v6, %v5590_v3 }
 0x7cd   : > { %v3184_v57 = vmul.f32 1.442695, %v4666_v33  ;;  %3248 = vadd.xlane.f32.xlu0 %v4666_v33 }
 0x7ce   : > { %v4668_v4 = vpop.eup %4667  ;;  %3278 = vst [vmem:[%s5898_s14 + $0xa0] sm:$0xff] %v3214_v22  ;;  %v3215_v5 = vadd.f32 %v3199_v39, %v3118_v11 }
 0x7cf   : > { %4673 = vpow2.f32 %v3184_v57  ;;  %v3186_v54 = vmul.f32 1.442695, %v4668_v4  ;;  %3250 = vadd.xlane.f32.xlu1 %v4668_v4 }
 0x7d0   : > { %3279 = vst [vmem:[%s5898_s14 + $0xb0] sm:$0xff] %v3215_v5 }
 0x7d1   : > { %v4670_v29 = vpop.eup %4669  ;;  %4675 = vpow2.f32 %v3186_v54 }
 0x7d2   : > { %v3200_v56 = vmul.f32 %v4670_v29, %v5604_v31 }
 0x7d3   : > { %v4672_v3 = vpop.eup %4671 }
 0x7d4   : > { %v3216_v13 = vadd.f32 %v3200_v56, %v3124_v16  ;;  %v3201_v46 = vmul.f32 %v4672_v3, %v5612_v25 }
 0x7d6   : > { %3280 = vst [vmem:[%s5898_s14 + $0xc0] sm:$0xff] %v3216_v13  ;;  %v3217_v9 = vadd.f32 %v3201_v46, %v3128_v38 }
 0x7d8   : > { %3281 = vst [vmem:[%s5898_s14 + $0xd0] sm:$0xff] %v3217_v9 }
 0x7d9   : > { %v4674_v62 = vpop.eup %4673 }
 0x7da   : > { %v3202_v31 = vmul.f32 %v4674_v62, %v5629_v19 }
 0x7db   : > { %v4676_v48 = vpop.eup %4675 }
 0x7dc   : > { %v3218_v12 = vadd.f32 %v3202_v31, %v3134_v52  ;;  %v3203_v7 = vmul.f32 %v4676_v48, %v5637_v61 }
 0x7de   : > { %3282 = vst [vmem:[%s5898_s14 + $0xe0] sm:$0xff] %v3218_v12  ;;  %v3219_v25 = vadd.f32 %v3203_v7, %v3138_v45 }
 0x7e0   : > { %3283 = vst [vmem:[%s5898_s14 + $0xf0] sm:$0xff] %v3219_v25 }
 0x7e1   : > { %4706 = shalt.err (!%p4703_p3)
}
 0x7e2   : > { %s4707_s8 = scalar_lea.hbm %s6236_s17, 4096  ;;  %s4711_s21 = scalar_lea.hbm %s6369_s6, 8192 }
 0x7e3   : > { %p4708_p4 = scmp.ne.s32.totalorder %s6236_s17, %s4707_s8  ;;  %p4712_p9 = scmp.lt.u32.totalorder %s6236_s17, %s6369_s6 }
 0x7e4   : > { %p4713_p10 = scmp.lt.u32.totalorder %s4711_s21, %s4707_s8  ;;  %p4715_p12 = scmp.lt.u32.totalorder %s4707_s8, %s6236_s17 }
 0x7e5   : > { %p4709_p7 = pnand %p4708_p4, %p4839_p5 }
 0x7e6   : > { %p4714_p11 = por %p4713_p10, %p4712_p9 }
 0x7e7   : > { %p4710_p8 = pneg %p4709_p7 }
 0x7e8   : > { %p4716_p13 = por %p4715_p12, %p4714_p11 }
 0x7ea   : > { %p4717_p0 = pnand %p4716_p13, %p4710_p8 }
 0x7ec   : > { %4720 = shalt.err (!%p4717_p0)
}
 0x7ed   : > { %s4759_s16 = smov 256   ;;  %s4760_s19 = smov 16   ;;  %v6267_v19 = vpop.xlane.xlu0 %1796  ;;  %v6269_v61 = vpop.xlane.xlu1 %1798  ;;  %v352_v28 = vld [vmem:[%s5729_s22] sm:$0xff]  ;;  %v353_v58 = vld [vmem:[%s5729_s22 + $0x8] sm:$0xff]  ;;  %v6387_v35 = vld [vmem:[#allocation7_spill] sm:$0xff]  ;;  %vm3300_vm0 = vcmask 7168  }
 0x7ee   : > { %3835 = dma.vmem_to_hbm [thread:$0]  (%p4839_p5), %s6238_s29, 4096, %s6236_s17, %s6243_s15, %s4759_s16, %s4759_s16, %s4760_s19   ;;  %v1074_v24 = vsub.f32 %v352_v28, %v5699_v18  ;;  %v1075_v2 = vsub.f32 %v353_v58, %v5707_v53  ;;  %v6388_v49 = vld [vmem:[#allocation8_spill] sm:$0xff]  ;;  %v6389_v4 = vld [vmem:[#allocation9_spill] sm:$0xff]  ;;  %v6390_v38 = vld [vmem:[#allocation10_spill] sm:$0xff] }
 0x7ef   : > { %s6290_s17 = scalar_lea.vmem %s6370_s7, %s3449_s18  ;;  %v6391_v62 = vld [vmem:[#allocation11_spill] sm:$0xff]  ;;  %v6392_v48 = vld [vmem:[#allocation12_spill] sm:$0xff]  ;;  %v6393_v7 = vld [vmem:[#allocation13_spill] sm:$0xff] }
 0x7f0   : > { %v1800_v63 = vsub.f32 %v1074_v24, %v6387_v35  ;;  %v1801_v15 = vsub.f32 %v1075_v2, %v6388_v49  ;;  %v6396_v28 = vld [vmem:[#allocation5_spill] sm:$0xff]  ;;  %v6397_v2 = vld [vmem:[#allocation6_spill] sm:$0xff] }
 0x7f1   : > { %v2495_v40 = vpop.xlane.xlu0 %2494  ;;  %v2497_v27 = vpop.xlane.xlu1 %2496 }
 0x7f2   : > { %v2526_v37 = vsub.f32 %v1800_v63, %v2495_v40  ;;  %v2527_v53 = vsub.f32 %v1801_v15, %v2497_v27 }
 0x7f5   : > { %v2499_v10 = vpop.xlane.xlu0 %2498  ;;  %v2501_v47 = vpop.xlane.xlu1 %2500 }
 0x7f6   : > { %v2528_v44 = vsub.f32 %v5737_v26, %v2499_v10  ;;  %v2529_v6 = vsub.f32 %v5739_v21, %v2501_v47  ;;  %v6394_v47 = vld [vmem:[#allocation14_spill] sm:$0xff] }
 0x7f9   : > { %v2503_v60 = vpop.xlane.xlu0 %2502  ;;  %v2505_v0 = vpop.xlane.xlu1 %2504 }
 0x7fa   : > { %v2530_v39 = vsub.f32 %v5743_v14, %v2503_v60  ;;  %v2531_v5 = vsub.f32 %v6389_v4, %v2505_v0  ;;  %v366_v0 = vld [vmem:[%s5729_s22 + $0x70] sm:$0xff] }
 0x7fb   : > { %v1088_v58 = vsub.f32 %v366_v0, %v6396_v28 }
 0x7fd   : > { %v2507_v32 = vpop.xlane.xlu0 %2506  ;;  %v2509_v50 = vpop.xlane.xlu1 %2508  ;;  %v1814_v63 = vsub.f32 %v1088_v58, %v6267_v19 }
 0x7fe   : > { %v2532_v21 = vsub.f32 %v5749_v42, %v2507_v32  ;;  %v2533_v56 = vsub.f32 %v5751_v34, %v2509_v50  ;;  %v6395_v50 = vld [vmem:[#allocation15_spill] sm:$0xff] }
 0x801   : > { %v2511_v43 = vpop.xlane.xlu0 %2510  ;;  %v2513_v23 = vpop.xlane.xlu1 %2512 }
 0x802   : > { %v2534_v46 = vsub.f32 %v6390_v38, %v2511_v43  ;;  %v2535_v52 = vsub.f32 %v6391_v62, %v2513_v23 }
 0x805   : > { %v2515_v1 = vpop.xlane.xlu0 %2514  ;;  %v2517_v51 = vpop.xlane.xlu1 %2516 }
 0x806   : > { %v2536_v12 = vsub.f32 %v6392_v48, %v2515_v1  ;;  %v2537_v25 = vsub.f32 %v6393_v7, %v2517_v51  ;;  %v367_v1 = vld [vmem:[%s5729_s22 + $0x78] sm:$0xff] }
 0x807   : > { %v1089_v35 = vsub.f32 %v367_v1, %v6397_v2 }
 0x809   : > { %v6272_v59 = vpop.xlane.xlu0 %2518  ;;  %v6275_v36 = vpop.xlane.xlu1 %2520 }
 0x80a   : > { %v2538_v60 = vsub.f32 %v6394_v47, %v6272_v59  ;;  %v2539_v43 = vsub.f32 %v6395_v50, %v6275_v36  ;;  %v1815_v59 = vsub.f32 %v1089_v35, %v6269_v61 }
 0x80d   : > { %v6278_v55 = vpop.xlane.xlu0 %2522  ;;  %v6282_v20 = vpop.xlane.xlu1 %2524 }
 0x80e   : > { %v2540_v36 = vsub.f32 %v1814_v63, %v6278_v55  ;;  %v2541_v15 = vsub.f32 %v1815_v59, %v6282_v20 }
 0x822   : > { %v3221_v18 = vpop.xlane.xlu0 %3220 }
 0x823   : > { %v3252_v30 = vsub.f32 %v2526_v37, %v3221_v18 }
 0x824   : > { %v3223_v8 = vpop.xlane.xlu1 %3222 }
 0x825   : > { %3301 = vst.msk [vmem:[%s6290_s17] sm:$0xff] %vm3300_vm0, %v3252_v30  ;;  %v3253_v17 = vsub.f32 %v2527_v53, %v3223_v8 }
 0x827   : > { %3302 = vst.msk [vmem:[%s6290_s17 + $0x8] sm:$0xff] %vm3300_vm0, %v3253_v17 }
 0x82a   : > { %v3225_v41 = vpop.xlane.xlu0 %3224 }
 0x82b   : > { %v3254_v33 = vsub.f32 %v2528_v44, %v3225_v41 }
 0x82c   : > { %v3227_v22 = vpop.xlane.xlu1 %3226 }
 0x82d   : > { %3303 = vst.msk [vmem:[%s6290_s17 + $0x10] sm:$0xff] %vm3300_vm0, %v3254_v33  ;;  %v3255_v11 = vsub.f32 %v2529_v6, %v3227_v22 }
 0x82f   : > { %3304 = vst.msk [vmem:[%s6290_s17 + $0x18] sm:$0xff] %vm3300_vm0, %v3255_v11 }
 0x832   : > { %v3229_v57 = vpop.xlane.xlu0 %3228 }
 0x833   : > { %v3256_v54 = vsub.f32 %v2530_v39, %v3229_v57 }
 0x834   : > { %v3231_v29 = vpop.xlane.xlu1 %3230 }
 0x835   : > { %3305 = vst.msk [vmem:[%s6290_s17 + $0x20] sm:$0xff] %vm3300_vm0, %v3256_v54  ;;  %v3257_v26 = vsub.f32 %v2531_v5, %v3231_v29 }
 0x837   : > { %3306 = vst.msk [vmem:[%s6290_s17 + $0x28] sm:$0xff] %vm3300_vm0, %v3257_v26 }
 0x83a   : > { %v3233_v16 = vpop.xlane.xlu0 %3232 }
 0x83b   : > { %v3258_v3 = vsub.f32 %v2532_v21, %v3233_v16 }
 0x83c   : > { %v3235_v13 = vpop.xlane.xlu1 %3234 }
 0x83d   : > { %3307 = vst.msk [vmem:[%s6290_s17 + $0x30] sm:$0xff] %vm3300_vm0, %v3258_v3  ;;  %v3259_v14 = vsub.f32 %v2533_v56, %v3235_v13 }
 0x83f   : > { %3308 = vst.msk [vmem:[%s6290_s17 + $0x38] sm:$0xff] %vm3300_vm0, %v3259_v14 }
 0x842   : > { %v3237_v9 = vpop.xlane.xlu0 %3236 }
 0x843   : > { %v3260_v31 = vsub.f32 %v2534_v46, %v3237_v9 }
 0x844   : > { %v3239_v42 = vpop.xlane.xlu1 %3238 }
 0x845   : > { %3309 = vst.msk [vmem:[%s6290_s17 + $0x40] sm:$0xff] %vm3300_vm0, %v3260_v31  ;;  %v3261_v34 = vsub.f32 %v2535_v52, %v3239_v42 }
 0x847   : > { %3310 = vst.msk [vmem:[%s6290_s17 + $0x48] sm:$0xff] %vm3300_vm0, %v3261_v34 }
 0x84a   : > { %v3241_v45 = vpop.xlane.xlu0 %3240 }
 0x84b   : > { %v3262_v40 = vsub.f32 %v2536_v12, %v3241_v45 }
 0x84c   : > { %v3243_v27 = vpop.xlane.xlu1 %3242 }
 0x84d   : > { %3311 = vst.msk [vmem:[%s6290_s17 + $0x50] sm:$0xff] %vm3300_vm0, %v3262_v40  ;;  %v3263_v10 = vsub.f32 %v2537_v25, %v3243_v27 }
 0x84f   : > { %3312 = vst.msk [vmem:[%s6290_s17 + $0x58] sm:$0xff] %vm3300_vm0, %v3263_v10 }
 0x852   : > { %v3245_v32 = vpop.xlane.xlu0 %3244 }
 0x853   : > { %v3264_v23 = vsub.f32 %v2538_v60, %v3245_v32 }
 0x854   : > { %v3247_v51 = vpop.xlane.xlu1 %3246 }
 0x855   : > { %3313 = vst.msk [vmem:[%s6290_s17 + $0x60] sm:$0xff] %vm3300_vm0, %v3264_v23  ;;  %v3265_v24 = vsub.f32 %v2539_v43, %v3247_v51 }
 0x857   : > { %3314 = vst.msk [vmem:[%s6290_s17 + $0x68] sm:$0xff] %vm3300_vm0, %v3265_v24 }
 0x85a   : > { %v3249_v49 = vpop.xlane.xlu0 %3248 }
 0x85b   : > { %v3266_v37 = vsub.f32 %v2540_v36, %v3249_v49 }
 0x85c   : > { %v3251_v18 = vpop.xlane.xlu1 %3250 }
 0x85d   : > { %3315 = vst.msk [vmem:[%s6290_s17 + $0x70] sm:$0xff] %vm3300_vm0, %v3266_v37  ;;  %v3267_v53 = vsub.f32 %v2541_v15, %v3251_v18 }
 0x85f   : > { %3316 = vst.msk [vmem:[%s6290_s17 + $0x78] sm:$0xff] %vm3300_vm0, %v3267_v53 }
 0x860 PF: > { %p3841_p5 = scmp.ge.s32.totalorder %s4755_s27, 2  ;;  %s3356_s13 = sand.u32 1, %s4743_s24  }
 0x861   : > { %s3357_s18 = scalar_lea.sflag [#allocation3], %s3356_s13 }
 0x862   : > { %p3838_p1 = pnand %p3841_p5, %p4843_p6 }
 0x864   : > { %4738 = dma.done.wait (!%p3838_p1), %s3357_s18, 4096  }
 0x865   : > { %4740 = vsyncadd (!%p3838_p1), %s3357_s18, 4294963200  ;;  %p18_p2 = scmp.ge.s32.totalorder %s4826_s30, 4   ;;  %s6398_s24 = smov %s4747_s25 }
 0x866   : > { %s6399_s25 = smov %s4751_s26  ;;  %s6400_s26 = smov %s4837_s10 }
 0x867   : > { %s6401_s27 = smov %s4826_s30  ;;  %20 = sbr.rel (!%p18_p2) target bundleno = 3 (0x3), region = 106 }
 0x86e   :  { %3370 = vsyncpa [#allocation3], 1 }
 0x86f   :  { %3372 = vsyncpa [#allocation3 + $0x1], 1 }

</bundles_post_ra>
